<compile_context>
chip_gen: v7x
topology: tpu7x:2x2x1
jax: 0.10.0
libtpu: 0.0.40
codegen_flags: <defaults>
</compile_context>

<pallas_src>
import jax
import jax.numpy as jnp
from jax import lax
from jax.experimental import pallas as pl
from jax.experimental.pallas import tpu as pltpu

EPS = 1e-5      # nn.BatchNorm2d default eps
LANE = 128      # TPU lane width: keep channels / im2col-K lane-dense


def _round_up(x, m):
    return (x + m - 1) // m * m


def _pick_row_tile(h, max_rows=64):
    """Largest divisor of h that is <= max_rows (>= 1)."""
    best = 1
    for t in range(1, min(h, max_rows) + 1):
        if h % t == 0:
            best = t
    return best


# ---------------------------------------------------------------------------
# Kernel 1: conv1 as one lane-dense MXU matmul over pre-packed im2col lanes.
# Grid: (batch, H-row tiles) -- no halo needed (receptive field is in lanes).
# Emits raw conv output (bf16) + per-tile BN partial stats (f32).
# ---------------------------------------------------------------------------
def _conv1_kernel(x_ref, w_ref, y_ref, sum_ref, ssq_ref):
    # x_ref   : (1, TH, W, K1) bf16   im2col lanes, order (dy, dx, ci), zero-padded
    # w_ref   : (K1, CPo)      bf16
    # y_ref   : (1, TH, W, CPo) bf16  raw conv output (pre-BN)
    # sum/ssq : (1, 1, 1, CPo) f32    per-tile BN partial statistics
    th, w, k1 = x_ref.shape[1], x_ref.shape[2], x_ref.shape[3]
    cpo = y_ref.shape[3]

    patch = x_ref[0].reshape(th * w, k1)
    acc = jnp.dot(patch, w_ref[...], preferred_element_type=jnp.float32)

    y_ref[...] = acc.reshape(1, th, w, cpo).astype(y_ref.dtype)
    sum_ref[...] = jnp.sum(acc, axis=0).reshape(1, 1, 1, cpo)
    ssq_ref[...] = jnp.sum(acc * acc, axis=0).reshape(1, 1, 1, cpo)


# ---------------------------------------------------------------------------
# Kernel 2: fused BN1(scale,shift)+ReLU on the input, then 3x3 conv as nine
# accumulating MXU taps into one f32 accumulator (no im2col concat).
# Grid: one step per batch image.
# ---------------------------------------------------------------------------
def _bn_relu_conv2_kernel(scale_ref, shift_ref, x_ref, w_ref,
                          y_ref, sum_ref, ssq_ref, xpad_ref):
    # x_ref       : (1, H, W, C) bf16   raw conv1 output (pre-BN)
    # scale/shift : (1, C)       f32    folded BN1 affine (global stats)
    # w_ref       : (9, C, C)    bf16   3x3 weights, k = 3*dy + dx
    # y_ref       : (1, H, W, C) bf16   raw conv2 output (pre-BN)
    # sum/ssq     : (1, 1, C)    f32    per-tile BN partial statistics
    # xpad_ref    : (H+2, W+2, C) bf16  spatially padded, normalized activation
    H, W, C = y_ref.shape[1], y_ref.shape[2], y_ref.shape[3]
    Hp, Wp = H + 2, W + 2

    # Zero only the 1-pixel halo; the interior is fully overwritten below.
    xpad_ref[0:1, :, :] = jnp.zeros((1, Wp, C), xpad_ref.dtype)
    xpad_ref[Hp - 1:Hp, :, :] = jnp.zeros((1, Wp, C), xpad_ref.dtype)
    xpad_ref[:, 0:1, :] = jnp.zeros((Hp, 1, C), xpad_ref.dtype)
    xpad_ref[:, Wp - 1:Wp, :] = jnp.zeros((Hp, 1, C), xpad_ref.dtype)

    # Fused BN1 + ReLU in f32 (v5e has no bf16 VALU path), stored as bf16.
    a = x_ref[0].astype(jnp.float32)                       # (H, W, C)
    s = scale_ref[...].reshape(1, 1, C)
    b = shift_ref[...].reshape(1, 1, C)
    a = jnp.maximum(a * s + b, 0.0)
    xpad_ref[1:H + 1, 1:W + 1, :] = a.astype(xpad_ref.dtype)

    # 3x3 conv = nine accumulating MXU taps (f32 accumulator, bf16 operands).
    acc = jnp.zeros((H * W, C), jnp.float32)
    for dy in range(3):
        for dx in range(3):
            tap = xpad_ref[dy:dy + H, dx:dx + W, :].reshape(H * W, C)
            acc = acc + jnp.dot(tap, w_ref[3 * dy + dx],
                                preferred_element_type=jnp.float32)

    y_ref[...] = acc.reshape(1, H, W, C).astype(y_ref.dtype)
    sum_ref[...] = jnp.sum(acc, axis=0).reshape(1, 1, C)
    ssq_ref[...] = jnp.sum(acc * acc, axis=0).reshape(1, 1, C)


# ---------------------------------------------------------------------------
# pallas_call wrappers
# ---------------------------------------------------------------------------
def _conv1(x_packed, w_mat, row_tile):
    N, H, W, K1 = x_packed.shape
    CPo = w_mat.shape[1]
    TH = row_tile
    T = H // TH
    return pl.pallas_call(
        _conv1_kernel,
        grid=(N, T),
        in_specs=[
            pl.BlockSpec((1, TH, W, K1), lambda n, t: (n, t, 0, 0)),     # x
            pl.BlockSpec((K1, CPo), lambda n, t: (0, 0)),                # weights
        ],
        out_specs=[
            pl.BlockSpec((1, TH, W, CPo), lambda n, t: (n, t, 0, 0)),    # raw conv
            pl.BlockSpec((1, 1, 1, CPo), lambda n, t: (n, t, 0, 0)),     # sum
            pl.BlockSpec((1, 1, 1, CPo), lambda n, t: (n, t, 0, 0)),     # sumsq
        ],
        out_shape=[
            jax.ShapeDtypeStruct((N, H, W, CPo), jnp.bfloat16),
            jax.ShapeDtypeStruct((N, T, 1, CPo), jnp.float32),
            jax.ShapeDtypeStruct((N, T, 1, CPo), jnp.float32),
        ],
        compiler_params=pltpu.CompilerParams(
            dimension_semantics=("parallel", "parallel"),
            # At large tiles on v6e this can be raised to 64 MiB.
            vmem_limit_bytes=32 * 1024 * 1024),
    )(x_packed, w_mat)


def _conv2(scale, shift, y1, w2_mat):
    N, H, W, C = y1.shape
    # TODO(synk): H-row halo tiling for conv2 (needed for very large spatial
    # sizes on v7x's 64 MiB VMEM); per-image tiles are used here.
    return pl.pallas_call(
        _bn_relu_conv2_kernel,
        grid=(N,),
        in_specs=[
            pl.BlockSpec((1, C), lambda n: (0, 0)),                      # scale
            pl.BlockSpec((1, C), lambda n: (0, 0)),                      # shift
            pl.BlockSpec((1, H, W, C), lambda n: (n, 0, 0, 0)),          # y1
            pl.BlockSpec((9, C, C), lambda n: (0, 0, 0)),                # weights
        ],
        out_specs=[
            pl.BlockSpec((1, H, W, C), lambda n: (n, 0, 0, 0)),          # raw conv
            pl.BlockSpec((1, 1, C), lambda n: (n, 0, 0)),                # sum
            pl.BlockSpec((1, 1, C), lambda n: (n, 0, 0)),                # sumsq
        ],
        out_shape=[
            jax.ShapeDtypeStruct((N, H, W, C), jnp.bfloat16),
            jax.ShapeDtypeStruct((N, 1, C), jnp.float32),
            jax.ShapeDtypeStruct((N, 1, C), jnp.float32),
        ],
        scratch_shapes=[pltpu.VMEM((H + 2, W + 2, C), jnp.bfloat16)],
        compiler_params=pltpu.CompilerParams(
            dimension_semantics=("parallel",),
            vmem_limit_bytes=32 * 1024 * 1024),
    )(scale, shift, y1, w2_mat)


def _bn_scale_shift(sums, ssqs, gamma, beta, count):
    """Global training-mode BatchNorm folded into one (scale, shift) pair.
    Tiny XLA glue reducing per-tile partial stats -> exact batch statistics."""
    c = sums.shape[-1]
    total = jnp.sum(sums.reshape(-1, c), axis=0, keepdims=True)      # (1, C)
    total_sq = jnp.sum(ssqs.reshape(-1, c), axis=0, keepdims=True)   # (1, C)
    mean = total / count
    var = jnp.maximum(total_sq / count - mean * mean, 0.0)           # biased var
    scale = gamma * lax.rsqrt(var + EPS)
    shift = beta - mean * scale
    return scale, shift


def double_convolution(x_nchw, params):
    """PyTorch-compatible forward: x is NCHW, conv weights OIHW (bias=False)."""
    w1, g1, b1, w2, g2, b2 = params
    N, Cin, H, W = x_nchw.shape
    Cout = w1.shape[0]
    K1 = _round_up(9 * Cin, LANE)     # im2col K for conv1 (tiny-Cin friendly)
    CPo = _round_up(Cout, LANE)
    count = N * H * W

    # ---- layout glue (plain JAX): NCHW -> NHWC
    x = jnp.transpose(x_nchw, (0, 2, 3, 1)).astype(jnp.float32)

    # conv1 im2col packing in glue: lanes ordered (dy, dx, ci), padded to K1.
    xp = jnp.pad(x, ((0, 0), (1, 1), (1, 1), (0, 0)))
    cols = [xp[:, dy:dy + H, dx:dx + W, :] for dy in range(3) for dx in range(3)]
    x_packed = jnp.concatenate(cols, axis=-1)                         # (N,H,W,9*Cin)
    x_packed = jnp.pad(x_packed, ((0, 0), (0, 0), (0, 0), (0, K1 - 9 * Cin)))
    x_packed = x_packed.astype(jnp.bfloat16)

    # conv1 weights: OIHW -> (dy,dx,ci,co) -> (9*Cin, Cout), padded to (K1, CPo)
    w1_mat = jnp.transpose(w1, (2, 3, 1, 0)).astype(jnp.float32).reshape(9 * Cin, Cout)
    w1_mat = jnp.pad(w1_mat, ((0, K1 - 9 * Cin), (0, CPo - Cout))).astype(jnp.bfloat16)

    # conv2 weights: OIHW -> (dy,dx,ci,co), channel-padded, -> (9, CPo, CPo)
    w2_hwio = jnp.transpose(w2, (2, 3, 1, 0)).astype(jnp.float32)
    w2_hwio = jnp.pad(w2_hwio, ((0, 0), (0, 0), (0, CPo - Cout), (0, CPo - Cout)))
    w2_mat = w2_hwio.reshape(9, CPo, CPo).astype(jnp.bfloat16)

    # BN affine, ZERO-padded to 128 lanes (scale=shift=0 on padded lanes keeps
    # padded channels exactly zero through the fused BN1 -> conv2 path).
    def pack_affine(p):
        return jnp.pad(p.astype(jnp.float32), (0, CPo - Cout)).reshape(1, CPo)

    g1p, b1p = pack_affine(g1), pack_affine(b1)
    g2p, b2p = pack_affine(g2), pack_affine(b2)

    # conv1 (raw, bf16) + per-tile BN1 partial statistics
    th = _pick_row_tile(H)
    y1, s1, q1 = _conv1(x_packed, w1_mat, th)
    scale1, shift1 = _bn_scale_shift(s1, q1, g1p, b1p, count)

    # BN1+ReLU fused into conv2's input path; conv2 (raw, bf16) + BN2 stats
    y2, s2, q2 = _conv2(scale1, shift1, y1, w2_mat)
    scale2, shift2 = _bn_scale_shift(s2, q2, g2p, b2p, count)

    # Final BN2 + ReLU folded into the XLA epilogue (fuses with slice/transpose;
    # no standalone memory-bound Pallas pass).
    out = jnp.maximum(y2.astype(jnp.float32) * scale2.reshape(1, 1, 1, CPo)
                      + shift2.reshape(1, 1, 1, CPo), 0.0)
    return jnp.transpose(out[..., :Cout], (0, 3, 1, 2))


# ---------------------------------------------------------------------------
# Pure-JAX reference matching PyTorch training-mode forward.
# ---------------------------------------------------------------------------
def _reference(x_nchw, params):
    w1, g1, b1, w2, g2, b2 = params

    def conv(x, w):
        return lax.conv_general_dilated(
            x, w, window_strides=(1, 1), padding=((1, 1), (1, 1)),
            dimension_numbers=("NCHW", "OIHW", "NCHW"),
            precision=lax.Precision.HIGHEST)

    def bn_relu(y, g, b):
        mean = jnp.mean(y, axis=(0, 2, 3), keepdims=True)
        var = jnp.mean((y - mean) ** 2, axis=(0, 2, 3), keepdims=True)
        y = (y - mean) * lax.rsqrt(var + EPS) * g.reshape(1, -1, 1, 1) \
            + b.reshape(1, -1, 1, 1)
        return jnp.maximum(y, 0.0)

    y = bn_relu(conv(x_nchw, w1), g1, b1)
    return bn_relu(conv(y, w2), g2, b2)


if __name__ == "__main__":
    key = jax.random.PRNGKey(0)
    ks = jax.random.split(key, 7)
    N, Cin, Cout, H, W = 2, 4, 8, 16, 16

    x = jax.random.normal(ks[0], (N, Cin, H, W), jnp.float32)
    # Conv weights (OIHW, bias=False) and BN affine params, deterministic init.
    w1 = 0.2 * jax.random.normal(ks[1], (Cout, Cin, 3, 3), jnp.float32)
    g1 = 1.0 + 0.1 * jax.random.normal(ks[2], (Cout,), jnp.float32)
    b1 = 0.1 * jax.random.normal(ks[3], (Cout,), jnp.float32)
    w2 = 0.2 * jax.random.normal(ks[4], (Cout, Cout, 3, 3), jnp.float32)
    g2 = 1.0 + 0.1 * jax.random.normal(ks[5], (Cout,), jnp.float32)
    b2 = 0.1 * jax.random.normal(ks[6], (Cout,), jnp.float32)
    params = (w1, g1, b1, w2, g2, b2)

    fwd = jax.jit(double_convolution)
    out = jax.block_until_ready(fwd(x, params))
    ref = jax.block_until_ready(_reference(x, params))

    assert out.shape == (N, Cout, H, W), out.shape
    max_err = float(jnp.max(jnp.abs(out - ref)))
    # bf16 MXU operands AND bf16 inter-layer activation storage with f32
    # accumulation/statistics; BN renormalizes, so 3e-2 is ample headroom.
    assert jnp.allclose(out, ref, atol=3e-2, rtol=3e-2), f"max abs err {max_err}"
    print("KERNEL_OK")
</pallas_src>

<mosaic_0001>
module attributes {stable_mosaic.version = 11 : i64} {
  func.func @_conv1_kernel(%arg0: i32, %arg1: i32, %arg2: memref<1x16x16x128xbf16, #tpu.memory_space<vmem>>, %arg3: memref<128x128xbf16, #tpu.memory_space<vmem>>, %arg4: memref<1x16x16x128xbf16, #tpu.memory_space<vmem>>, %arg5: memref<1x1x1x128xf32, #tpu.memory_space<vmem>>, %arg6: memref<1x1x1x128xf32, #tpu.memory_space<vmem>>) attributes {dimension_semantics = [#tpu.dimension_semantics<parallel>, #tpu.dimension_semantics<parallel>], iteration_bounds = array<i64: 2, 1>, scalar_prefetch = 0 : i64, scratch_operands = 0 : i64, tpu.core_type = #tpu.core_type<tc>, window_params = [{transform_indices = @transform_0, window_bounds = array<i64: 1, 16, 16, 128>}, {pipeline_mode = #tpu.pipeline_mode<synchronous>, transform_indices = @transform_1, window_bounds = array<i64: 128, 128>}, {transform_indices = @transform_2, window_bounds = array<i64: 1, 16, 16, 128>}, {transform_indices = @transform_3, window_bounds = array<i64: 1, 1, 1, 128>}, {transform_indices = @transform_4, window_bounds = array<i64: 1, 1, 1, 128>}]} {
    %c0 = arith.constant 0 : index
    %c0_0 = arith.constant 0 : index
    %c0_1 = arith.constant 0 : index
    %c0_2 = arith.constant 0 : index
    %0 = vector.load %arg2[%c0, %c0_0, %c0_1, %c0_2] : memref<1x16x16x128xbf16, #tpu.memory_space<vmem>>, vector<1x16x16x128xbf16>
    %1 = vector.shape_cast %0 : vector<1x16x16x128xbf16> to vector<16x16x128xbf16>
    %2 = vector.shape_cast %1 : vector<16x16x128xbf16> to vector<256x128xbf16>
    %c0_3 = arith.constant 0 : index
    %c0_4 = arith.constant 0 : index
    %3 = vector.load %arg3[%c0_3, %c0_4] : memref<128x128xbf16, #tpu.memory_space<vmem>>, vector<128x128xbf16>
    %cst = arith.constant dense<0.000000e+00> : vector<256x128xf32>
    %4 = tpu.matmul %2, %3, %cst {dimension_numbers = #tpu.dot_dimension_numbers<[1], [0], [0], [1], [0, 0, 1, 1], [], []>} : vector<256x128xbf16>, vector<128x128xbf16>, vector<256x128xf32> -> vector<256x128xf32>
    %5 = vector.shape_cast %4 : vector<256x128xf32> to vector<1x16x16x128xf32>
    %6 = arith.truncf %5 : vector<1x16x16x128xf32> to vector<1x16x16x128xbf16>
    %c0_5 = arith.constant 0 : index
    %c0_6 = arith.constant 0 : index
    %c0_7 = arith.constant 0 : index
    %c0_8 = arith.constant 0 : index
    %7 = vector.load %arg4[%c0_5, %c0_6, %c0_7, %c0_8] : memref<1x16x16x128xbf16, #tpu.memory_space<vmem>>, vector<1x16x16x128xbf16>
    tpu.vector_store %arg4[%c0_5, %c0_6, %c0_7, %c0_8], %6 {strides = array<i32>} : memref<1x16x16x128xbf16, #tpu.memory_space<vmem>>, vector<1x16x16x128xbf16>,
    %cst_9 = arith.constant dense<0.000000e+00> : vector<128xf32>
    %8 = vector.multi_reduction <add>, %4, %cst_9 [0] : vector<256x128xf32> to vector<128xf32>
    %9 = vector.shape_cast %8 : vector<128xf32> to vector<1x1x1x128xf32>
    %c0_10 = arith.constant 0 : index
    %c0_11 = arith.constant 0 : index
    %c0_12 = arith.constant 0 : index
    %c0_13 = arith.constant 0 : index
    %10 = vector.load %arg5[%c0_10, %c0_11, %c0_12, %c0_13] : memref<1x1x1x128xf32, #tpu.memory_space<vmem>>, vector<1x1x1x128xf32>
    tpu.vector_store %arg5[%c0_10, %c0_11, %c0_12, %c0_13], %9 {strides = array<i32>} : memref<1x1x1x128xf32, #tpu.memory_space<vmem>>, vector<1x1x1x128xf32>,
    %11 = arith.mulf %4, %4 : vector<256x128xf32>
    %cst_14 = arith.constant dense<0.000000e+00> : vector<128xf32>
    %12 = vector.multi_reduction <add>, %11, %cst_14 [0] : vector<256x128xf32> to vector<128xf32>
    %13 = vector.shape_cast %12 : vector<128xf32> to vector<1x1x1x128xf32>
    %c0_15 = arith.constant 0 : index
    %c0_16 = arith.constant 0 : index
    %c0_17 = arith.constant 0 : index
    %c0_18 = arith.constant 0 : index
    %14 = vector.load %arg6[%c0_15, %c0_16, %c0_17, %c0_18] : memref<1x1x1x128xf32, #tpu.memory_space<vmem>>, vector<1x1x1x128xf32>
    tpu.vector_store %arg6[%c0_15, %c0_16, %c0_17, %c0_18], %13 {strides = array<i32>} : memref<1x1x1x128xf32, #tpu.memory_space<vmem>>, vector<1x1x1x128xf32>,
    return
  }
  func.func @transform_0(%arg0: i32, %arg1: i32) -> (i32, i32, i32, i32) {
    %c0_i32 = arith.constant 0 : i32
    %c0_i32_0 = arith.constant 0 : i32
    %c0_i32_1 = arith.constant 0 : i32
    return %arg0, %arg1, %c0_i32, %c0_i32_0 : i32, i32, i32, i32
  }
  func.func @transform_1(%arg0: i32, %arg1: i32) -> (i32, i32) {
    %c0_i32 = arith.constant 0 : i32
    %c0_i32_0 = arith.constant 0 : i32
    %c0_i32_1 = arith.constant 0 : i32
    return %c0_i32, %c0_i32_0 : i32, i32
  }
  func.func @transform_2(%arg0: i32, %arg1: i32) -> (i32, i32, i32, i32) {
    %c0_i32 = arith.constant 0 : i32
    %c0_i32_0 = arith.constant 0 : i32
    %c0_i32_1 = arith.constant 0 : i32
    return %arg0, %arg1, %c0_i32, %c0_i32_0 : i32, i32, i32, i32
  }
  func.func @transform_3(%arg0: i32, %arg1: i32) -> (i32, i32, i32, i32) {
    %c0_i32 = arith.constant 0 : i32
    %c0_i32_0 = arith.constant 0 : i32
    %c0_i32_1 = arith.constant 0 : i32
    return %arg0, %arg1, %c0_i32, %c0_i32_0 : i32, i32, i32, i32
  }
  func.func @transform_4(%arg0: i32, %arg1: i32) -> (i32, i32, i32, i32) {
    %c0_i32 = arith.constant 0 : i32
    %c0_i32_0 = arith.constant 0 : i32
    %c0_i32_1 = arith.constant 0 : i32
    return %arg0, %arg1, %c0_i32, %c0_i32_0 : i32, i32, i32, i32
  }
}

module attributes {stable_mosaic.version = 11 : i64} {
  func.func @_bn_relu_conv2_kernel(%arg0: i32, %arg1: memref<1x128xf32, #tpu.memory_space<vmem>>, %arg2: memref<1x128xf32, #tpu.memory_space<vmem>>, %arg3: memref<1x16x16x128xbf16, #tpu.memory_space<vmem>>, %arg4: memref<9x128x128xbf16, #tpu.memory_space<vmem>>, %arg5: memref<1x16x16x128xbf16, #tpu.memory_space<vmem>>, %arg6: memref<1x1x128xf32, #tpu.memory_space<vmem>>, %arg7: memref<1x1x128xf32, #tpu.memory_space<vmem>>, %arg8: memref<18x18x128xbf16, #tpu.memory_space<vmem>>) attributes {dimension_semantics = [#tpu.dimension_semantics<parallel>], iteration_bounds = array<i64: 2>, scalar_prefetch = 0 : i64, scratch_operands = 1 : i64, tpu.core_type = #tpu.core_type<tc>, window_params = [{pipeline_mode = #tpu.pipeline_mode<synchronous>, transform_indices = @transform_0, window_bounds = array<i64: 1, 128>}, {pipeline_mode = #tpu.pipeline_mode<synchronous>, transform_indices = @transform_1, window_bounds = array<i64: 1, 128>}, {transform_indices = @transform_2, window_bounds = array<i64: 1, 16, 16, 128>}, {pipeline_mode = #tpu.pipeline_mode<synchronous>, transform_indices = @transform_3, window_bounds = array<i64: 9, 128, 128>}, {transform_indices = @transform_4, window_bounds = array<i64: 1, 16, 16, 128>}, {transform_indices = @transform_5, window_bounds = array<i64: 1, 1, 128>}, {transform_indices = @transform_6, window_bounds = array<i64: 1, 1, 128>}]} {
    %cst = arith.constant 0.000000e+00 : bf16
    %0 = vector.broadcast %cst : bf16 to vector<1x18x128xbf16>
    %c0 = arith.constant 0 : index
    %c0_0 = arith.constant 0 : index
    %c0_1 = arith.constant 0 : index
    %1 = vector.load %arg8[%c0, %c0_0, %c0_1] : memref<18x18x128xbf16, #tpu.memory_space<vmem>>, vector<1x18x128xbf16>
    tpu.vector_store %arg8[%c0, %c0_0, %c0_1], %0 {strides = array<i32>} : memref<18x18x128xbf16, #tpu.memory_space<vmem>>, vector<1x18x128xbf16>,
    %cst_2 = arith.constant 0.000000e+00 : bf16
    %2 = vector.broadcast %cst_2 : bf16 to vector<1x18x128xbf16>
    %c17 = arith.constant 17 : index
    %c0_3 = arith.constant 0 : index
    %c0_4 = arith.constant 0 : index
    %3 = vector.load %arg8[%c17, %c0_3, %c0_4] : memref<18x18x128xbf16, #tpu.memory_space<vmem>>, vector<1x18x128xbf16>
    tpu.vector_store %arg8[%c17, %c0_3, %c0_4], %2 {strides = array<i32>} : memref<18x18x128xbf16, #tpu.memory_space<vmem>>, vector<1x18x128xbf16>,
    %cst_5 = arith.constant 0.000000e+00 : bf16
    %4 = vector.broadcast %cst_5 : bf16 to vector<18x1x128xbf16>
    %c0_6 = arith.constant 0 : index
    %c0_7 = arith.constant 0 : index
    %c0_8 = arith.constant 0 : index
    %5 = vector.load %arg8[%c0_6, %c0_7, %c0_8] : memref<18x18x128xbf16, #tpu.memory_space<vmem>>, vector<18x1x128xbf16>
    tpu.vector_store %arg8[%c0_6, %c0_7, %c0_8], %4 {strides = array<i32>} : memref<18x18x128xbf16, #tpu.memory_space<vmem>>, vector<18x1x128xbf16>,
    %cst_9 = arith.constant 0.000000e+00 : bf16
    %6 = vector.broadcast %cst_9 : bf16 to vector<18x1x128xbf16>
    %c0_10 = arith.constant 0 : index
    %c17_11 = arith.constant 17 : index
    %c0_12 = arith.constant 0 : index
    %7 = vector.load %arg8[%c0_10, %c17_11, %c0_12] : memref<18x18x128xbf16, #tpu.memory_space<vmem>>, vector<18x1x128xbf16>
    tpu.vector_store %arg8[%c0_10, %c17_11, %c0_12], %6 {strides = array<i32>} : memref<18x18x128xbf16, #tpu.memory_space<vmem>>, vector<18x1x128xbf16>,
    %c0_13 = arith.constant 0 : index
    %c0_14 = arith.constant 0 : index
    %c0_15 = arith.constant 0 : index
    %c0_16 = arith.constant 0 : index
    %8 = vector.load %arg3[%c0_13, %c0_14, %c0_15, %c0_16] : memref<1x16x16x128xbf16, #tpu.memory_space<vmem>>, vector<1x16x16x128xbf16>
    %9 = vector.shape_cast %8 : vector<1x16x16x128xbf16> to vector<16x16x128xbf16>
    %10 = arith.extf %9 : vector<16x16x128xbf16> to vector<16x16x128xf32>
    %c0_17 = arith.constant 0 : index
    %c0_18 = arith.constant 0 : index
    %11 = vector.load %arg1[%c0_17, %c0_18] : memref<1x128xf32, #tpu.memory_space<vmem>>, vector<1x128xf32>
    %12 = vector.shape_cast %11 : vector<1x128xf32> to vector<1x1x128xf32>
    %c0_19 = arith.constant 0 : index
    %c0_20 = arith.constant 0 : index
    %13 = vector.load %arg2[%c0_19, %c0_20] : memref<1x128xf32, #tpu.memory_space<vmem>>, vector<1x128xf32>
    %14 = vector.shape_cast %13 : vector<1x128xf32> to vector<1x1x128xf32>
    %15 = vector.broadcast %12 : vector<1x1x128xf32> to vector<16x16x128xf32>
    %16 = arith.mulf %10, %15 : vector<16x16x128xf32>
    %17 = vector.broadcast %14 : vector<1x1x128xf32> to vector<16x16x128xf32>
    %18 = arith.addf %16, %17 : vector<16x16x128xf32>
    %cst_21 = arith.constant 0.000000e+00 : f32
    %19 = vector.broadcast %cst_21 : f32 to vector<16x16x128xf32>
    %20 = arith.maximumf %18, %19 : vector<16x16x128xf32>
    %21 = arith.truncf %20 : vector<16x16x128xf32> to vector<16x16x128xbf16>
    %c1 = arith.constant 1 : index
    %c1_22 = arith.constant 1 : index
    %c0_23 = arith.constant 0 : index
    %22 = vector.load %arg8[%c1, %c1_22, %c0_23] : memref<18x18x128xbf16, #tpu.memory_space<vmem>>, vector<16x16x128xbf16>
    tpu.vector_store %arg8[%c1, %c1_22, %c0_23], %21 {strides = array<i32>} : memref<18x18x128xbf16, #tpu.memory_space<vmem>>, vector<16x16x128xbf16>,
    %cst_24 = arith.constant 0.000000e+00 : f32
    %23 = vector.broadcast %cst_24 : f32 to vector<256x128xf32>
    %c0_25 = arith.constant 0 : index
    %c0_26 = arith.constant 0 : index
    %c0_27 = arith.constant 0 : index
    %24 = vector.load %arg8[%c0_25, %c0_26, %c0_27] : memref<18x18x128xbf16, #tpu.memory_space<vmem>>, vector<16x16x128xbf16>
    %25 = vector.shape_cast %24 : vector<16x16x128xbf16> to vector<256x128xbf16>
    %c0_28 = arith.constant 0 : index
    %c0_29 = arith.constant 0 : index
    %c0_30 = arith.constant 0 : index
    %26 = vector.load %arg4[%c0_28, %c0_29, %c0_30] : memref<9x128x128xbf16, #tpu.memory_space<vmem>>, vector<1x128x128xbf16>
    %27 = vector.shape_cast %26 : vector<1x128x128xbf16> to vector<128x128xbf16>
    %cst_31 = arith.constant dense<0.000000e+00> : vector<256x128xf32>
    %28 = tpu.matmul %25, %27, %cst_31 {dimension_numbers = #tpu.dot_dimension_numbers<[1], [0], [0], [1], [0, 0, 1, 1], [], []>} : vector<256x128xbf16>, vector<128x128xbf16>, vector<256x128xf32> -> vector<256x128xf32>
    %29 = arith.addf %23, %28 : vector<256x128xf32>
    %c0_32 = arith.constant 0 : index
    %c1_33 = arith.constant 1 : index
    %c0_34 = arith.constant 0 : index
    %30 = vector.load %arg8[%c0_32, %c1_33, %c0_34] : memref<18x18x128xbf16, #tpu.memory_space<vmem>>, vector<16x16x128xbf16>
    %31 = vector.shape_cast %30 : vector<16x16x128xbf16> to vector<256x128xbf16>
    %c1_35 = arith.constant 1 : index
    %c0_36 = arith.constant 0 : index
    %c0_37 = arith.constant 0 : index
    %32 = vector.load %arg4[%c1_35, %c0_36, %c0_37] : memref<9x128x128xbf16, #tpu.memory_space<vmem>>, vector<1x128x128xbf16>
    %33 = vector.shape_cast %32 : vector<1x128x128xbf16> to vector<128x128xbf16>
    %cst_38 = arith.constant dense<0.000000e+00> : vector<256x128xf32>
    %34 = tpu.matmul %31, %33, %cst_38 {dimension_numbers = #tpu.dot_dimension_numbers<[1], [0], [0], [1], [0, 0, 1, 1], [], []>} : vector<256x128xbf16>, vector<128x128xbf16>, vector<256x128xf32> -> vector<256x128xf32>
    %35 = arith.addf %29, %34 : vector<256x128xf32>
    %c0_39 = arith.constant 0 : index
    %c2 = arith.constant 2 : index
    %c0_40 = arith.constant 0 : index
    %36 = vector.load %arg8[%c0_39, %c2, %c0_40] : memref<18x18x128xbf16, #tpu.memory_space<vmem>>, vector<16x16x128xbf16>
    %37 = vector.shape_cast %36 : vector<16x16x128xbf16> to vector<256x128xbf16>
    %c2_41 = arith.constant 2 : index
    %c0_42 = arith.constant 0 : index
    %c0_43 = arith.constant 0 : index
    %38 = vector.load %arg4[%c2_41, %c0_42, %c0_43] : memref<9x128x128xbf16, #tpu.memory_space<vmem>>, vector<1x128x128xbf16>
    %39 = vector.shape_cast %38 : vector<1x128x128xbf16> to vector<128x128xbf16>
    %cst_44 = arith.constant dense<0.000000e+00> : vector<256x128xf32>
    %40 = tpu.matmul %37, %39, %cst_44 {dimension_numbers = #tpu.dot_dimension_numbers<[1], [0], [0], [1], [0, 0, 1, 1], [], []>} : vector<256x128xbf16>, vector<128x128xbf16>, vector<256x128xf32> -> vector<256x128xf32>
    %41 = arith.addf %35, %40 : vector<256x128xf32>
    %c1_45 = arith.constant 1 : index
    %c0_46 = arith.constant 0 : index
    %c0_47 = arith.constant 0 : index
    %42 = vector.load %arg8[%c1_45, %c0_46, %c0_47] : memref<18x18x128xbf16, #tpu.memory_space<vmem>>, vector<16x16x128xbf16>
    %43 = vector.shape_cast %42 : vector<16x16x128xbf16> to vector<256x128xbf16>
    %c3 = arith.constant 3 : index
    %c0_48 = arith.constant 0 : index
    %c0_49 = arith.constant 0 : index
    %44 = vector.load %arg4[%c3, %c0_48, %c0_49] : memref<9x128x128xbf16, #tpu.memory_space<vmem>>, vector<1x128x128xbf16>
    %45 = vector.shape_cast %44 : vector<1x128x128xbf16> to vector<128x128xbf16>
    %cst_50 = arith.constant dense<0.000000e+00> : vector<256x128xf32>
    %46 = tpu.matmul %43, %45, %cst_50 {dimension_numbers = #tpu.dot_dimension_numbers<[1], [0], [0], [1], [0, 0, 1, 1], [], []>} : vector<256x128xbf16>, vector<128x128xbf16>, vector<256x128xf32> -> vector<256x128xf32>
    %47 = arith.addf %41, %46 : vector<256x128xf32>
    %c1_51 = arith.constant 1 : index
    %c1_52 = arith.constant 1 : index
    %c0_53 = arith.constant 0 : index
    %48 = vector.load %arg8[%c1_51, %c1_52, %c0_53] : memref<18x18x128xbf16, #tpu.memory_space<vmem>>, vector<16x16x128xbf16>
    %49 = vector.shape_cast %48 : vector<16x16x128xbf16> to vector<256x128xbf16>
    %c4 = arith.constant 4 : index
    %c0_54 = arith.constant 0 : index
    %c0_55 = arith.constant 0 : index
    %50 = vector.load %arg4[%c4, %c0_54, %c0_55] : memref<9x128x128xbf16, #tpu.memory_space<vmem>>, vector<1x128x128xbf16>
    %51 = vector.shape_cast %50 : vector<1x128x128xbf16> to vector<128x128xbf16>
    %cst_56 = arith.constant dense<0.000000e+00> : vector<256x128xf32>
    %52 = tpu.matmul %49, %51, %cst_56 {dimension_numbers = #tpu.dot_dimension_numbers<[1], [0], [0], [1], [0, 0, 1, 1], [], []>} : vector<256x128xbf16>, vector<128x128xbf16>, vector<256x128xf32> -> vector<256x128xf32>
    %53 = arith.addf %47, %52 : vector<256x128xf32>
    %c1_57 = arith.constant 1 : index
    %c2_58 = arith.constant 2 : index
    %c0_59 = arith.constant 0 : index
    %54 = vector.load %arg8[%c1_57, %c2_58, %c0_59] : memref<18x18x128xbf16, #tpu.memory_space<vmem>>, vector<16x16x128xbf16>
    %55 = vector.shape_cast %54 : vector<16x16x128xbf16> to vector<256x128xbf16>
    %c5 = arith.constant 5 : index
    %c0_60 = arith.constant 0 : index
    %c0_61 = arith.constant 0 : index
    %56 = vector.load %arg4[%c5, %c0_60, %c0_61] : memref<9x128x128xbf16, #tpu.memory_space<vmem>>, vector<1x128x128xbf16>
    %57 = vector.shape_cast %56 : vector<1x128x128xbf16> to vector<128x128xbf16>
    %cst_62 = arith.constant dense<0.000000e+00> : vector<256x128xf32>
    %58 = tpu.matmul %55, %57, %cst_62 {dimension_numbers = #tpu.dot_dimension_numbers<[1], [0], [0], [1], [0, 0, 1, 1], [], []>} : vector<256x128xbf16>, vector<128x128xbf16>, vector<256x128xf32> -> vector<256x128xf32>
    %59 = arith.addf %53, %58 : vector<256x128xf32>
    %c2_63 = arith.constant 2 : index
    %c0_64 = arith.constant 0 : index
    %c0_65 = arith.constant 0 : index
    %60 = vector.load %arg8[%c2_63, %c0_64, %c0_65] : memref<18x18x128xbf16, #tpu.memory_space<vmem>>, vector<16x16x128xbf16>
    %61 = vector.shape_cast %60 : vector<16x16x128xbf16> to vector<256x128xbf16>
    %c6 = arith.constant 6 : index
    %c0_66 = arith.constant 0 : index
    %c0_67 = arith.constant 0 : index
    %62 = vector.load %arg4[%c6, %c0_66, %c0_67] : memref<9x128x128xbf16, #tpu.memory_space<vmem>>, vector<1x128x128xbf16>
    %63 = vector.shape_cast %62 : vector<1x128x128xbf16> to vector<128x128xbf16>
    %cst_68 = arith.constant dense<0.000000e+00> : vector<256x128xf32>
    %64 = tpu.matmul %61, %63, %cst_68 {dimension_numbers = #tpu.dot_dimension_numbers<[1], [0], [0], [1], [0, 0, 1, 1], [], []>} : vector<256x128xbf16>, vector<128x128xbf16>, vector<256x128xf32> -> vector<256x128xf32>
    %65 = arith.addf %59, %64 : vector<256x128xf32>
    %c2_69 = arith.constant 2 : index
    %c1_70 = arith.constant 1 : index
    %c0_71 = arith.constant 0 : index
    %66 = vector.load %arg8[%c2_69, %c1_70, %c0_71] : memref<18x18x128xbf16, #tpu.memory_space<vmem>>, vector<16x16x128xbf16>
    %67 = vector.shape_cast %66 : vector<16x16x128xbf16> to vector<256x128xbf16>
    %c7 = arith.constant 7 : index
    %c0_72 = arith.constant 0 : index
    %c0_73 = arith.constant 0 : index
    %68 = vector.load %arg4[%c7, %c0_72, %c0_73] : memref<9x128x128xbf16, #tpu.memory_space<vmem>>, vector<1x128x128xbf16>
    %69 = vector.shape_cast %68 : vector<1x128x128xbf16> to vector<128x128xbf16>
    %cst_74 = arith.constant dense<0.000000e+00> : vector<256x128xf32>
    %70 = tpu.matmul %67, %69, %cst_74 {dimension_numbers = #tpu.dot_dimension_numbers<[1], [0], [0], [1], [0, 0, 1, 1], [], []>} : vector<256x128xbf16>, vector<128x128xbf16>, vector<256x128xf32> -> vector<256x128xf32>
    %71 = arith.addf %65, %70 : vector<256x128xf32>
    %c2_75 = arith.constant 2 : index
    %c2_76 = arith.constant 2 : index
    %c0_77 = arith.constant 0 : index
    %72 = vector.load %arg8[%c2_75, %c2_76, %c0_77] : memref<18x18x128xbf16, #tpu.memory_space<vmem>>, vector<16x16x128xbf16>
    %73 = vector.shape_cast %72 : vector<16x16x128xbf16> to vector<256x128xbf16>
    %c8 = arith.constant 8 : index
    %c0_78 = arith.constant 0 : index
    %c0_79 = arith.constant 0 : index
    %74 = vector.load %arg4[%c8, %c0_78, %c0_79] : memref<9x128x128xbf16, #tpu.memory_space<vmem>>, vector<1x128x128xbf16>
    %75 = vector.shape_cast %74 : vector<1x128x128xbf16> to vector<128x128xbf16>
    %cst_80 = arith.constant dense<0.000000e+00> : vector<256x128xf32>
    %76 = tpu.matmul %73, %75, %cst_80 {dimension_numbers = #tpu.dot_dimension_numbers<[1], [0], [0], [1], [0, 0, 1, 1], [], []>} : vector<256x128xbf16>, vector<128x128xbf16>, vector<256x128xf32> -> vector<256x128xf32>
    %77 = arith.addf %71, %76 : vector<256x128xf32>
    %78 = vector.shape_cast %77 : vector<256x128xf32> to vector<1x16x16x128xf32>
    %79 = arith.truncf %78 : vector<1x16x16x128xf32> to vector<1x16x16x128xbf16>
    %c0_81 = arith.constant 0 : index
    %c0_82 = arith.constant 0 : index
    %c0_83 = arith.constant 0 : index
    %c0_84 = arith.constant 0 : index
    %80 = vector.load %arg5[%c0_81, %c0_82, %c0_83, %c0_84] : memref<1x16x16x128xbf16, #tpu.memory_space<vmem>>, vector<1x16x16x128xbf16>
    tpu.vector_store %arg5[%c0_81, %c0_82, %c0_83, %c0_84], %79 {strides = array<i32>} : memref<1x16x16x128xbf16, #tpu.memory_space<vmem>>, vector<1x16x16x128xbf16>,
    %cst_85 = arith.constant dense<0.000000e+00> : vector<128xf32>
    %81 = vector.multi_reduction <add>, %77, %cst_85 [0] : vector<256x128xf32> to vector<128xf32>
    %82 = vector.shape_cast %81 : vector<128xf32> to vector<1x1x128xf32>
    %c0_86 = arith.constant 0 : index
    %c0_87 = arith.constant 0 : index
    %c0_88 = arith.constant 0 : index
    %83 = vector.load %arg6[%c0_86, %c0_87, %c0_88] : memref<1x1x128xf32, #tpu.memory_space<vmem>>, vector<1x1x128xf32>
    tpu.vector_store %arg6[%c0_86, %c0_87, %c0_88], %82 {strides = array<i32>} : memref<1x1x128xf32, #tpu.memory_space<vmem>>, vector<1x1x128xf32>,
    %84 = arith.mulf %77, %77 : vector<256x128xf32>
    %cst_89 = arith.constant dense<0.000000e+00> : vector<128xf32>
    %85 = vector.multi_reduction <add>, %84, %cst_89 [0] : vector<256x128xf32> to vector<128xf32>
    %86 = vector.shape_cast %85 : vector<128xf32> to vector<1x1x128xf32>
    %c0_90 = arith.constant 0 : index
    %c0_91 = arith.constant 0 : index
    %c0_92 = arith.constant 0 : index
    %87 = vector.load %arg7[%c0_90, %c0_91, %c0_92] : memref<1x1x128xf32, #tpu.memory_space<vmem>>, vector<1x1x128xf32>
    tpu.vector_store %arg7[%c0_90, %c0_91, %c0_92], %86 {strides = array<i32>} : memref<1x1x128xf32, #tpu.memory_space<vmem>>, vector<1x1x128xf32>,
    return
  }
  func.func @transform_0(%arg0: i32) -> (i32, i32) {
    %c0_i32 = arith.constant 0 : i32
    %c0_i32_0 = arith.constant 0 : i32
    %c0_i32_1 = arith.constant 0 : i32
    return %c0_i32, %c0_i32_0 : i32, i32
  }
  func.func @transform_1(%arg0: i32) -> (i32, i32) {
    %c0_i32 = arith.constant 0 : i32
    %c0_i32_0 = arith.constant 0 : i32
    %c0_i32_1 = arith.constant 0 : i32
    return %c0_i32, %c0_i32_0 : i32, i32
  }
  func.func @transform_2(%arg0: i32) -> (i32, i32, i32, i32) {
    %c0_i32 = arith.constant 0 : i32
    %c0_i32_0 = arith.constant 0 : i32
    %c0_i32_1 = arith.constant 0 : i32
    %c0_i32_2 = arith.constant 0 : i32
    return %arg0, %c0_i32, %c0_i32_0, %c0_i32_1 : i32, i32, i32, i32
  }
  func.func @transform_3(%arg0: i32) -> (i32, i32, i32) {
    %c0_i32 = arith.constant 0 : i32
    %c0_i32_0 = arith.constant 0 : i32
    %c0_i32_1 = arith.constant 0 : i32
    %c0_i32_2 = arith.constant 0 : i32
    return %c0_i32, %c0_i32_0, %c0_i32_1 : i32, i32, i32
  }
  func.func @transform_4(%arg0: i32) -> (i32, i32, i32, i32) {
    %c0_i32 = arith.constant 0 : i32
    %c0_i32_0 = arith.constant 0 : i32
    %c0_i32_1 = arith.constant 0 : i32
    %c0_i32_2 = arith.constant 0 : i32
    return %arg0, %c0_i32, %c0_i32_0, %c0_i32_1 : i32, i32, i32, i32
  }
  func.func @transform_5(%arg0: i32) -> (i32, i32, i32) {
    %c0_i32 = arith.constant 0 : i32
    %c0_i32_0 = arith.constant 0 : i32
    %c0_i32_1 = arith.constant 0 : i32
    return %arg0, %c0_i32, %c0_i32_0 : i32, i32, i32
  }
  func.func @transform_6(%arg0: i32) -> (i32, i32, i32) {
    %c0_i32 = arith.constant 0 : i32
    %c0_i32_0 = arith.constant 0 : i32
    %c0_i32_1 = arith.constant 0 : i32
    return %arg0, %c0_i32, %c0_i32_0 : i32, i32, i32
  }
}

</mosaic_0001>

<bundles_post_ra>
// kernel: double_convolution.2
= control target key start
LH: loop header
LB: loop body
LE: loop exit
PB: predicated region body
PF: predicated region fallthrough
CT: control target
= control target key end

     0   :  { %s1444_s15 = smov 0   ;;  %s1446_s16 = smov 0   ;;  %s1636_s0 = inlined_call_operand.vmem [shape: bf16[2,16,16,128], index: 0, kind: input, shape index: {}]   ;;  %s1637_s1 = inlined_call_operand.vmem [shape: bf16[128,128], index: 1, kind: input, shape index: {}]   ;;  %s1638_s2 = inlined_call_operand.vmem [shape: bf16[2,16,16,128], index: 2, kind: output, shape index: {0}]   ;;  %s1639_s3 = inlined_call_operand.vmem [shape: f32[2,1,1,128], index: 3, kind: output, shape index: {1}]   ;;  %s1640_s4 = inlined_call_operand.vmem [shape: f32[2,1,1,128], index: 4, kind: output, shape index: {2}]  }
   0x1   :  { %s1448_s17 = smov 0  }
   0x2 LB: > { %s27_s18 = sadd.s32 1, %s1413_s16  ;;  %p1067_p0 = scmp.ge.s32.totalorder %s1417_s17, 1  ;;  %s1417_s17 = sphi %s1448_s17, %s15_s17   ;;  %s1413_s16 = sphi %s1446_s16, %s1642_s16   ;;  %s1409_s15 = sphi %s1444_s15, %s1641_s15  }
   0x3   : > { %p29_p1 = scmp.ge.s32.totalorder %s27_s18, 2  ;;  %p193_p2 = scmp.lt.s32.totalorder %s1417_s17, 3 }
   0x5   : > { %s1644_s18 = smov (%p29_p1, %s27_s18), 0  ;;  %p194_p3 = pnand %p1067_p0, %p193_p2 }
   0x6   : > { %v1371_v0 = vld [vmem:[%s1637_s1] sm:$0xff] (!%p194_p3)   ;;  %p242_p4 = scmp.lt.s32.totalorder (!%p194_p3), %s1409_s15, 1  ;;  %v1372_v1 = vld [vmem:[%s1637_s1 + $0x8] sm:$0xff] (!%p194_p3)   ;;  %v1373_v2 = vld [vmem:[%s1637_s1 + $0x10] sm:$0xff] (!%p194_p3)  }
   0x7   : > { %197 = sbr.rel (%p194_p3) target bundleno = 331 (0x14b), region = 28  ;;  %1283 = vmatprep.subr.bf16.mxu0 (!%p194_p3), %v1371_v0  ;;  %1331 = vmatprep.subr.bf16.mxu1 (!%p194_p3), %v1371_v0  ;;  %v1374_v3 = vld [vmem:[%s1637_s1 + $0x18] sm:$0xff] (!%p194_p3)   ;;  %v1375_v5 = vld [vmem:[%s1637_s1 + $0x20] sm:$0xff] (!%p194_p3)   ;;  %v1376_v6 = vld [vmem:[%s1637_s1 + $0x28] sm:$0xff] (!%p194_p3)  }
   0x8   : > { %1284 = vmatpush3.bf16.msra.mxu0 (!%p194_p3), %v1371_v0  ;;  %1339 = vmatpush3.bf16.msra.mxu1 (!%p194_p3), %v1371_v0  ;;  %v1377_v8 = vld [vmem:[%s1637_s1 + $0x30] sm:$0xff] (!%p194_p3)   ;;  %v1378_v9 = vld [vmem:[%s1637_s1 + $0x38] sm:$0xff] (!%p194_p3)  }
   0x9   : > { %1285 = vmatprep.subr.bf16.mxu0 (!%p194_p3), %v1372_v1  ;;  %1332 = vmatprep.subr.bf16.mxu1 (!%p194_p3), %v1372_v1 }
   0xc   : > { %1286 = vmatpush3.bf16.msra.mxu0 (!%p194_p3), %v1372_v1  ;;  %1340 = vmatpush3.bf16.msra.mxu1 (!%p194_p3), %v1372_v1 }
   0xd   : > { %1287 = vmatprep.subr.bf16.mxu0 (!%p194_p3), %v1373_v2  ;;  %1333 = vmatprep.subr.bf16.mxu1 (!%p194_p3), %v1373_v2 }
   0xe   : > { %s1646_s15 = smov (!%p242_p4, %s1409_s15), 1 }
   0xf   : > { %s1130_s25 = sshll.u32 %s1646_s15, 7  ;;  %s268_s22 = scalar_lea.vmem %s1639_s3, %s1646_s15 }
  0x10   : > { %s1479_s28 = scalar_lea.vmem %s1636_s0, %s1130_s25  ;;  %1288 = vmatpush3.bf16.msra.mxu0 %v1373_v2  ;;  %1341 = vmatpush3.bf16.msra.mxu1 %v1373_v2  ;;  %s1521_s19 = scalar_lea.vmem %s1638_s2, %s1130_s25 }
  0x11   : > { %v1379_v4 = vld [vmem:[%s1479_s28] sm:$0xff]   ;;  %1289 = vmatprep.subr.bf16.mxu0 %v1374_v3  ;;  %1334 = vmatprep.subr.bf16.mxu1 %v1374_v3  ;;  %v1380_v10 = vld [vmem:[%s1479_s28 + $0x8] sm:$0xff]   ;;  %v1381_v12 = vld [vmem:[%s1479_s28 + $0x10] sm:$0xff]   ;;  %s274_s25 = scalar_lea.vmem %s1640_s4, %s1646_s15 }
  0x12   : > { %1299 = vmatprep.mubr.bf16.mxu0 %v1379_v4  ;;  %v1387_v7 = vld [vmem:[%s1479_s28 + $0x40] sm:$0xff]   ;;  %v1388_v11 = vld [vmem:[%s1479_s28 + $0x48] sm:$0xff]   ;;  %v1389_v13 = vld [vmem:[%s1479_s28 + $0x50] sm:$0xff]  }
  0x13   : > { %1315 = vmatprep.mubr.bf16.mxu1 %v1387_v7  ;;  %v1382_v14 = vld [vmem:[%s1479_s28 + $0x18] sm:$0xff]   ;;  %v1383_v16 = vld [vmem:[%s1479_s28 + $0x20] sm:$0xff]   ;;  %v1384_v18 = vld [vmem:[%s1479_s28 + $0x28] sm:$0xff]  }
  0x14   : > { %1290 = vmatpush3.bf16.msra.mxu0 %v1374_v3  ;;  %1342 = vmatpush3.bf16.msra.mxu1 %v1374_v3  ;;  %v1390_v15 = vld [vmem:[%s1479_s28 + $0x58] sm:$0xff]   ;;  %v1391_v17 = vld [vmem:[%s1479_s28 + $0x60] sm:$0xff]   ;;  %v1392_v19 = vld [vmem:[%s1479_s28 + $0x68] sm:$0xff]  }
  0x15   : > { %1291 = vmatprep.subr.bf16.mxu0 %v1375_v5  ;;  %1335 = vmatprep.subr.bf16.mxu1 %v1375_v5  ;;  %v1385_v20 = vld [vmem:[%s1479_s28 + $0x30] sm:$0xff]   ;;  %v1386_v22 = vld [vmem:[%s1479_s28 + $0x38] sm:$0xff]  }
  0x16   : > { %v1393_v21 = vld [vmem:[%s1479_s28 + $0x70] sm:$0xff]   ;;  %v1394_v23 = vld [vmem:[%s1479_s28 + $0x78] sm:$0xff]  }
  0x18   : > { %1292 = vmatpush3.bf16.msra.mxu0 %v1375_v5  ;;  %1343 = vmatpush3.bf16.msra.mxu1 %v1375_v5 }
  0x19   : > { %1293 = vmatprep.subr.bf16.mxu0 %v1376_v6  ;;  %1336 = vmatprep.subr.bf16.mxu1 %v1376_v6 }
  0x1c   : > { %1294 = vmatpush3.bf16.msra.mxu0 %v1376_v6  ;;  %1344 = vmatpush3.bf16.msra.mxu1 %v1376_v6 }
  0x1d   : > { %1295 = vmatprep.subr.bf16.mxu0 %v1377_v8  ;;  %1337 = vmatprep.subr.bf16.mxu1 %v1377_v8 }
  0x20   : > { %1296 = vmatpush3.bf16.msra.mxu0 %v1377_v8  ;;  %1345 = vmatpush3.bf16.msra.mxu1 %v1377_v8 }
  0x21   : > { %1297 = vmatprep.subr.bf16.mxu0 %v1378_v9  ;;  %1338 = vmatprep.subr.bf16.mxu1 %v1378_v9 }
  0x24   : > { %1298 = vmatpush3.bf16.msra.mxu0 %v1378_v9  ;;  %1346 = vmatpush3.bf16.msra.mxu1 %v1378_v9 }
  0x27   : > { %1300 = vmatmul.mubr.bf16.vlgmr.msra.gmra.mrb[0].mxu0 %v1380_v10  ;;  %1316 = vmatmul.mubr.bf16.vlgmr.msra.gmra.mrb[0].mxu1 %v1388_v11 }
  0x28   : > { %1303 = vmatprep.mubr.bf16.mxu0 %v1381_v12  ;;  %1319 = vmatprep.mubr.bf16.mxu1 %v1389_v13 }
  0x2f   : > { %1304 = vmatmul.mubr.bf16.gmra.mrb[4].mxu0 %v1382_v14  ;;  %1320 = vmatmul.mubr.bf16.gmra.mrb[4].mxu1 %v1390_v15 }
  0x30   : > { %1307 = vmatprep.mubr.bf16.mxu0 %v1383_v16  ;;  %1323 = vmatprep.mubr.bf16.mxu1 %v1391_v17 }
  0x37   : > { %1308 = vmatmul.mubr.bf16.gmra.mrb[8].mxu0 %v1384_v18  ;;  %1324 = vmatmul.mubr.bf16.gmra.mrb[8].mxu1 %v1392_v19 }
  0x38   : > { %1311 = vmatprep.mubr.bf16.mxu0 %v1385_v20  ;;  %1327 = vmatprep.mubr.bf16.mxu1 %v1393_v21 }
  0x3f   : > { %1312 = vmatmul.mubr.bf16.gmra.mrb[12].mxu0 %v1386_v22  ;;  %1328 = vmatmul.mubr.bf16.gmra.mrb[12].mxu1 %v1394_v23 }
  0xfa   : > { %v1301_v24 = vpop.f32.mrb[0].mxu0  ;;  %v1512_v25 = vpop.f32.mrb[0].mxu1 }
  0xfb   : > { %v502_v26 = vpop.f32.mrb[1].mxu0  ;;  %v1514_v27 = vpop.f32.mrb[1].mxu1  ;;  %v829_v39 = vmul.f32 %v1301_v24, %v1301_v24 }
  0xfc   : > { %v1302_v28 = vpop.f32.mrb[2].mxu0  ;;  %v1523_v29 = vpop.f32.mrb[2].mxu1  ;;  %v827_v30 = vmul.f32 %v502_v26, %v502_v26 }
  0xfd   : > { %v1172_v31 = vpack.c.bf16 %v1302_v28, %v1301_v24  ;;  %v505_v32 = vpop.f32.mrb[3].mxu0  ;;  %v1212_v33 = vpack.c.bf16 %v1523_v29, %v1512_v25  ;;  %v1527_v34 = vpop.f32.mrb[3].mxu1  ;;  %v830_v42 = vmul.f32 %v1302_v28, %v1302_v28 }
  0xfe   : > { %v1167_v35 = vpack.c.bf16 %v505_v32, %v502_v26  ;;  %v789_v36 = vadd.f32 %v505_v32, %v502_v26  ;;  %v828_v37 = vmul.f32 %v505_v32, %v505_v32  ;;  %v1207_v38 = vpack.c.bf16 %v1527_v34, %v1514_v27 }
  0xff   : > { %1244 = vst [vmem:[%s1521_s19 + $0x8] sm:$0xff] %v1172_v31   ;;  %1252 = vst [vmem:[%s1521_s19 + $0x48] sm:$0xff] %v1212_v33  }
 0x100   : > { %1168 = vst [vmem:[%s1521_s19] sm:$0xff] %v1167_v35   ;;  %v790_v40 = vadd.f32 %v1301_v24, %v789_v36  ;;  %v859_v41 = vadd.f32 %v828_v37, %v827_v30  ;;  %1251 = vst [vmem:[%s1521_s19 + $0x40] sm:$0xff] %v1207_v38  }
 0x102   : > { %v860_v43 = vadd.f32 %v859_v41, %v829_v39  ;;  %v1305_v44 = vpop.f32.mrb[4].mxu0  ;;  %v791_v45 = vadd.f32 %v1302_v28, %v790_v40  ;;  %v1535_v46 = vpop.f32.mrb[4].mxu1 }
 0x103   : > { %v518_v47 = vpop.f32.mrb[5].mxu0  ;;  %v1537_v48 = vpop.f32.mrb[5].mxu1  ;;  %v833_v63 = vmul.f32 %v1305_v44, %v1305_v44 }
 0x104   : > { %v792_v49 = vadd.f32 %v791_v45, %v518_v47  ;;  %v831_v50 = vmul.f32 %v518_v47, %v518_v47  ;;  %v861_v51 = vadd.f32 %v860_v43, %v830_v42  ;;  %v1306_v52 = vpop.f32.mrb[6].mxu0  ;;  %v1539_v53 = vpop.f32.mrb[6].mxu1 }
 0x105   : > { %v1182_v54 = vpack.c.bf16 %v1306_v52, %v1305_v44  ;;  %v521_v55 = vpop.f32.mrb[7].mxu0  ;;  %v1222_v56 = vpack.c.bf16 %v1539_v53, %v1535_v46  ;;  %v1543_v57 = vpop.f32.mrb[7].mxu1  ;;  %v834_v2 = vmul.f32 %v1306_v52, %v1306_v52 }
 0x106   : > { %v862_v58 = vadd.f32 %v861_v51, %v831_v50  ;;  %v1177_v59 = vpack.c.bf16 %v521_v55, %v518_v47  ;;  %v793_v60 = vadd.f32 %v792_v49, %v521_v55  ;;  %v832_v61 = vmul.f32 %v521_v55, %v521_v55 }
 0x107   : > { %1246 = vst [vmem:[%s1521_s19 + $0x18] sm:$0xff] %v1182_v54   ;;  %1254 = vst [vmem:[%s1521_s19 + $0x58] sm:$0xff] %v1222_v56   ;;  %v1217_v62 = vpack.c.bf16 %v1543_v57, %v1537_v48 }
 0x108   : > { %1245 = vst [vmem:[%s1521_s19 + $0x10] sm:$0xff] %v1177_v59   ;;  %v794_v0 = vadd.f32 %v1305_v44, %v793_v60  ;;  %v863_v1 = vadd.f32 %v862_v58, %v832_v61  ;;  %v843_v61 = vmul.f32 %v1514_v27, %v1514_v27 }
 0x109   : > { %1253 = vst [vmem:[%s1521_s19 + $0x50] sm:$0xff] %v1217_v62  }
 0x10a   : > { %v864_v3 = vadd.f32 %v863_v1, %v833_v63  ;;  %v1309_v4 = vpop.f32.mrb[8].mxu0  ;;  %v795_v5 = vadd.f32 %v1306_v52, %v794_v0  ;;  %v1551_v6 = vpop.f32.mrb[8].mxu1 }
 0x10b   : > { %v534_v7 = vpop.f32.mrb[9].mxu0  ;;  %v1553_v8 = vpop.f32.mrb[9].mxu1  ;;  %v837_v23 = vmul.f32 %v1309_v4, %v1309_v4 }
 0x10c   : > { %v796_v9 = vadd.f32 %v795_v5, %v534_v7  ;;  %v835_v10 = vmul.f32 %v534_v7, %v534_v7  ;;  %v865_v11 = vadd.f32 %v864_v3, %v834_v2  ;;  %v1310_v12 = vpop.f32.mrb[10].mxu0  ;;  %v1555_v13 = vpop.f32.mrb[10].mxu1  ;;  %v844_v2 = vmul.f32 %v1527_v34, %v1527_v34 }
 0x10d   : > { %v1192_v14 = vpack.c.bf16 %v1310_v12, %v1309_v4  ;;  %v537_v15 = vpop.f32.mrb[11].mxu0  ;;  %v1232_v16 = vpack.c.bf16 %v1555_v13, %v1551_v6  ;;  %v1559_v17 = vpop.f32.mrb[11].mxu1  ;;  %v838_v28 = vmul.f32 %v1310_v12, %v1310_v12  ;;  %v845_v3 = vmul.f32 %v1512_v25, %v1512_v25 }
 0x10e   : > { %v866_v18 = vadd.f32 %v865_v11, %v835_v10  ;;  %v1187_v19 = vpack.c.bf16 %v537_v15, %v534_v7  ;;  %v797_v20 = vadd.f32 %v796_v9, %v537_v15  ;;  %v836_v21 = vmul.f32 %v537_v15, %v537_v15 }
 0x10f   : > { %1248 = vst [vmem:[%s1521_s19 + $0x28] sm:$0xff] %v1192_v14   ;;  %1256 = vst [vmem:[%s1521_s19 + $0x68] sm:$0xff] %v1232_v16   ;;  %v1227_v22 = vpack.c.bf16 %v1559_v17, %v1553_v8  ;;  %v846_v7 = vmul.f32 %v1523_v29, %v1523_v29  ;;  %v848_v15 = vmul.f32 %v1543_v57, %v1543_v57 }
 0x110   : > { %1247 = vst [vmem:[%s1521_s19 + $0x20] sm:$0xff] %v1187_v19   ;;  %v798_v24 = vadd.f32 %v1309_v4, %v797_v20  ;;  %v867_v26 = vadd.f32 %v866_v18, %v836_v21 }
 0x111   : > { %1255 = vst [vmem:[%s1521_s19 + $0x60] sm:$0xff] %v1227_v22  }
 0x112   : > { %v868_v30 = vadd.f32 %v867_v26, %v837_v23  ;;  %v1313_v31 = vpop.f32.mrb[12].mxu0  ;;  %v799_v32 = vadd.f32 %v1310_v12, %v798_v24  ;;  %v1567_v33 = vpop.f32.mrb[12].mxu1  ;;  %v852_v24 = vmul.f32 %v1559_v17, %v1559_v17 }
 0x113   : > { %v550_v35 = vpop.f32.mrb[13].mxu0  ;;  %v614_v36 = vpop.f32.mrb[13].mxu1  ;;  %v841_v54 = vmul.f32 %v1313_v31, %v1313_v31 }
 0x114   : > { %v800_v37 = vadd.f32 %v799_v32, %v550_v35  ;;  %v839_v38 = vmul.f32 %v550_v35, %v550_v35  ;;  %v869_v39 = vadd.f32 %v868_v30, %v838_v28  ;;  %v1314_v40 = vpop.f32.mrb[14].mxu0  ;;  %v1569_v41 = vpop.f32.mrb[14].mxu1 }
 0x115   : > { %v1202_v42 = vpack.c.bf16 %v1314_v40, %v1313_v31  ;;  %v553_v43 = vpop.f32.mrb[15].mxu0  ;;  %v1242_v44 = vpack.c.bf16 %v1569_v41, %v1567_v33  ;;  %v617_v45 = vpop.f32.mrb[15].mxu1  ;;  %v842_v58 = vmul.f32 %v1314_v40, %v1314_v40 }
 0x116   : > { %v870_v47 = vadd.f32 %v869_v39, %v839_v38  ;;  %v1197_v49 = vpack.c.bf16 %v553_v43, %v550_v35  ;;  %v801_v50 = vadd.f32 %v800_v37, %v553_v43  ;;  %v840_v51 = vmul.f32 %v553_v43, %v553_v43 }
 0x117   : > { %1250 = vst [vmem:[%s1521_s19 + $0x38] sm:$0xff] %v1202_v42   ;;  %1258 = vst [vmem:[%s1521_s19 + $0x78] sm:$0xff] %v1242_v44   ;;  %v1237_v52 = vpack.c.bf16 %v617_v45, %v614_v36  ;;  %v856_v39 = vmul.f32 %v617_v45, %v617_v45  ;;  %v858_v42 = vmul.f32 %v1569_v41, %v1569_v41 }
 0x118   : > { %1249 = vst [vmem:[%s1521_s19 + $0x30] sm:$0xff] %v1197_v49   ;;  %v802_v55 = vadd.f32 %v1313_v31, %v801_v50  ;;  %v871_v56 = vadd.f32 %v870_v47, %v840_v51 }
 0x119   : > { %1257 = vst [vmem:[%s1521_s19 + $0x70] sm:$0xff] %v1237_v52  }
 0x11a   : > { %v872_v59 = vadd.f32 %v871_v56, %v841_v54  ;;  %v803_v60 = vadd.f32 %v1314_v40, %v802_v55 }
 0x11c   : > { %v804_v62 = vadd.f32 %v803_v60, %v1514_v27  ;;  %v873_v63 = vadd.f32 %v872_v59, %v842_v58  ;;  %v847_v27 = vmul.f32 %v1537_v48, %v1537_v48 }
 0x11e   : > { %v874_v0 = vadd.f32 %v873_v63, %v843_v61  ;;  %v805_v1 = vadd.f32 %v804_v62, %v1527_v34 }
 0x120   : > { %v806_v4 = vadd.f32 %v1512_v25, %v805_v1  ;;  %v875_v5 = vadd.f32 %v874_v0, %v844_v2  ;;  %v849_v25 = vmul.f32 %v1535_v46, %v1535_v46 }
 0x122   : > { %v876_v9 = vadd.f32 %v875_v5, %v845_v3  ;;  %v807_v10 = vadd.f32 %v1523_v29, %v806_v4  ;;  %v850_v29 = vmul.f32 %v1539_v53, %v1539_v53 }
 0x124   : > { %v808_v11 = vadd.f32 %v807_v10, %v1537_v48  ;;  %v877_v12 = vadd.f32 %v876_v9, %v846_v7  ;;  %v851_v48 = vmul.f32 %v1553_v8, %v1553_v8 }
 0x126   : > { %v878_v14 = vadd.f32 %v877_v12, %v847_v27  ;;  %v809_v34 = vadd.f32 %v808_v11, %v1543_v57 }
 0x128   : > { %v810_v16 = vadd.f32 %v1535_v46, %v809_v34  ;;  %v879_v18 = vadd.f32 %v878_v14, %v848_v15  ;;  %v853_v46 = vmul.f32 %v1551_v6, %v1551_v6 }
 0x12a   : > { %v880_v19 = vadd.f32 %v879_v18, %v849_v25  ;;  %v811_v20 = vadd.f32 %v1539_v53, %v810_v16  ;;  %v854_v53 = vmul.f32 %v1555_v13, %v1555_v13 }
 0x12c   : > { %v812_v21 = vadd.f32 %v811_v20, %v1553_v8  ;;  %v881_v22 = vadd.f32 %v880_v19, %v850_v29  ;;  %v855_v8 = vmul.f32 %v614_v36, %v614_v36 }
 0x12e   : > { %v882_v23 = vadd.f32 %v881_v22, %v851_v48  ;;  %v813_v57 = vadd.f32 %v812_v21, %v1559_v17  ;;  %v857_v17 = vmul.f32 %v1567_v33, %v1567_v33 }
 0x130   : > { %v814_v26 = vadd.f32 %v1551_v6, %v813_v57  ;;  %v883_v28 = vadd.f32 %v882_v23, %v852_v24 }
 0x132   : > { %v884_v30 = vadd.f32 %v883_v28, %v853_v46  ;;  %v815_v31 = vadd.f32 %v1555_v13, %v814_v26 }
 0x134   : > { %v816_v32 = vadd.f32 %v815_v31, %v614_v36  ;;  %v885_v35 = vadd.f32 %v884_v30, %v854_v53 }
 0x136   : > { %v886_v37 = vadd.f32 %v885_v35, %v855_v8  ;;  %v817_v38 = vadd.f32 %v816_v32, %v617_v45 }
 0x138   : > { %v818_v40 = vadd.f32 %v1567_v33, %v817_v38  ;;  %v887_v6 = vadd.f32 %v886_v37, %v856_v39 }
 0x13a   : > { %v819_v43 = vadd.f32 %v1569_v41, %v818_v40  ;;  %v888_v13 = vadd.f32 %v887_v6, %v857_v17 }
 0x13c   : > { %v820_v44 = vrot.slane %v819_v43, 4  ;;  %v889_v36 = vadd.f32 %v888_v13, %v858_v42 }
 0x13e   : > { %v821_v47 = vadd.f32 %v820_v44, %v819_v43  ;;  %v890_v49 = vrot.slane %v889_v36, 4 }
 0x140   : > { %v822_v50 = vrot.slane %v821_v47, 2  ;;  %v891_v45 = vadd.f32 %v890_v49, %v889_v36 }
 0x142   : > { %v823_v51 = vadd.f32 %v822_v50, %v821_v47  ;;  %v892_v52 = vrot.slane %v891_v45, 2 }
 0x144   : > { %v824_v54 = vrot.slane %v823_v51, 1  ;;  %v893_v55 = vadd.f32 %v892_v52, %v891_v45 }
 0x146   : > { %v825_v33 = vadd.f32 %v824_v54, %v823_v51  ;;  %v894_v56 = vrot.slane %v893_v55, 1 }
 0x148   : > { %826 = vst [vmem:[%s268_s22] sm:$0x1] %v825_v33  ;;  %v895_v41 = vadd.f32 %v894_v56, %v893_v55 }
 0x14a   : > { %896 = vst [vmem:[%s274_s25] sm:$0x1] %v895_v41 }
 0x14b PF: > { %s15_s17 = sadd.s32 1, %s1417_s17   ;;  %s1641_s15 = smov %s1413_s16 }
 0x14c   : > { %p12_p5 = scmp.ge.s32.totalorder %s15_s17, 4   ;;  %s1642_s16 = smov %s1644_s18 }
 0x14e   :  { %14 = sbr.rel (!%p12_p5) target bundleno = 2 (0x2), region = 82 }

// kernel: double_convolution.3
= control target key start
LH: loop header
LB: loop body
LE: loop exit
PB: predicated region body
PF: predicated region fallthrough
CT: control target
= control target key end

     0   :  { %s8165_s21 = smov 0   ;;  %s10082_s0 = inlined_call_operand.vmem [shape: f32[1,128], index: 0, kind: input, shape index: {}]   ;;  %s10083_s1 = inlined_call_operand.vmem [shape: f32[1,128], index: 1, kind: input, shape index: {}]   ;;  %s10084_s2 = inlined_call_operand.vmem [shape: bf16[2,16,16,128], index: 2, kind: input, shape index: {}]   ;;  %s10085_s3 = inlined_call_operand.vmem [shape: bf16[9,128,128], index: 3, kind: input, shape index: {}]   ;;  %s10086_s4 = inlined_call_operand.vmem [shape: bf16[2,16,16,128], index: 4, kind: output, shape index: {0}]   ;;  %s10087_s5 = inlined_call_operand.vmem [shape: f32[2,1,128], index: 5, kind: output, shape index: {1}]   ;;  %s10088_s6 = inlined_call_operand.vmem [shape: f32[2,1,128], index: 6, kind: output, shape index: {2}]  }
   0x1 LB: > { %s6278_s22 = sadd.s32 4294967295, %s8127_s21   ;;  %p6282_p0 = scmp.ge.s32.totalorder %s8127_s21, 1  ;;  %s8127_s21 = sphi %s8165_s21, %s17_s21  }
   0x2   : > { %p217_p1 = scmp.lt.s32.totalorder %s8127_s21, 3 }
   0x4   : > { %p218_p2 = pnand %p6282_p0, %p217_p1 }
   0x6   : > { %221 = sbr.rel (%p218_p2) target bundleno = 718 (0x2ce), region = 36 }
   0xd   : > { %v7916_v0 = vld [vmem:[%s10085_s3 + $0x40] sm:$0xff]   ;;  %v8129_v2 = vmov 0   ;;  %v7918_v3 = vld [vmem:[%s10085_s3 + $0x48] sm:$0xff]   ;;  %v7920_v5 = vld [vmem:[%s10085_s3 + $0x50] sm:$0xff]   ;;  %p253_p3 = scmp.lt.s32.totalorder %s6278_s22, 1  ;;  %vm277_vm0 = vcmask 1040384  }
   0xe   : > { %v7917_v1 = vld [vmem:[%s10085_s3 + $0x100] sm:$0xff]   ;;  %270 = vst [vmem:[#allocation2] sm:$0xf] %v8129_v2  ;;  %271 = vst [vmem:[#allocation2 + $0x4] sm:$0xf] %v8129_v2  ;;  %7203 = vmatprep.subr.bf16.mxu1 %v7916_v0  ;;  %v7919_v4 = vld [vmem:[%s10085_s3 + $0x108] sm:$0xff]  }
   0xf   : > { %272 = vst [vmem:[#allocation2 + $0x8] sm:$0x1] %v8129_v2  ;;  %274 = vst [vmem:[#allocation2 + $0xcc] sm:$0xf] %v8129_v2  ;;  %7395 = vmatprep.subr.bf16.mxu0 %v7917_v1  ;;  %7204 = vmatpush3.bf16.msra.mxu1 %v7916_v0  ;;  %v7921_v6 = vld [vmem:[%s10085_s3 + $0x110] sm:$0xff]   ;;  %v7922_v7 = vld [vmem:[%s10085_s3 + $0x58] sm:$0xff]  }
  0x10   : > { %275 = vst [vmem:[#allocation2 + $0xd0] sm:$0xf] %v8129_v2  ;;  %276 = vst [vmem:[#allocation2 + $0xd4] sm:$0x1] %v8129_v2  ;;  %7396 = vmatpush3.bf16.msra.mxu0 %v7917_v1  ;;  %7205 = vmatprep.subr.bf16.mxu1 %v7918_v3  ;;  %s10165_s22 = smov (!%p253_p3, %s6278_s22), 1  ;;  %v7923_v8 = vld [vmem:[%s10085_s3 + $0x118] sm:$0xff]  }
  0x11   : > { %7397 = vmatprep.subr.bf16.mxu0 %v7919_v4  ;;  %v7924_v9 = vld [vmem:[%s10085_s3 + $0x60] sm:$0xff]   ;;  %s6747_s17 = sshll.u32 %s10165_s22, 7  ;;  %v7926_v11 = vld [vmem:[%s10085_s3 + $0x68] sm:$0xff]   ;;  %vm278_vm1 = vsmask.f32 256  ;;  %v7928_v22 = vld [vmem:[%s10085_s3 + $0x70] sm:$0xff]   ;;  %s265_s15 = scalar_lea.vmem %s10087_s5, %s10165_s22 }
  0x12   : > { %v7925_v10 = vld [vmem:[%s10085_s3 + $0x120] sm:$0xff]   ;;  %v7927_v12 = vld [vmem:[%s10085_s3 + $0x128] sm:$0xff]   ;;  %s8217_s28 = scalar_lea.vmem %s10084_s2, %s6747_s17  ;;  %vm334_vm2 = vsmask.f32 7938  ;;  %vm8220_vm3 = vmand %vm277_vm0, %vm278_vm1  ;;  %vm1161_vm5 = vsmask.f32 3328  ;;  %s10049_s13 = scalar_lea.vmem %s10086_s4, %s6747_s17 }
  0x13   : > { %7206 = vmatpush3.bf16.msra.mxu1 %v7918_v3  ;;  %vm8227_vm4 = vmand %vm277_vm0, %vm334_vm2  ;;  %v6814_v21 = vld [vmem:[%s8217_s28] sm:$0xff]   ;;  %v283_v24 = vld [vmem:[#allocation2 + $0xc] sm:$0x1]  ;;  %vm1162_vm6 = vsmask.f32 7440  ;;  %vm983_vm7 = vcmask 1043456   ;;  %s268_s18 = scalar_lea.vmem %s10088_s6, %s10165_s22 }
  0x14   : > { %7398 = vmatpush3.bf16.msra.mxu0 %v7919_v4  ;;  %7207 = vmatprep.subr.bf16.mxu1 %v7920_v5  ;;  %v339_v25 = vld [vmem:[#allocation2 + $0x14] sm:$0x1]  ;;  %v6815_v26 = vunpack.c.l.bf16 %v6814_v21  ;;  %v6816_v27 = vunpack.c.h.bf16 %v6814_v21  ;;  %v284_v30 = vsel %vm8220_vm3, 0, %v283_v24  ;;  %v8246_v32 = vld [vmem:[%s10082_s0] ss:$0 sm:$0xff]  ;;  %v7930_v37 = vld [vmem:[%s10085_s3 + $0x78] sm:$0xff]  }
  0x15   : > { %7399 = vmatprep.subr.bf16.mxu0 %v7921_v6  ;;  %v280_v13 = vld [vmem:[#allocation2] sm:$0x1]  ;;  %v1098_v16 = vld [vmem:[#allocation2 + $0x4] sm:$0xf]  ;;  %v340_v31 = vsel %vm8227_vm4, 0, %v339_v25  ;;  %v7929_v33 = vld [vmem:[%s10085_s3 + $0x130] sm:$0xff]  }
  0x16   : > { %v336_v15 = vld [vmem:[#allocation2 + $0x8] sm:$0x1]  ;;  %v281_v17 = vsel %vm8220_vm3, 0, %v280_v13  ;;  %v1174_v19 = vshll.u32 %v1098_v16, 16  ;;  %v1178_v20 = vshrl.u32 %v1098_v16, 16  ;;  %v462_v35 = vmul.f32 %v6815_v26, %v8246_v32  ;;  %v7931_v38 = vld [vmem:[%s10085_s3 + $0x138] sm:$0xff]   ;;  %vm8286_vm9 = vmor %vm1161_vm5, %vm1162_vm6 }
  0x17   : > { %7208 = vmatpush3.bf16.msra.mxu1 %v7920_v5  ;;  %282 = vst [vmem:[#allocation2] sm:$0x1] %v281_v17  ;;  %v337_v23 = vsel %vm8227_vm4, 0, %v336_v15  ;;  %285 = vst [vmem:[#allocation2 + $0xc] sm:$0x1] %v284_v30  ;;  %v463_v36 = vmul.f32 %v6816_v27, %v8246_v32  ;;  %v6957_v44 = vld [vmem:[%s8217_s28 + $0x8] sm:$0xff]  }
  0x18   : > { %7400 = vmatpush3.bf16.msra.mxu0 %v7921_v6  ;;  %7209 = vmatprep.subr.bf16.mxu1 %v7922_v7  ;;  %338 = vst [vmem:[#allocation2 + $0x8] sm:$0x1] %v337_v23  ;;  %v8237_v28 = vrot.slane %v1174_v19, 5  ;;  %v1180_v29 = vrot.slane %v1178_v20, 4  ;;  %341 = vst [vmem:[#allocation2 + $0x14] sm:$0x1] %v340_v31  ;;  %v6819_v50 = vunpack.c.l.bf16 %v6957_v44  ;;  %v6820_v51 = vunpack.c.h.bf16 %v6957_v44 }
  0x19   : > { %7401 = vmatprep.subr.bf16.mxu0 %v7923_v8  ;;  %v8254_v34 = vld [vmem:[%s10083_s1] ss:$0 sm:$0xff]  ;;  %v286_v42 = vld [vmem:[#allocation2 + $0x18] sm:$0x1]  ;;  %vm660_vm8 = vsmask.f32 4368  ;;  %vm8299_vm10 = vmand %vm983_vm7, %vm334_vm2 }
  0x1a   : > { %v500_v39 = vadd.f32 %v8254_v34, %v462_v35  ;;  %v501_v40 = vadd.f32 %v8254_v34, %v463_v36  ;;  %v1181_v41 = vor.u32 %v1180_v29, %v8237_v28  ;;  %v342_v43 = vld [vmem:[#allocation2 + $0x20] sm:$0x1]  ;;  %v287_v47 = vsel %vm8220_vm3, 0, %v286_v42  ;;  %v289_v63 = vld [vmem:[#allocation2 + $0x24] sm:$0x1]  ;;  %v6958_v16 = vld [vmem:[%s8217_s28 + $0x10] sm:$0xff]  }
  0x1b   : > { %7210 = vmatpush3.bf16.msra.mxu1 %v7922_v7  ;;  %v343_v48 = vsel %vm8227_vm4, 0, %v342_v43  ;;  %288 = vst [vmem:[#allocation2 + $0x18] sm:$0x1] %v287_v47  ;;  %v8275_v59 = vld [vmem:[%s10085_s3] sm:$0xff]   ;;  %v464_v61 = vmul.f32 %v6819_v50, %v8246_v32  ;;  %v465_v62 = vmul.f32 %v6820_v51, %v8246_v32  ;;  %v345_v5 = vld [vmem:[#allocation2 + $0x2c] sm:$0x1]  ;;  %vm8308_vm11 = vmor %vm278_vm1, %vm660_vm8  ;;  %v6823_v35 = vunpack.c.l.bf16 %v6958_v16 }
  0x1c   : > { %7402 = vmatpush3.bf16.msra.mxu0 %v7923_v8  ;;  %7211 = vmatprep.subr.bf16.mxu1 %v7924_v9  ;;  %v532_v45 = vmax.f32 %v500_v39, 0.0  ;;  %v533_v46 = vmax.f32 %v501_v40, 0.0  ;;  %344 = vst [vmem:[#allocation2 + $0x20] sm:$0x1] %v343_v48  ;;  %v1182_v57 = vrot.slane %v1181_v41, 4  ;;  %v8280_v60 = vld [vmem:[%s10085_s3 + $0x140] sm:$0xff]   ;;  %v6824_v39 = vunpack.c.h.bf16 %v6958_v16 }
  0x1d   : > { %7403 = vmatprep.subr.bf16.mxu0 %v7925_v10  ;;  %v503_v13 = vadd.f32 %v8254_v34, %v465_v62  ;;  %v290_v15 = vsel %vm8220_vm3, 0, %v289_v63  ;;  %v292_v40 = vld [vmem:[#allocation2 + $0x30] sm:$0x1]  ;;  %v348_v41 = vld [vmem:[#allocation2 + $0x38] sm:$0x1]  ;;  %v466_v50 = vmul.f32 %v6823_v35, %v8246_v32  ;;  %vm2191_vm12 = vcmask 1042432  }
  0x1e   : > { %v1097_v49 = vld [vmem:[#allocation2] sm:$0xf]  ;;  %v6749_v55 = vpack.c.bf16 %v532_v45, %v532_v45  ;;  %v6750_v56 = vpack.c.bf16 %v533_v46, %v533_v46  ;;  %291 = vst [vmem:[#allocation2 + $0x24] sm:$0x1] %v290_v15  ;;  %v6959_v46 = vld [vmem:[%s8217_s28 + $0x18] sm:$0xff]   ;;  %vm2192_vm13 = vcmask 1046532  }
  0x1f   : > { %7212 = vmatpush3.bf16.msra.mxu1 %v7924_v9  ;;  %v1145_v52 = vld [vmem:[#allocation2 + $0x8] sm:$0x1]  ;;  %v1165_v53 = vshrl.u32 %v1097_v49, 16  ;;  %v1168_v54 = vshll.u32 %v1097_v49, 16  ;;  %v985_v9 = vld [vmem:[#allocation2 + $0xc] sm:$0xf]  ;;  %vm8619_vm14 = vmor %vm2191_vm12, %vm2192_vm13 }
  0x20   : > { %7404 = vmatpush3.bf16.msra.mxu0 %v7925_v10  ;;  %7213 = vmatprep.subr.bf16.mxu1 %v7926_v11  ;;  %v1184_v58 = vshll.u32 %v1145_v52, 16  ;;  %v663_v3 = vshrl.u32 %v6749_v55, 16  ;;  %v666_v4 = vshll.u32 %v6749_v55, 16  ;;  %v671_v7 = vshrl.u32 %v6750_v56, 16  ;;  %v989_v27 = vld [vmem:[#allocation2 + $0x14] sm:$0x1] }
  0x21   : > { %7405 = vmatprep.subr.bf16.mxu0 %v7927_v12  ;;  %v1167_v1 = vrot.slane %v1165_v53, 4  ;;  %v1170_v2 = vrot.slane %v1168_v54, 5  ;;  %v674_v8 = vshll.u32 %v6750_v56, 16  ;;  %v502_v10 = vadd.f32 %v8254_v34, %v464_v61  ;;  %v295_v51 = vld [vmem:[#allocation2 + $0x3c] sm:$0x1] }
  0x22   : > { %v1186_v6 = vrot.slane %v1184_v58, 5  ;;  %v673_v19 = vrot.slane %v671_v7, 7  ;;  %v535_v29 = vmax.f32 %v503_v13, 0.0  ;;  %v992_v49 = vld [vmem:[#allocation2 + $0x18] sm:$0xf]  ;;  %v467_v53 = vmul.f32 %v6824_v39, %v8246_v32 }
  0x23   : > { %7214 = vmatpush3.bf16.msra.mxu1 %v7926_v11  ;;  %v1171_v11 = vor.u32 %v1170_v2, %v1167_v1  ;;  %v534_v21 = vmax.f32 %v502_v10, 0.0  ;;  %v293_v54 = vsel %vm8220_vm3, 0, %v292_v40  ;;  %v349_v55 = vsel %vm8227_vm4, 0, %v348_v41  ;;  %v351_v62 = vld [vmem:[#allocation2 + $0x44] sm:$0x1] }
  0x24   : > { %7406 = vmatpush3.bf16.msra.mxu0 %v7927_v12  ;;  %7215 = vmatprep.subr.bf16.mxu1 %v7928_v22  ;;  %v665_v12 = vrot.slane %v663_v3, 7  ;;  %v1187_v17 = vsel %vm8286_vm9, %v1182_v57, %v1186_v6  ;;  %v676_v30 = vor.u32 %v674_v8, %v673_v19  ;;  %v678_v31 = vrot.slane %v673_v19, 4  ;;  %294 = vst [vmem:[#allocation2 + $0x30] sm:$0x1] %v293_v54  ;;  %v996_v2 = vld [vmem:[#allocation2 + $0x20] sm:$0x1] }
  0x25   : > { %7407 = vmatprep.subr.bf16.mxu0 %v7929_v33  ;;  %v1172_v23 = vrot.slane %v1171_v11, 4  ;;  %v504_v57 = vadd.f32 %v8254_v34, %v466_v50  ;;  %350 = vst [vmem:[#allocation2 + $0x38] sm:$0x1] %v349_v55  ;;  %v6827_v58 = vunpack.c.l.bf16 %v6959_v46  ;;  %v6828_v61 = vunpack.c.h.bf16 %v6959_v46 }
  0x26   : > { %v668_v25 = vor.u32 %v666_v4, %v665_v12  ;;  %v669_v26 = vrot.slane %v665_v12, 4  ;;  %v990_v44 = vsel %vm8220_vm3, %v678_v31, %v989_v27  ;;  %v505_v3 = vadd.f32 %v8254_v34, %v467_v53 }
  0x27   : > { %7216 = vmatpush3.bf16.msra.mxu1 %v7928_v22  ;;  %v346_v22 = vsel %vm8227_vm4, 0, %v345_v5  ;;  %v1177_v36 = vsel %vm8286_vm9, %v1172_v23, %v8237_v28  ;;  %991 = vst [vmem:[#allocation2 + $0x14] sm:$0x1] %v990_v44  ;;  %v296_v4 = vsel %vm8220_vm3, 0, %v295_v51  ;;  %v536_v7 = vmax.f32 %v504_v57, 0.0 }
  0x28   : > { %7408 = vmatpush3.bf16.msra.mxu0 %v7929_v33  ;;  %7217 = vmatprep.subr.bf16.mxu1 %v7930_v37  ;;  %347 = vst [vmem:[#allocation2 + $0x2c] sm:$0x1] %v346_v22  ;;  %v6751_v33 = vpack.c.bf16 %v534_v21, %v534_v21  ;;  %v6337_v42 = vcombine.low %v1177_v36, %v1187_v17  ;;  %297 = vst [vmem:[#allocation2 + $0x3c] sm:$0x1] %v296_v4  ;;  %v537_v10 = vmax.f32 %v505_v3, 0.0 }
  0x29   : > { %7409 = vmatprep.subr.bf16.mxu0 %v7931_v38  ;;  %v677_v43 = vsel %vm8308_vm11, %v669_v26, %v676_v30  ;;  %v468_v8 = vmul.f32 %v6827_v58, %v8246_v32  ;;  %v352_v11 = vsel %vm8227_vm4, 0, %v351_v62  ;;  %v469_v17 = vmul.f32 %v6828_v61, %v8246_v32 }
  0x2a   : > { %v680_v45 = vshrl.u32 %v6751_v33, 16  ;;  %988 = vst [vmem:[#allocation2 + $0x10] sm:$0xf] %v677_v43  ;;  %v683_v28 = vshll.u32 %v6751_v33, 16  ;;  %7219 = vmatprep.mubr.bf16.mxu1 %v6337_v42  ;;  %353 = vst [vmem:[#allocation2 + $0x44] sm:$0x1] %v352_v11  ;;  %v8348_v33 = vpack.c.bf16 %v537_v10, %v537_v10 }
  0x2b   : > { %7218 = vmatpush3.bf16.msra.mxu1 %v7930_v37  ;;  %v986_v37 = vsel %vm8299_vm10, %v668_v25, %v985_v9  ;;  %v8343_v25 = vpack.c.bf16 %v536_v7, %v536_v7  ;;  %v8346_v26 = vadd.f32 %v8254_v34, %v468_v8  ;;  %v8353_v43 = vadd.f32 %v8254_v34, %v469_v17  ;;  %v8373_v11 = vld [vmem:[%s8217_s28 + $0x28] sm:$0xff]  }
  0x2c   : > { %7410 = vmatpush3.bf16.msra.mxu0 %v7931_v38  ;;  %7251 = vmatprep.subr.bf16.mxu1 %v8275_v59  ;;  %v6752_v38 = vpack.c.bf16 %v535_v29, %v535_v29  ;;  %987 = vst [vmem:[#allocation2 + $0xc] sm:$0xf] %v986_v37  ;;  %v682_v52 = vrot.slane %v680_v45, 7 }
  0x2d   : > { %7443 = vmatprep.subr.bf16.mxu0 %v8280_v60 }
  0x2e   : > { %v688_v47 = vshrl.u32 %v6752_v38, 16  ;;  %v691_v48 = vshll.u32 %v6752_v38, 16  ;;  %v685_v63 = vor.u32 %v683_v28, %v682_v52  ;;  %v686_v1 = vrot.slane %v682_v52, 4  ;;  %v1146_v21 = vld [vmem:[#allocation2 + $0x14] sm:$0x1] }
  0x2f   : > { %v1208_v30 = vshll.u32 %v1146_v21, 16  ;;  %v8350_v37 = vld [vmem:[#allocation2 + $0x14] sm:$0x1] }
  0x30   : > { %v690_v56 = vrot.slane %v688_v47, 7  ;;  %v993_v9 = vsel %vm8299_vm10, %v685_v63, %v992_v49  ;;  %v8356_v47 = vld [vmem:[%s8217_s28 + $0x20] sm:$0xff]   ;;  %v3082_v51 = vshll.u32 %v8350_v37, 16  ;;  %v3837_v55 = vrot.slane %v8350_v37, 5 }
  0x31   : > { %994 = vst [vmem:[#allocation2 + $0x18] sm:$0xf] %v993_v9  ;;  %v1100_v19 = vld [vmem:[#allocation2 + $0x10] sm:$0xf]  ;;  %v1210_v49 = vrot.slane %v1208_v30, 5  ;;  %v6831_v62 = vunpack.c.l.bf16 %v8356_v47  ;;  %v6832_v63 = vunpack.c.h.bf16 %v8356_v47 }
  0x32   : > { %v693_v5 = vor.u32 %v691_v48, %v690_v56  ;;  %v695_v6 = vrot.slane %v690_v56, 4  ;;  %v1198_v27 = vshll.u32 %v1100_v19, 16  ;;  %v1202_v29 = vshrl.u32 %v1100_v19, 16  ;;  %v3015_v31 = vld [vmem:[#allocation2 + $0x10] sm:$0xf]  ;;  %v7935_v19 = vld [vmem:[%s10085_s3 + $0x8] sm:$0xff]  }
  0x33   : > { %v1099_v12 = vld [vmem:[#allocation2 + $0xc] sm:$0xf]  ;;  %v3072_v42 = vshll.u32 %v3015_v31, 16  ;;  %v3076_v28 = vshrl.u32 %v3015_v31, 16  ;;  %v3084_v58 = vrot.slane %v3082_v51, 5 }
  0x34   : > { %v3014_v13 = vld [vmem:[#allocation2 + $0xc] sm:$0xf]  ;;  %v694_v15 = vsel %vm8308_vm11, %v686_v1, %v693_v5  ;;  %v997_v16 = vsel %vm8220_vm3, %v695_v6, %v996_v2  ;;  %v1189_v22 = vshrl.u32 %v1099_v12, 16  ;;  %v1192_v23 = vshll.u32 %v1099_v12, 16 }
  0x35   : > { %995 = vst [vmem:[#allocation2 + $0x1c] sm:$0xf] %v694_v15  ;;  %998 = vst [vmem:[#allocation2 + $0x20] sm:$0x1] %v997_v16  ;;  %v3063_v38 = vshrl.u32 %v3014_v13, 16  ;;  %v3066_v39 = vshll.u32 %v3014_v13, 16 }
  0x36   : > { %v1191_v35 = vrot.slane %v1189_v22, 4  ;;  %v1194_v36 = vrot.slane %v1192_v23, 5  ;;  %v1200_v40 = vrot.slane %v1198_v27, 5  ;;  %v1204_v41 = vrot.slane %v1202_v29, 4 }
  0x37   : > { %v3065_v45 = vrot.slane %v3063_v38, 4  ;;  %v3068_v46 = vrot.slane %v3066_v39, 5  ;;  %v3074_v50 = vrot.slane %v3072_v42, 5  ;;  %v3078_v54 = vrot.slane %v3076_v28, 4  ;;  %v7938_v28 = vld [vmem:[%s10085_s3 + $0x10] sm:$0xff]  }
  0x38   : > { %v1195_v44 = vor.u32 %v1194_v36, %v1191_v35  ;;  %v1205_v48 = vor.u32 %v1204_v41, %v1200_v40  ;;  %v3017_v56 = vld [vmem:[#allocation2 + $0x18] sm:$0xf]  ;;  %v6835_v36 = vunpack.c.l.bf16 %v8373_v11 }
  0x39   : > { %v3069_v53 = vor.u32 %v3068_v46, %v3065_v45  ;;  %v3079_v3 = vor.u32 %v3078_v54, %v3074_v50  ;;  %v3087_v5 = vshrl.u32 %v3017_v56, 16  ;;  %v3090_v7 = vshll.u32 %v3017_v56, 16  ;;  %v1101_v10 = vld [vmem:[#allocation2 + $0x18] sm:$0xf] }
  0x3a   : > { %v1196_v52 = vrot.slane %v1195_v44, 4  ;;  %v1206_v57 = vrot.slane %v1205_v48, 4  ;;  %v1213_v35 = vshrl.u32 %v1101_v10, 16  ;;  %v1216_v45 = vshll.u32 %v1101_v10, 16 }
  0x3b   : > { %v3070_v2 = vrot.slane %v3069_v53, 4  ;;  %v3080_v15 = vrot.slane %v3079_v3, 4  ;;  %v3089_v16 = vrot.slane %v3087_v5, 4  ;;  %v3092_v21 = vrot.slane %v3090_v7, 5  ;;  %v7934_v3 = vld [vmem:[%s10085_s3 + $0x148] sm:$0xff]  }
  0x3c   : > { %v8360_v61 = vld [vmem:[#allocation2 + $0x1c] sm:$0xf]  ;;  %v1201_v1 = vsel %vm8286_vm9, %v1196_v52, %v1200_v40  ;;  %v8366_v4 = vld [vmem:[#allocation2 + $0x20] sm:$0x1]  ;;  %v1211_v6 = vsel %vm8286_vm9, %v1206_v57, %v1210_v49  ;;  %v1215_v44 = vrot.slane %v1213_v35, 4  ;;  %v1218_v52 = vrot.slane %v1216_v45, 5 }
  0x3d   : > { %v3096_v8 = vshll.u32 %v8360_v61, 16  ;;  %v3100_v9 = vshrl.u32 %v8360_v61, 16  ;;  %v6338_v12 = vcombine.low %v1201_v1, %v1211_v6  ;;  %v3075_v13 = vsel %vm8286_vm9, %v3070_v2, %v3074_v50  ;;  %v1102_v17 = vld [vmem:[#allocation2 + $0x1c] sm:$0xf]  ;;  %v1147_v31 = vld [vmem:[#allocation2 + $0x20] sm:$0x1] }
  0x3e   : > { %v3106_v27 = vshll.u32 %v8366_v4, 16  ;;  %v3085_v29 = vsel %vm8286_vm9, %v3080_v15, %v3084_v58  ;;  %v3841_v30 = vrot.slane %v8360_v61, 5  ;;  %v3093_v39 = vor.u32 %v3092_v21, %v3089_v16  ;;  %v298_v35 = vld [vmem:[#allocation2 + $0x48] sm:$0x1] }
  0x3f   : > { %v3098_v22 = vrot.slane %v3096_v8, 5  ;;  %v3102_v23 = vrot.slane %v3100_v9, 4  ;;  %7220 = vmatmul.mubr.bf16.vlgmr.msra.gmra.mrb[0].mxu1 %v6338_v12  ;;  %v6497_v38 = vcombine.low %v3075_v13, %v3085_v29  ;;  %v3844_v42 = vrot.slane %v8366_v4, 5  ;;  %v999_v8 = vld [vmem:[#allocation2 + $0x24] sm:$0xf] }
  0x40   : > { %7252 = vmatpush3.bf16.msra.mxu1 %v8275_v59  ;;  %v3108_v41 = vrot.slane %v3106_v27, 5  ;;  %v1222_v46 = vshll.u32 %v1102_v17, 16  ;;  %v3094_v48 = vrot.slane %v3093_v39, 4  ;;  %v1226_v50 = vshrl.u32 %v1102_v17, 16 }
  0x41   : > { %v3103_v40 = vor.u32 %v3102_v23, %v3098_v22  ;;  %7253 = vmatprep.subr.bf16.mxu1 %v7935_v19  ;;  %7411 = vmatprep.mubr.bf16.mxu0 %v6497_v38  ;;  %v1232_v51 = vshll.u32 %v1147_v31, 16  ;;  %v697_v53 = vshrl.u32 %v8343_v25, 16  ;;  %v700_v54 = vshll.u32 %v8343_v25, 16  ;;  %v7941_v25 = vld [vmem:[%s10085_s3 + $0x18] sm:$0xff]  }
  0x42   : > { %v1224_v59 = vrot.slane %v1222_v46, 5  ;;  %v3099_v56 = vsel %vm8286_vm9, %v3094_v48, %v3098_v22  ;;  %v1228_v58 = vrot.slane %v1226_v50, 4  ;;  %v1219_v5 = vor.u32 %v1218_v52, %v1215_v44  ;;  %v1003_v22 = vld [vmem:[#allocation2 + $0x2c] sm:$0x1]  ;;  %v7944_v44 = vld [vmem:[%s10085_s3 + $0x20] sm:$0xff]  }
  0x43   : > { %v3104_v49 = vrot.slane %v3103_v40, 4  ;;  %v1234_v1 = vrot.slane %v1232_v51, 5  ;;  %v699_v6 = vrot.slane %v697_v53, 7  ;;  %v705_v7 = vshrl.u32 %v8348_v33, 16  ;;  %v1010_v50 = vld [vmem:[#allocation2 + $0x38] sm:$0x1] }
  0x44   : > { %7254 = vmatpush3.bf16.msra.mxu1 %v7935_v19  ;;  %v1229_v9 = vor.u32 %v1228_v58, %v1224_v59  ;;  %v708_v10 = vshll.u32 %v8348_v33, 16  ;;  %v538_v12 = vmax.f32 %v8346_v26, 0.0  ;;  %v539_v13 = vmax.f32 %v8353_v43, 0.0  ;;  %v301_v51 = vld [vmem:[#allocation2 + $0x54] sm:$0x1]  ;;  %v7937_v53 = vld [vmem:[%s10085_s3 + $0x158] sm:$0xff]  }
  0x45   : > { %v3109_v57 = vsel %vm8286_vm9, %v3104_v49, %v3108_v41  ;;  %7255 = vmatprep.subr.bf16.mxu1 %v7938_v28  ;;  %v1220_v15 = vrot.slane %v1219_v5, 4  ;;  %v702_v16 = vor.u32 %v700_v54, %v699_v6  ;;  %v703_v17 = vrot.slane %v699_v6, 4  ;;  %v354_v41 = vld [vmem:[#allocation2 + $0x50] sm:$0x1] }
  0x46   : > { %v6498_v2 = vcombine.low %v3099_v56, %v3109_v57  ;;  %v707_v19 = vrot.slane %v705_v7, 7  ;;  %v1230_v21 = vrot.slane %v1229_v9, 4  ;;  %v6755_v23 = vpack.c.bf16 %v538_v12, %v538_v12  ;;  %v1006_v49 = vld [vmem:[#allocation2 + $0x30] sm:$0xf]  ;;  %v7946_v57 = vld [vmem:[%s10085_s3 + $0x28] sm:$0xff]   ;;  %v7939_v12 = vld [vmem:[%s10085_s3 + $0x160] sm:$0xff]  }
  0x47   : > { %v6756_v27 = vpack.c.bf16 %v539_v13, %v539_v13  ;;  %v470_v29 = vmul.f32 %v6831_v62, %v8246_v32  ;;  %v1225_v26 = vsel %vm8286_vm9, %v1220_v15, %v1224_v59  ;;  %v1000_v31 = vsel %vm8299_vm10, %v702_v16, %v999_v8  ;;  %v8459_v15 = vld [vmem:[%s8217_s28 + $0x30] sm:$0xff]  }
  0x48   : > { %7412 = vmatmul.mubr.bf16.vlgmr.msra.gmra.mrb[0].mxu0 %v6498_v2  ;;  %7256 = vmatpush3.bf16.msra.mxu1 %v7938_v28  ;;  %v710_v33 = vor.u32 %v708_v10, %v707_v19  ;;  %v712_v43 = vrot.slane %v707_v19, 4  ;;  %v1235_v38 = vsel %vm8286_vm9, %v1230_v21, %v1234_v1  ;;  %1001 = vst [vmem:[#allocation2 + $0x24] sm:$0xf] %v1000_v31  ;;  %v714_v62 = vshrl.u32 %v6755_v23, 16 }
  0x49   : > { %7444 = vmatpush3.bf16.msra.mxu0 %v8280_v60  ;;  %v7936_v60 = vld [vmem:[%s10085_s3 + $0x150] sm:$0xff]   ;;  %7257 = vmatprep.subr.bf16.mxu1 %v7941_v25  ;;  %v717_v39 = vshll.u32 %v6755_v23, 16  ;;  %v722_v40 = vshrl.u32 %v6756_v27, 16  ;;  %v6339_v45 = vcombine.low %v1225_v26, %v1235_v38  ;;  %v725_v48 = vshll.u32 %v6756_v27, 16 }
  0x4a   : > { %7445 = vmatprep.subr.bf16.mxu0 %v7934_v3  ;;  %v711_v46 = vsel %vm8308_vm11, %v703_v17, %v710_v33  ;;  %v1004_v28 = vsel %vm8220_vm3, %v712_v43, %v1003_v22  ;;  %v716_v52 = vrot.slane %v714_v62, 7  ;;  %v471_v54 = vmul.f32 %v6832_v63, %v8246_v32 }
  0x4b   : > { %1002 = vst [vmem:[#allocation2 + $0x28] sm:$0xf] %v711_v46  ;;  %1005 = vst [vmem:[#allocation2 + $0x2c] sm:$0x1] %v1004_v28  ;;  %v724_v59 = vrot.slane %v722_v40, 7  ;;  %v508_v56 = vadd.f32 %v8254_v34, %v470_v29  ;;  %7223 = vmatprep.mubr.bf16.mxu1 %v6339_v45  ;;  %v299_v58 = vsel %vm8220_vm3, 0, %v298_v35  ;;  %v6836_v2 = vunpack.c.h.bf16 %v8373_v11 }
  0x4c   : > { %7258 = vmatpush3.bf16.msra.mxu1 %v7941_v25  ;;  %v355_v1 = vsel %vm8227_vm4, 0, %v354_v41  ;;  %v472_v47 = vmul.f32 %v6835_v36, %v8246_v32  ;;  %v719_v63 = vor.u32 %v717_v39, %v716_v52  ;;  %300 = vst [vmem:[#allocation2 + $0x48] sm:$0x1] %v299_v58  ;;  %v509_v7 = vadd.f32 %v8254_v34, %v471_v54 }
  0x4d   : > { %7446 = vmatpush3.bf16.msra.mxu0 %v7934_v3  ;;  %v720_v3 = vrot.slane %v716_v52, 4  ;;  %v727_v5 = vor.u32 %v725_v48, %v724_v59  ;;  %v729_v6 = vrot.slane %v724_v59, 4  ;;  %356 = vst [vmem:[#allocation2 + $0x50] sm:$0x1] %v355_v1  ;;  %7259 = vmatprep.subr.bf16.mxu1 %v7944_v44  ;;  %v540_v8 = vmax.f32 %v508_v56, 0.0 }
  0x4e   : > { %7447 = vmatprep.subr.bf16.mxu0 %v7936_v60  ;;  %v473_v25 = vmul.f32 %v6836_v2, %v8246_v32  ;;  %v510_v9 = vadd.f32 %v8254_v34, %v472_v47  ;;  %v1007_v11 = vsel %vm8299_vm10, %v719_v63, %v1006_v49  ;;  %v302_v13 = vsel %vm8220_vm3, 0, %v301_v51  ;;  %v7940_v51 = vld [vmem:[%s10085_s3 + $0x168] sm:$0xff]  }
  0x4f   : > { %v728_v10 = vsel %vm8308_vm11, %v720_v3, %v727_v5  ;;  %v1011_v36 = vsel %vm8220_vm3, %v729_v6, %v1010_v50  ;;  %v1103_v16 = vld [vmem:[#allocation2 + $0x24] sm:$0xf]  ;;  %1008 = vst [vmem:[#allocation2 + $0x30] sm:$0xf] %v1007_v11  ;;  %v541_v19 = vmax.f32 %v509_v7, 0.0  ;;  %v8461_v21 = vpack.c.bf16 %v540_v8, %v540_v8 }
  0x50   : > { %7260 = vmatpush3.bf16.msra.mxu1 %v7944_v44  ;;  %v3020_v17 = vld [vmem:[#allocation2 + $0x24] sm:$0xf]  ;;  %1009 = vst [vmem:[#allocation2 + $0x34] sm:$0xf] %v728_v10  ;;  %1012 = vst [vmem:[#allocation2 + $0x38] sm:$0x1] %v1011_v36  ;;  %v8464_v22 = vadd.f32 %v8254_v34, %v473_v25  ;;  %v6839_v62 = vunpack.c.l.bf16 %v8459_v15  ;;  %v6840_v39 = vunpack.c.h.bf16 %v8459_v15 }
  0x51   : > { %7448 = vmatpush3.bf16.msra.mxu0 %v7936_v60  ;;  %v542_v23 = vmax.f32 %v510_v9, 0.0  ;;  %303 = vst [vmem:[#allocation2 + $0x54] sm:$0x1] %v302_v13  ;;  %7261 = vmatprep.subr.bf16.mxu1 %v7946_v57  ;;  %v1237_v27 = vshrl.u32 %v1103_v16, 16  ;;  %v1240_v29 = vshll.u32 %v1103_v16, 16  ;;  %v3111_v26 = vshrl.u32 %v3020_v17, 16 }
  0x52   : > { %7449 = vmatprep.subr.bf16.mxu0 %v7937_v53  ;;  %v3114_v33 = vshll.u32 %v3020_v17, 16  ;;  %v1104_v43 = vld [vmem:[#allocation2 + $0x28] sm:$0xf]  ;;  %v1148_v31 = vld [vmem:[#allocation2 + $0x2c] sm:$0x1]  ;;  %v8466_v35 = vpack.c.bf16 %v541_v19, %v541_v19  ;;  %v8481_v7 = vmul.f32 %v6839_v62, %v8246_v32 }
  0x53   : > { %v3021_v60 = vld [vmem:[#allocation2 + $0x28] sm:$0xf]  ;;  %v8468_v38 = vpack.c.bf16 %v542_v23, %v542_v23  ;;  %v1239_v40 = vrot.slane %v1237_v27, 4  ;;  %v1242_v41 = vrot.slane %v1240_v29, 5  ;;  %v1246_v44 = vshll.u32 %v1104_v43, 16 }
  0x54   : > { %v1250_v45 = vshrl.u32 %v1104_v43, 16  ;;  %v3022_v46 = vld [vmem:[#allocation2 + $0x2c] sm:$0x1]  ;;  %7262 = vmatpush3.bf16.msra.mxu1 %v7946_v57  ;;  %v1256_v28 = vshll.u32 %v1148_v31, 16  ;;  %v3113_v48 = vrot.slane %v3111_v26, 4  ;;  %v3116_v49 = vrot.slane %v3114_v33, 5 }
  0x55   : > { %7450 = vmatpush3.bf16.msra.mxu0 %v7937_v53  ;;  %v3120_v50 = vshll.u32 %v3021_v60, 16  ;;  %v1243_v52 = vor.u32 %v1242_v41, %v1239_v40  ;;  %v1248_v59 = vrot.slane %v1246_v44, 5  ;;  %v3124_v56 = vshrl.u32 %v3021_v60, 16  ;;  %v7942_v53 = vld [vmem:[%s10085_s3 + $0x170] sm:$0xff]   ;;  %v7943_v60 = vld [vmem:[%s10085_s3 + $0x178] sm:$0xff]  }
  0x56   : > { %7451 = vmatprep.subr.bf16.mxu0 %v7939_v12  ;;  %v1252_v54 = vrot.slane %v1250_v45, 4  ;;  %v1258_v58 = vrot.slane %v1256_v28, 5  ;;  %v3117_v1 = vor.u32 %v3116_v49, %v3113_v48  ;;  %v3130_v47 = vshll.u32 %v3022_v46, 16  ;;  %v3023_v5 = vld [vmem:[#allocation2 + $0x30] sm:$0xf] }
  0x57   : > { %v3122_v2 = vrot.slane %v3120_v50, 5  ;;  %v1244_v57 = vrot.slane %v1243_v52, 4  ;;  %v3126_v3 = vrot.slane %v3124_v56, 4  ;;  %v8478_v6 = vld [vmem:[#allocation2 + $0x34] sm:$0xf]  ;;  %v3135_v10 = vshrl.u32 %v3023_v5, 16 }
  0x58   : > { %v1253_v63 = vor.u32 %v1252_v54, %v1248_v59  ;;  %v3118_v8 = vrot.slane %v3117_v1, 4  ;;  %v3132_v25 = vrot.slane %v3130_v47, 5  ;;  %v8483_v9 = vld [vmem:[#allocation2 + $0x38] sm:$0x1]  ;;  %v3138_v11 = vshll.u32 %v3023_v5, 16 }
  0x59   : > { %7452 = vmatpush3.bf16.msra.mxu0 %v7939_v12  ;;  %v1249_v36 = vsel %vm8286_vm9, %v1244_v57, %v1248_v59  ;;  %v3127_v16 = vor.u32 %v3126_v3, %v3122_v2  ;;  %v3144_v17 = vshll.u32 %v8478_v6, 16  ;;  %v1105_v19 = vld [vmem:[#allocation2 + $0x30] sm:$0xf]  ;;  %v3137_v32 = vrot.slane %v3135_v10, 4  ;;  %v1106_v29 = vld [vmem:[#allocation2 + $0x34] sm:$0xf] }
  0x5a   : > { %7453 = vmatprep.subr.bf16.mxu0 %v7940_v51  ;;  %v1254_v13 = vrot.slane %v1253_v63, 4  ;;  %v3123_v12 = vsel %vm8286_vm9, %v3118_v8, %v3122_v2  ;;  %v3140_v23 = vrot.slane %v3138_v11, 5  ;;  %v3148_v27 = vshrl.u32 %v8478_v6, 16  ;;  %v1149_v44 = vld [vmem:[#allocation2 + $0x38] sm:$0x1]  ;;  %v8506_v3 = vld [vmem:[%s10085_s3 + $0x180] sm:$0xff]  }
  0x5b   : > { %v3128_v33 = vrot.slane %v3127_v16, 4  ;;  %v3146_v43 = vrot.slane %v3144_v17, 5  ;;  %v3154_v31 = vshll.u32 %v8483_v9, 16  ;;  %v1261_v45 = vshrl.u32 %v1105_v19, 16  ;;  %v1013_v10 = vld [vmem:[#allocation2 + $0x3c] sm:$0xf] }
  0x5c   : > { %v1259_v26 = vsel %vm8286_vm9, %v1254_v13, %v1258_v58  ;;  %v3141_v40 = vor.u32 %v3140_v23, %v3137_v32  ;;  %v3150_v41 = vrot.slane %v3148_v27, 4  ;;  %v1264_v48 = vshll.u32 %v1105_v19, 16  ;;  %v1017_v16 = vld [vmem:[#allocation2 + $0x44] sm:$0x1]  ;;  %v7948_v23 = vld [vmem:[%s10085_s3 + $0x30] sm:$0xff]  }
  0x5d   : > { %7454 = vmatpush3.bf16.msra.mxu0 %v7940_v51  ;;  %v6340_v62 = vcombine.low %v1249_v36, %v1259_v26  ;;  %v3133_v46 = vsel %vm8286_vm9, %v3128_v33, %v3132_v25  ;;  %v3156_v28 = vrot.slane %v3154_v31, 5  ;;  %v1270_v49 = vshll.u32 %v1106_v29, 16  ;;  %v304_v31 = vld [vmem:[#allocation2 + $0x60] sm:$0x1]  ;;  %7263 = vmatprep.subr.bf16.mxu1 %v7948_v23 }
  0x5e   : > { %7455 = vmatprep.subr.bf16.mxu0 %v7942_v53  ;;  %v6499_v50 = vcombine.low %v3123_v12, %v3133_v46  ;;  %v3142_v52 = vrot.slane %v3141_v40, 4  ;;  %v3151_v51 = vor.u32 %v3150_v41, %v3146_v43  ;;  %v1263_v59 = vrot.slane %v1261_v45, 4  ;;  %v1020_v40 = vld [vmem:[#allocation2 + $0x48] sm:$0xf]  ;;  %7264 = vmatpush3.bf16.msra.mxu1 %v7948_v23 }
  0x5f   : > { %7224 = vmatmul.mubr.bf16.gmra.mrb[4].mxu1 %v6340_v62  ;;  %v1266_v54 = vrot.slane %v1264_v48, 5  ;;  %v1272_v56 = vrot.slane %v1270_v49, 5  ;;  %v1274_v58 = vshrl.u32 %v1106_v29, 16  ;;  %v1280_v1 = vshll.u32 %v1149_v44, 16  ;;  %v360_v41 = vld [vmem:[#allocation2 + $0x68] sm:$0x1] }
  0x60   : > { %7415 = vmatprep.mubr.bf16.mxu0 %v6499_v50  ;;  %v3147_v2 = vsel %vm8286_vm9, %v3142_v52, %v3146_v43  ;;  %v3152_v47 = vrot.slane %v3151_v51, 4  ;;  %v731_v57 = vshrl.u32 %v8461_v21, 16  ;;  %v734_v63 = vshll.u32 %v8461_v21, 16  ;;  %v357_v43 = vld [vmem:[#allocation2 + $0x5c] sm:$0x1] }
  0x61   : > { %7456 = vmatpush3.bf16.msra.mxu0 %v7942_v53  ;;  %v1267_v5 = vor.u32 %v1266_v54, %v1263_v59  ;;  %v1276_v8 = vrot.slane %v1274_v58, 4  ;;  %v1282_v25 = vrot.slane %v1280_v1, 5  ;;  %v739_v53 = vshrl.u32 %v8466_v35, 16  ;;  %v1024_v51 = vld [vmem:[#allocation2 + $0x50] sm:$0x1]  ;;  %v6963_v59 = vld [vmem:[%s8217_s28 + $0x38] sm:$0xff]  }
  0x62   : > { %7457 = vmatprep.subr.bf16.mxu0 %v7943_v60  ;;  %v3157_v11 = vsel %vm8286_vm9, %v3152_v47, %v3156_v28  ;;  %v733_v36 = vrot.slane %v731_v57, 7  ;;  %v742_v13 = vshll.u32 %v8466_v35, 16  ;;  %v543_v21 = vmax.f32 %v8464_v22, 0.0  ;;  %v307_v54 = vld [vmem:[#allocation2 + $0x6c] sm:$0x1] }
  0x63   : > { %v6500_v17 = vcombine.low %v3147_v2, %v3157_v11  ;;  %v1268_v19 = vrot.slane %v1267_v5, 4  ;;  %v1277_v12 = vor.u32 %v1276_v8, %v1272_v56  ;;  %v741_v32 = vrot.slane %v739_v53, 7  ;;  %v8535_v57 = vld [vmem:[%s10082_s0] ss:$0 sm:$0xff] }
  0x64   : > { %v736_v27 = vor.u32 %v734_v63, %v733_v36  ;;  %v737_v29 = vrot.slane %v733_v36, 4  ;;  %v6760_v26 = vpack.c.bf16 %v543_v21, %v543_v21  ;;  %v748_v33 = vshrl.u32 %v8468_v38, 16 }
  0x65   : > { %7458 = vmatpush3.bf16.msra.mxu0 %v7943_v60  ;;  %v1273_v22 = vsel %vm8286_vm9, %v1268_v19, %v1272_v56  ;;  %v1278_v35 = vrot.slane %v1277_v12, 4  ;;  %v744_v62 = vor.u32 %v742_v13, %v741_v32  ;;  %v746_v60 = vrot.slane %v741_v32, 4  ;;  %v363_v56 = vld [vmem:[#allocation2 + $0x74] sm:$0x1]  ;;  %v8555_v13 = vld [vmem:[%s8217_s28 + $0x40] sm:$0xff]  }
  0x66   : > { %7491 = vmatprep.subr.bf16.mxu0 %v8506_v3  ;;  %7416 = vmatmul.mubr.bf16.gmra.mrb[4].mxu0 %v6500_v17  ;;  %v1014_v44 = vsel %vm8299_vm10, %v736_v27, %v1013_v10  ;;  %v750_v45 = vrot.slane %v748_v33, 7  ;;  %v751_v46 = vshll.u32 %v8468_v38, 16  ;;  %v756_v28 = vshrl.u32 %v6760_v26, 16 }
  0x67   : > { %v1283_v48 = vsel %vm8286_vm9, %v1278_v35, %v1282_v25  ;;  %v745_v49 = vsel %vm8308_vm11, %v737_v29, %v744_v62  ;;  %1015 = vst [vmem:[#allocation2 + $0x3c] sm:$0xf] %v1014_v44  ;;  %v1018_v50 = vsel %vm8220_vm3, %v746_v60, %v1017_v16  ;;  %v759_v52 = vshll.u32 %v6760_v26, 16 }
  0x68   : > { %v6341_v58 = vcombine.low %v1273_v22, %v1283_v48  ;;  %1016 = vst [vmem:[#allocation2 + $0x40] sm:$0xf] %v745_v49  ;;  %1019 = vst [vmem:[#allocation2 + $0x44] sm:$0x1] %v1018_v50  ;;  %v753_v38 = vor.u32 %v751_v46, %v750_v45  ;;  %v754_v1 = vrot.slane %v750_v45, 4  ;;  %v758_v2 = vrot.slane %v756_v28, 7 }
  0x69   : > { %v358_v47 = vsel %vm8227_vm4, 0, %v357_v43  ;;  %v475_v63 = vmul.f32 %v8535_v57, %v6840_v39  ;;  %v512_v5 = vadd.f32 %v8254_v34, %v8481_v7  ;;  %v305_v8 = vsel %vm8220_vm3, 0, %v304_v31  ;;  %v8551_v34 = vld [vmem:[%s10083_s1] ss:$0 sm:$0xff] }
  0x6a   : > { %7227 = vmatprep.mubr.bf16.mxu1 %v6341_v58  ;;  %v761_v25 = vor.u32 %v759_v52, %v758_v2  ;;  %v763_v53 = vrot.slane %v758_v2, 4  ;;  %v1021_v10 = vsel %vm8299_vm10, %v753_v38, %v1020_v40  ;;  %359 = vst [vmem:[#allocation2 + $0x5c] sm:$0x1] %v358_v47  ;;  %306 = vst [vmem:[#allocation2 + $0x60] sm:$0x1] %v305_v8  ;;  %v361_v15 = vsel %vm8227_vm4, 0, %v360_v41 }
  0x6b   : > { %1022 = vst [vmem:[#allocation2 + $0x48] sm:$0xf] %v1021_v10  ;;  %v513_v39 = vadd.f32 %v8551_v34, %v475_v63  ;;  %v544_v7 = vmax.f32 %v512_v5, 0.0  ;;  %362 = vst [vmem:[#allocation2 + $0x68] sm:$0x1] %v361_v15  ;;  %v6843_v11 = vunpack.c.l.bf16 %v6963_v59  ;;  %v6844_v36 = vunpack.c.h.bf16 %v6963_v59 }
  0x6c   : > { %v762_v16 = vsel %vm8308_vm11, %v754_v1, %v761_v25  ;;  %v1025_v21 = vsel %vm8220_vm3, %v763_v53, %v1024_v51  ;;  %v308_v17 = vsel %vm8220_vm3, 0, %v307_v54  ;;  %v364_v19 = vsel %vm8227_vm4, 0, %v363_v56 }
  0x6d   : > { %v8567_v12 = vrot.slane %v3841_v30, 4  ;;  %1023 = vst [vmem:[#allocation2 + $0x4c] sm:$0xf] %v762_v16  ;;  %1026 = vst [vmem:[#allocation2 + $0x50] sm:$0x1] %v1025_v21  ;;  %v545_v32 = vmax.f32 %v513_v39, 0.0  ;;  %v476_v23 = vmul.f32 %v8535_v57, %v6843_v11  ;;  %v8570_v26 = vpack.c.bf16 %v544_v7, %v544_v7 }
  0x6e   : > { %309 = vst [vmem:[#allocation2 + $0x6c] sm:$0x1] %v308_v17  ;;  %365 = vst [vmem:[#allocation2 + $0x74] sm:$0x1] %v364_v19  ;;  %v1107_v27 = vld [vmem:[#allocation2 + $0x3c] sm:$0xf]  ;;  %v477_v33 = vmul.f32 %v8535_v57, %v6844_v36  ;;  %v6847_v43 = vunpack.c.l.bf16 %v8555_v13  ;;  %v6848_v31 = vunpack.c.h.bf16 %v8555_v13 }
  0x6f   : > { %v3026_v29 = vld [vmem:[#allocation2 + $0x3c] sm:$0xf]  ;;  %v1108_v22 = vld [vmem:[#allocation2 + $0x40] sm:$0xf]  ;;  %v1150_v35 = vld [vmem:[#allocation2 + $0x44] sm:$0x1]  ;;  %v8575_v40 = vpack.c.bf16 %v545_v32, %v545_v32  ;;  %v8578_v41 = vadd.f32 %v8551_v34, %v476_v23 }
  0x70   : > { %v1285_v62 = vshrl.u32 %v1107_v27, 16  ;;  %v1288_v60 = vshll.u32 %v1107_v27, 16  ;;  %v1294_v44 = vshll.u32 %v1108_v22, 16  ;;  %v1298_v45 = vshrl.u32 %v1108_v22, 16  ;;  %v8580_v28 = vld [vmem:[#allocation2 + $0x40] sm:$0xf] }
  0x71   : > { %v1304_v46 = vshll.u32 %v1150_v35, 16  ;;  %v3159_v48 = vshrl.u32 %v3026_v29, 16  ;;  %v3028_v52 = vld [vmem:[#allocation2 + $0x44] sm:$0x1]  ;;  %v3162_v51 = vshll.u32 %v3026_v29, 16  ;;  %v3168_v59 = vshll.u32 %v8580_v28, 16 }
  0x72   : > { %v1287_v49 = vrot.slane %v1285_v62, 4  ;;  %v1290_v50 = vrot.slane %v1288_v60, 5  ;;  %v1296_v54 = vrot.slane %v1294_v44, 5  ;;  %v1300_v56 = vrot.slane %v1298_v45, 4  ;;  %v3029_v1 = vld [vmem:[#allocation2 + $0x48] sm:$0xf] }
  0x73   : > { %v1306_v58 = vrot.slane %v1304_v46, 5  ;;  %v3161_v38 = vrot.slane %v3159_v48, 4  ;;  %v3164_v47 = vrot.slane %v3162_v51, 5  ;;  %v3170_v63 = vrot.slane %v3168_v59, 5  ;;  %v1109_v35 = vld [vmem:[#allocation2 + $0x48] sm:$0xf] }
  0x74   : > { %v1291_v2 = vor.u32 %v1290_v50, %v1287_v49  ;;  %v3172_v5 = vshrl.u32 %v8580_v28, 16  ;;  %v1301_v8 = vor.u32 %v1300_v56, %v1296_v54  ;;  %v3178_v25 = vshll.u32 %v3028_v52, 16  ;;  %v3030_v53 = vld [vmem:[#allocation2 + $0x4c] sm:$0xf]  ;;  %v3031_v36 = vld [vmem:[#allocation2 + $0x50] sm:$0x1] }
  0x75   : > { %v3183_v10 = vshrl.u32 %v3029_v1, 16  ;;  %v8585_v15 = vadd.f32 %v8551_v34, %v477_v33  ;;  %v3165_v7 = vor.u32 %v3164_v47, %v3161_v38  ;;  %v3186_v16 = vshll.u32 %v3029_v1, 16  ;;  %v1110_v45 = vld [vmem:[#allocation2 + $0x4c] sm:$0xf]  ;;  %v1151_v59 = vld [vmem:[#allocation2 + $0x50] sm:$0x1] }
  0x76   : > { %v1292_v39 = vrot.slane %v1291_v2, 4  ;;  %v3174_v11 = vrot.slane %v3172_v5, 4  ;;  %v1302_v21 = vrot.slane %v1301_v8, 4  ;;  %v3180_v17 = vrot.slane %v3178_v25, 5  ;;  %v7950_v47 = vld [vmem:[%s10085_s3 + $0x38] sm:$0xff]  }
  0x77   : > { %v3185_v19 = vrot.slane %v3183_v10, 4  ;;  %v3192_v32 = vshll.u32 %v3030_v53, 16  ;;  %v3166_v27 = vrot.slane %v3165_v7, 4  ;;  %v3188_v22 = vrot.slane %v3186_v16, 5  ;;  %7265 = vmatprep.subr.bf16.mxu1 %v7950_v47 }
  0x78   : > { %v1297_v23 = vsel %vm8286_vm9, %v1292_v39, %v1296_v54  ;;  %v3175_v29 = vor.u32 %v3174_v11, %v3170_v63  ;;  %v1307_v33 = vsel %vm8286_vm9, %v1302_v21, %v1306_v58  ;;  %v3196_v60 = vshrl.u32 %v3030_v53, 16  ;;  %7266 = vmatpush3.bf16.msra.mxu1 %v7950_v47 }
  0x79   : > { %v3194_v62 = vrot.slane %v3192_v32, 5  ;;  %v3202_v44 = vshll.u32 %v3031_v36, 16  ;;  %v6342_v46 = vcombine.low %v1297_v23, %v1307_v33  ;;  %v3171_v48 = vsel %vm8286_vm9, %v3166_v27, %v3170_v63  ;;  %v1027_v27 = vld [vmem:[#allocation2 + $0x54] sm:$0xf]  ;;  %v1031_v33 = vld [vmem:[#allocation2 + $0x5c] sm:$0x1] }
  0x7a   : > { %v3176_v49 = vrot.slane %v3175_v29, 4  ;;  %v3189_v50 = vor.u32 %v3188_v22, %v3185_v19  ;;  %v3198_v52 = vrot.slane %v3196_v60, 4  ;;  %v1309_v54 = vshrl.u32 %v1109_v35, 16 }
  0x7b   : > { %v3204_v51 = vrot.slane %v3202_v44, 5  ;;  %v1312_v56 = vshll.u32 %v1109_v35, 16  ;;  %7228 = vmatmul.mubr.bf16.gmra.mrb[8].mxu1 %v6342_v46  ;;  %v1318_v1 = vshll.u32 %v1110_v45, 16  ;;  %v1322_v2 = vshrl.u32 %v1110_v45, 16 }
  0x7c   : > { %v3181_v58 = vsel %vm8286_vm9, %v3176_v49, %v3180_v17  ;;  %v3190_v38 = vrot.slane %v3189_v50, 4  ;;  %v3199_v5 = vor.u32 %v3198_v52, %v3194_v62  ;;  %v1311_v8 = vrot.slane %v1309_v54, 4  ;;  %v3768_v54 = vld [vmem:[#allocation2 + $0xc] sm:$0xe] }
  0x7d   : > { %v6501_v63 = vcombine.low %v3171_v48, %v3181_v58  ;;  %v1314_v25 = vrot.slane %v1312_v56, 5  ;;  %v1320_v10 = vrot.slane %v1318_v1, 5  ;;  %v1324_v39 = vrot.slane %v1322_v2, 4  ;;  %v3769_v2 = vld [vmem:[#allocation2 + $0x18] sm:$0xe] }
  0x7e   : > { %v3195_v53 = vsel %vm8286_vm9, %v3190_v38, %v3194_v62  ;;  %v1328_v7 = vshll.u32 %v1151_v59, 16  ;;  %v3200_v11 = vrot.slane %v3199_v5, 4  ;;  %v765_v16 = vshrl.u32 %v8570_v26, 16 }
  0x7f   : > { %7419 = vmatprep.mubr.bf16.mxu0 %v6501_v63  ;;  %v1315_v36 = vor.u32 %v1314_v25, %v1311_v8  ;;  %v768_v21 = vshll.u32 %v8570_v26, 16  ;;  %v1325_v17 = vor.u32 %v1324_v39, %v1320_v10  ;;  %v773_v32 = vshrl.u32 %v8575_v40, 16  ;;  %v1034_v25 = vld [vmem:[#allocation2 + $0x60] sm:$0xf] }
  0x80   : > { %v1330_v19 = vrot.slane %v1328_v7, 5  ;;  %v776_v23 = vshll.u32 %v8575_v40, 16  ;;  %v3205_v29 = vsel %vm8286_vm9, %v3200_v11, %v3204_v51  ;;  %v767_v35 = vrot.slane %v765_v16, 7  ;;  %v8038_v16 = vld [vmem:[#allocation2 + $0x10] sm:$0xf] }
  0x81   : > { %v1316_v22 = vrot.slane %v1315_v36, 4  ;;  %v546_v62 = vmax.f32 %v8578_v41, 0.0  ;;  %v6502_v60 = vcombine.low %v3195_v53, %v3205_v29  ;;  %v1326_v44 = vrot.slane %v1325_v17, 4  ;;  %v7954_v41 = vld [vmem:[%s10085_s3 + $0x80] sm:$0xff]  }
  0x82   : > { %v775_v45 = vrot.slane %v773_v32, 7  ;;  %v547_v26 = vmax.f32 %v8585_v15, 0.0  ;;  %v770_v48 = vor.u32 %v768_v21, %v767_v35  ;;  %v771_v49 = vrot.slane %v767_v35, 4  ;;  %7299 = vmatprep.subr.bf16.mxu1 %v7954_v41  ;;  %v310_v32 = vld [vmem:[#allocation2 + $0x78] sm:$0x1] }
  0x83   : > { %v1321_v46 = vsel %vm8286_vm9, %v1316_v22, %v1320_v10  ;;  %v6763_v40 = vpack.c.bf16 %v546_v62, %v546_v62  ;;  %7420 = vmatmul.mubr.bf16.gmra.mrb[8].mxu0 %v6502_v60  ;;  %v1331_v50 = vsel %vm8286_vm9, %v1326_v44, %v1330_v19  ;;  %v1038_v10 = vld [vmem:[#allocation2 + $0x68] sm:$0x1]  ;;  %v478_v39 = vmul.f32 %v8535_v57, %v6847_v43 }
  0x84   : > { %v778_v52 = vor.u32 %v776_v23, %v775_v45  ;;  %v780_v51 = vrot.slane %v775_v45, 4  ;;  %v6764_v59 = vpack.c.bf16 %v547_v26, %v547_v26  ;;  %v6343_v56 = vcombine.low %v1321_v46, %v1331_v50 }
  0x85   : > { %v1028_v15 = vsel %vm8299_vm10, %v770_v48, %v1027_v27  ;;  %v782_v58 = vshrl.u32 %v6763_v40, 16  ;;  %v785_v38 = vshll.u32 %v6763_v40, 16  ;;  %v479_v7 = vmul.f32 %v8535_v57, %v6848_v31  ;;  %v6965_v31 = vld [vmem:[%s8217_s28 + $0x48] sm:$0xff]  }
  0x86   : > { %v779_v47 = vsel %vm8308_vm11, %v771_v49, %v778_v52  ;;  %1029 = vst [vmem:[#allocation2 + $0x54] sm:$0xf] %v1028_v15  ;;  %v1032_v63 = vsel %vm8220_vm3, %v780_v51, %v1031_v33  ;;  %v790_v5 = vshrl.u32 %v6764_v59, 16  ;;  %v793_v8 = vshll.u32 %v6764_v59, 16  ;;  %7231 = vmatprep.mubr.bf16.mxu1 %v6343_v56 }
  0x87   : > { %1030 = vst [vmem:[#allocation2 + $0x58] sm:$0xf] %v779_v47  ;;  %1033 = vst [vmem:[#allocation2 + $0x5c] sm:$0x1] %v1032_v63  ;;  %v784_v53 = vrot.slane %v782_v58, 7  ;;  %v6521_v11 = vrot.slane %v3768_v54, 9  ;;  %v8638_v19 = vsel %vm8619_vm14, %v8567_v12, %v3844_v42  ;;  %v516_v43 = vadd.f32 %v8551_v34, %v478_v39 }
  0x88   : > { %v792_v36 = vrot.slane %v790_v5, 7  ;;  %v3834_v21 = vrot.slane %v8038_v16, 5  ;;  %v6522_v17 = vrot.slane %v3769_v2, 9  ;;  %v517_v13 = vadd.f32 %v8551_v34, %v479_v7 }
  0x89   : > { %v787_v23 = vor.u32 %v785_v38, %v784_v53  ;;  %v788_v27 = vrot.slane %v784_v53, 4  ;;  %v548_v42 = vmax.f32 %v516_v43, 0.0  ;;  %v311_v37 = vsel %vm8220_vm3, 0, %v310_v32 }
  0x8a   : > { %v795_v29 = vor.u32 %v793_v8, %v792_v36  ;;  %v797_v22 = vrot.slane %v792_v36, 4  ;;  %v8645_v35 = vsel %vm8619_vm14, %v6521_v11, %v3834_v21  ;;  %v3836_v4 = vrot.slane %v3834_v21, 4  ;;  %312 = vst [vmem:[#allocation2 + $0x78] sm:$0x1] %v311_v37 }
  0x8b   : > { %v1035_v33 = vsel %vm8299_vm10, %v787_v23, %v1034_v25  ;;  %v549_v12 = vmax.f32 %v517_v13, 0.0  ;;  %v8653_v62 = vsel %vm8619_vm14, %v6522_v17, %v3841_v30  ;;  %v8667_v30 = vpack.c.bf16 %v548_v42, %v548_v42 }
  0x8c   : > { %v796_v60 = vsel %vm8308_vm11, %v788_v27, %v795_v29  ;;  %1036 = vst [vmem:[#allocation2 + $0x60] sm:$0xf] %v1035_v33  ;;  %v1039_v44 = vsel %vm8220_vm3, %v797_v22, %v1038_v10  ;;  %v8663_v45 = vsel %vm8619_vm14, %v3836_v4, %v3837_v55  ;;  %v6554_v61 = vcombine.low %v8653_v62, %v8638_v19  ;;  %v7949_v19 = vld [vmem:[%s10085_s3 + $0x190] sm:$0xff]  }
  0x8d   : > { %v1111_v26 = vld [vmem:[#allocation2 + $0x54] sm:$0xf]  ;;  %1037 = vst [vmem:[#allocation2 + $0x64] sm:$0xf] %v796_v60  ;;  %1040 = vst [vmem:[#allocation2 + $0x68] sm:$0x1] %v1039_v44  ;;  %v8669_v48 = vpack.c.bf16 %v549_v12, %v549_v12  ;;  %v6553_v49 = vcombine.low %v8645_v35, %v8663_v45  ;;  %v6851_v51 = vunpack.c.l.bf16 %v6965_v31  ;;  %v6852_v59 = vunpack.c.h.bf16 %v6965_v31 }
  0x8e   : > { %v3032_v46 = vld [vmem:[#allocation2 + $0x54] sm:$0xf]  ;;  %v1112_v40 = vld [vmem:[#allocation2 + $0x58] sm:$0xf]  ;;  %v1152_v55 = vld [vmem:[#allocation2 + $0x5c] sm:$0x1] }
  0x8f   : > { %v1333_v50 = vshrl.u32 %v1111_v26, 16  ;;  %v1336_v52 = vshll.u32 %v1111_v26, 16  ;;  %v1342_v54 = vshll.u32 %v1112_v40, 16  ;;  %v1346_v41 = vshrl.u32 %v1112_v40, 16  ;;  %v8675_v15 = vld [vmem:[#allocation2 + $0x58] sm:$0xf] }
  0x90   : > { %v1352_v56 = vshll.u32 %v1152_v55, 16  ;;  %v3207_v58 = vshrl.u32 %v3032_v46, 16  ;;  %v8677_v47 = vld [vmem:[#allocation2 + $0x5c] sm:$0x1]  ;;  %v3210_v63 = vshll.u32 %v3032_v46, 16  ;;  %v3216_v5 = vshll.u32 %v8675_v15, 16 }
  0x91   : > { %v1335_v38 = vrot.slane %v1333_v50, 4  ;;  %v1338_v2 = vrot.slane %v1336_v52, 5  ;;  %v1344_v8 = vrot.slane %v1342_v54, 5  ;;  %v1348_v25 = vrot.slane %v1346_v41, 4 }
  0x92   : > { %v1354_v53 = vrot.slane %v1352_v56, 5  ;;  %v3209_v10 = vrot.slane %v3207_v58, 4  ;;  %v3212_v7 = vrot.slane %v3210_v63, 5  ;;  %v3218_v11 = vrot.slane %v3216_v5, 5 }
  0x93   : > { %v1339_v39 = vor.u32 %v1338_v2, %v1335_v38  ;;  %v3220_v36 = vshrl.u32 %v8675_v15, 16  ;;  %v1349_v16 = vor.u32 %v1348_v25, %v1344_v8  ;;  %v3226_v21 = vshll.u32 %v8677_v47, 16  ;;  %v3035_v17 = vld [vmem:[#allocation2 + $0x60] sm:$0xf] }
  0x94   : > { %v799_v32 = vshrl.u32 %v8667_v30, 16  ;;  %v8684_v23 = vmul.f32 %v8535_v57, %v6851_v51  ;;  %v3213_v43 = vor.u32 %v3212_v7, %v3209_v10  ;;  %v8686_v31 = vld [vmem:[#allocation2 + $0x64] sm:$0xf]  ;;  %v8689_v29 = vmul.f32 %v8535_v57, %v6852_v59  ;;  %v8693_v26 = vld [vmem:[#allocation2 + $0x68] sm:$0x1] }
  0x95   : > { %v1340_v27 = vrot.slane %v1339_v39, 4  ;;  %v3222_v13 = vrot.slane %v3220_v36, 4  ;;  %v1350_v22 = vrot.slane %v1349_v16, 4  ;;  %v3228_v4 = vrot.slane %v3226_v21, 5  ;;  %v1113_v37 = vld [vmem:[#allocation2 + $0x60] sm:$0xf] }
  0x96   : > { %v3231_v33 = vshrl.u32 %v3035_v17, 16  ;;  %v3234_v42 = vshll.u32 %v3035_v17, 16  ;;  %v3214_v60 = vrot.slane %v3213_v43, 4  ;;  %v3240_v46 = vshll.u32 %v8686_v31, 16  ;;  %v1114_v51 = vld [vmem:[#allocation2 + $0x64] sm:$0xf] }
  0x97   : > { %v1345_v12 = vsel %vm8286_vm9, %v1340_v27, %v1344_v8  ;;  %v3223_v44 = vor.u32 %v3222_v13, %v3218_v11  ;;  %v1355_v40 = vsel %vm8286_vm9, %v1350_v22, %v1354_v53  ;;  %v3244_v52 = vshrl.u32 %v8686_v31, 16  ;;  %v1153_v58 = vld [vmem:[#allocation2 + $0x68] sm:$0x1]  ;;  %v366_v43 = vld [vmem:[#allocation2 + $0x80] sm:$0x1] }
  0x98   : > { %v3233_v55 = vrot.slane %v3231_v33, 4  ;;  %v3236_v50 = vrot.slane %v3234_v42, 5  ;;  %v6344_v59 = vcombine.low %v1345_v12, %v1355_v40  ;;  %v3219_v54 = vsel %vm8286_vm9, %v3214_v60, %v3218_v11  ;;  %v1041_v42 = vld [vmem:[#allocation2 + $0x6c] sm:$0xf]  ;;  %v313_v12 = vld [vmem:[#allocation2 + $0x84] sm:$0x1] }
  0x99   : > { %v3224_v41 = vrot.slane %v3223_v44, 4  ;;  %v3242_v56 = vrot.slane %v3240_v46, 5  ;;  %v3246_v2 = vrot.slane %v3244_v52, 4  ;;  %v3250_v63 = vshll.u32 %v8693_v26, 16 }
  0x9a   : > { %v3237_v38 = vor.u32 %v3236_v50, %v3233_v55  ;;  %v1357_v5 = vshrl.u32 %v1113_v37, 16  ;;  %7232 = vmatmul.mubr.bf16.gmra.mrb[12].mxu1 %v6344_v59  ;;  %v1360_v25 = vshll.u32 %v1113_v37, 16  ;;  %v1366_v53 = vshll.u32 %v1114_v51, 16  ;;  %v6966_v59 = vld [vmem:[%s8217_s28 + $0x50] sm:$0xff]  }
  0x9b   : > { %v3229_v8 = vsel %vm8286_vm9, %v3224_v41, %v3228_v4  ;;  %v1370_v10 = vshrl.u32 %v1114_v51, 16  ;;  %v3247_v36 = vor.u32 %v3246_v2, %v3242_v56  ;;  %v3252_v16 = vrot.slane %v3250_v63, 5  ;;  %v369_v51 = vld [vmem:[#allocation2 + $0x8c] sm:$0x1] }
  0x9c   : > { %v6503_v39 = vcombine.low %v3219_v54, %v3229_v8  ;;  %v3238_v7 = vrot.slane %v3237_v38, 4  ;;  %v1359_v11 = vrot.slane %v1357_v5, 4  ;;  %v1362_v21 = vrot.slane %v1360_v25, 5  ;;  %v3770_v38 = vld [vmem:[#allocation2 + $0x24] sm:$0xe] }
  0x9d   : > { %v1368_v17 = vrot.slane %v1366_v53, 5  ;;  %v1372_v27 = vrot.slane %v1370_v10, 4  ;;  %v3248_v22 = vrot.slane %v3247_v36, 4  ;;  %v1376_v33 = vshll.u32 %v1153_v58, 16  ;;  %v1045_v58 = vld [vmem:[#allocation2 + $0x74] sm:$0x1] }
  0x9e   : > { %7423 = vmatprep.mubr.bf16.mxu0 %v6503_v39  ;;  %v3243_v13 = vsel %vm8286_vm9, %v3238_v7, %v3242_v56  ;;  %v801_v4 = vrot.slane %v799_v32, 7  ;;  %v1363_v60 = vor.u32 %v1362_v21, %v1359_v11  ;;  %v802_v46 = vshll.u32 %v8667_v30, 16  ;;  %v8731_v21 = vld [vmem:[#allocation2 + $0x30] sm:$0xe] }
  0x9f   : > { %v1373_v44 = vor.u32 %v1372_v27, %v1368_v17  ;;  %v807_v37 = vshrl.u32 %v8669_v48, 16  ;;  %v3253_v40 = vsel %vm8286_vm9, %v3248_v22, %v3252_v16  ;;  %v1378_v55 = vrot.slane %v1376_v33, 5  ;;  %v8039_v22 = vld [vmem:[#allocation2 + $0x28] sm:$0xf] }
  0xa0   : > { %v805_v50 = vrot.slane %v801_v4, 4  ;;  %v810_v52 = vshll.u32 %v8669_v48, 16  ;;  %v6504_v54 = vcombine.low %v3243_v13, %v3253_v40  ;;  %v1364_v41 = vrot.slane %v1363_v60, 4  ;;  %v8040_v60 = vld [vmem:[#allocation2 + $0x2c] sm:$0x1] }
  0xa1   : > { %v1374_v32 = vrot.slane %v1373_v44, 4  ;;  %v804_v56 = vor.u32 %v802_v46, %v801_v4  ;;  %v809_v2 = vrot.slane %v807_v37, 7  ;;  %v367_v30 = vsel %vm8227_vm4, 0, %v366_v43  ;;  %v7947_v4 = vld [vmem:[%s10085_s3 + $0x188] sm:$0xff]  }
  0xa2   : > { %v518_v63 = vadd.f32 %v8551_v34, %v8684_v23  ;;  %v519_v5 = vadd.f32 %v8551_v34, %v8689_v29  ;;  %7424 = vmatmul.mubr.bf16.gmra.mrb[12].mxu0 %v6504_v54  ;;  %v1369_v48 = vsel %vm8286_vm9, %v1364_v41, %v1368_v17  ;;  %368 = vst [vmem:[#allocation2 + $0x80] sm:$0x1] %v367_v30  ;;  %v314_v53 = vsel %vm8220_vm3, 0, %v313_v12 }
  0xa3   : > { %v1379_v8 = vsel %vm8286_vm9, %v1374_v32, %v1378_v55  ;;  %v1042_v25 = vsel %vm8299_vm10, %v804_v56, %v1041_v42  ;;  %v812_v39 = vor.u32 %v810_v52, %v809_v2  ;;  %v814_v23 = vrot.slane %v809_v2, 4  ;;  %7459 = vmatprep.mubr.bf16.mxu0 %v6553_v49  ;;  %315 = vst [vmem:[#allocation2 + $0x84] sm:$0x1] %v314_v53 }
  0xa4   : > { %v6345_v10 = vcombine.low %v1369_v48, %v1379_v8  ;;  %1043 = vst [vmem:[#allocation2 + $0x6c] sm:$0xf] %v1042_v25  ;;  %v550_v29 = vmax.f32 %v518_v63, 0.0  ;;  %v551_v7 = vmax.f32 %v519_v5, 0.0  ;;  %v370_v36 = vsel %vm8227_vm4, 0, %v369_v51 }
  0xa5   : > { %v6855_v16 = vunpack.c.l.bf16 %v6966_v59  ;;  %v6856_v11 = vunpack.c.h.bf16 %v6966_v59  ;;  %v813_v17 = vsel %vm8308_vm11, %v805_v50, %v812_v39  ;;  %v1046_v27 = vsel %vm8220_vm3, %v814_v23, %v1045_v58  ;;  %371 = vst [vmem:[#allocation2 + $0x8c] sm:$0x1] %v370_v36  ;;  %v1048_v51 = vld [vmem:[#allocation2 + $0x78] sm:$0xf] }
  0xa6   : > { %7235 = vmatprep.mubr.bf16.mxu1 %v6345_v10  ;;  %v6767_v43 = vpack.c.bf16 %v550_v29, %v550_v29  ;;  %v6523_v35 = vrot.slane %v3770_v38, 9  ;;  %1044 = vst [vmem:[#allocation2 + $0x70] sm:$0xf] %v813_v17  ;;  %1047 = vst [vmem:[#allocation2 + $0x74] sm:$0x1] %v1046_v27  ;;  %v6768_v45 = vpack.c.bf16 %v551_v7, %v551_v7  ;;  %v3848_v33 = vrot.slane %v8039_v22, 5 }
  0xa7   : > { %v482_v49 = vmul.f32 %v8535_v57, %v6855_v16  ;;  %v483_v13 = vmul.f32 %v8535_v57, %v6856_v11  ;;  %v3851_v44 = vrot.slane %v8040_v60, 5  ;;  %v6524_v46 = vrot.slane %v8731_v21, 9 }
  0xa8   : > { %v816_v42 = vshrl.u32 %v6767_v43, 16  ;;  %v819_v12 = vshll.u32 %v6767_v43, 16  ;;  %v824_v37 = vshrl.u32 %v6768_v45, 16  ;;  %v827_v40 = vshll.u32 %v6768_v45, 16  ;;  %v7951_v45 = vld [vmem:[%s10085_s3 + $0x198] sm:$0xff]  }
  0xa9   : > { %v520_v55 = vadd.f32 %v8551_v34, %v482_v49  ;;  %v521_v50 = vadd.f32 %v8551_v34, %v483_v13  ;;  %v3849_v59 = vsel %vm8619_vm14, %v6523_v35, %v3848_v33  ;;  %v3850_v54 = vrot.slane %v3848_v33, 4  ;;  %v1052_v53 = vld [vmem:[#allocation2 + $0x80] sm:$0x1]  ;;  %v316_v35 = vld [vmem:[#allocation2 + $0x90] sm:$0x1] }
  0xaa   : > { %v818_v52 = vrot.slane %v816_v42, 7  ;;  %v3855_v41 = vrot.slane %v8478_v6, 5  ;;  %7460 = vmatmul.mubr.bf16.vlgmr.msra.gmra.mrb[0].mxu0 %v6554_v61  ;;  %v826_v56 = vrot.slane %v824_v37, 7  ;;  %v3858_v2 = vrot.slane %v8483_v9, 5  ;;  %v1055_v42 = vld [vmem:[#allocation2 + $0x84] sm:$0xf] }
  0xab   : > { %v1115_v32 = vld [vmem:[#allocation2 + $0x6c] sm:$0xf]  ;;  %v552_v58 = vmax.f32 %v520_v55, 0.0  ;;  %v553_v38 = vmax.f32 %v521_v50, 0.0  ;;  %7492 = vmatpush3.bf16.msra.mxu0 %v8506_v3  ;;  %v3852_v3 = vsel %vm8619_vm14, %v3850_v54, %v3851_v44  ;;  %v6967_v55 = vld [vmem:[%s8217_s28 + $0x58] sm:$0xff]  }
  0xac   : > { %v1381_v30 = vshrl.u32 %v1115_v32, 16  ;;  %v1384_v63 = vshll.u32 %v1115_v32, 16  ;;  %v821_v5 = vor.u32 %v819_v12, %v818_v52  ;;  %v822_v48 = vrot.slane %v818_v52, 4  ;;  %7493 = vmatprep.subr.bf16.mxu0 %v7947_v4  ;;  %v372_v12 = vld [vmem:[#allocation2 + $0x98] sm:$0x1] }
  0xad   : > { %v829_v8 = vor.u32 %v827_v40, %v826_v56  ;;  %v831_v25 = vrot.slane %v826_v56, 4  ;;  %v6769_v6 = vpack.c.bf16 %v552_v58, %v552_v58  ;;  %v6770_v10 = vpack.c.bf16 %v553_v38, %v553_v38  ;;  %v1116_v62 = vld [vmem:[#allocation2 + $0x70] sm:$0xf]  ;;  %v1154_v61 = vld [vmem:[#allocation2 + $0x74] sm:$0x1] }
  0xae   : > { %v1383_v39 = vrot.slane %v1381_v30, 4  ;;  %v1386_v9 = vrot.slane %v1384_v63, 5  ;;  %v1049_v23 = vsel %vm8299_vm10, %v821_v5, %v1048_v51  ;;  %v1390_v29 = vshll.u32 %v1116_v62, 16  ;;  %v1059_v63 = vld [vmem:[#allocation2 + $0x8c] sm:$0x1] }
  0xaf   : > { %v1394_v7 = vshrl.u32 %v1116_v62, 16  ;;  %v1400_v36 = vshll.u32 %v1154_v61, 16  ;;  %v830_v16 = vsel %vm8308_vm11, %v822_v48, %v829_v8  ;;  %1050 = vst [vmem:[#allocation2 + $0x78] sm:$0xf] %v1049_v23  ;;  %v1053_v17 = vsel %vm8220_vm3, %v831_v25, %v1052_v53  ;;  %7494 = vmatpush3.bf16.msra.mxu0 %v7947_v4  ;;  %v319_v25 = vld [vmem:[#allocation2 + $0x9c] sm:$0x1] }
  0xb0   : > { %v1387_v11 = vor.u32 %v1386_v9, %v1383_v39  ;;  %1051 = vst [vmem:[#allocation2 + $0x7c] sm:$0xf] %v830_v16  ;;  %v833_v27 = vshrl.u32 %v6769_v6, 16  ;;  %v836_v43 = vshll.u32 %v6769_v6, 16  ;;  %v1392_v49 = vrot.slane %v1390_v29, 5  ;;  %7495 = vmatprep.subr.bf16.mxu0 %v7949_v19  ;;  %v7955_v53 = vld [vmem:[%s10085_s3 + $0x1a0] sm:$0xff]  }
  0xb1   : > { %v1396_v13 = vrot.slane %v1394_v7, 4  ;;  %v1402_v22 = vrot.slane %v1400_v36, 5  ;;  %1054 = vst [vmem:[#allocation2 + $0x80] sm:$0x1] %v1053_v17  ;;  %v841_v33 = vshrl.u32 %v6770_v10, 16  ;;  %v844_v37 = vshll.u32 %v6770_v10, 16 }
  0xb2   : > { %v1388_v60 = vrot.slane %v1387_v11, 4  ;;  %v835_v44 = vrot.slane %v833_v27, 7  ;;  %v6555_v40 = vcombine.low %v3849_v59, %v3852_v3  ;;  %v3856_v52 = vsel %vm8619_vm14, %v6524_v46, %v3855_v41  ;;  %v375_v61 = vld [vmem:[#allocation2 + $0xa4] sm:$0x1]  ;;  %v8791_v7 = vld [vmem:[#allocation2 + $0x3c] sm:$0xe] }
  0xb3   : > { %v1397_v50 = vor.u32 %v1396_v13, %v1392_v49  ;;  %v843_v4 = vrot.slane %v841_v33, 7  ;;  %v3857_v51 = vrot.slane %v3855_v41, 4  ;;  %v317_v58 = vsel %vm8220_vm3, 0, %v316_v35  ;;  %7496 = vmatpush3.bf16.msra.mxu0 %v7949_v19  ;;  %v6968_v27 = vld [vmem:[%s8217_s28 + $0x60] sm:$0xff]  }
  0xb4   : > { %v1393_v54 = vsel %vm8286_vm9, %v1388_v60, %v1392_v49  ;;  %v838_v32 = vor.u32 %v836_v43, %v835_v44  ;;  %v839_v56 = vrot.slane %v835_v44, 4  ;;  %7463 = vmatprep.mubr.bf16.mxu0 %v6555_v40  ;;  %318 = vst [vmem:[#allocation2 + $0x90] sm:$0x1] %v317_v58  ;;  %7497 = vmatprep.subr.bf16.mxu0 %v7951_v45  ;;  %v373_v48 = vsel %vm8227_vm4, 0, %v372_v12 }
  0xb5   : > { %v1398_v59 = vrot.slane %v1397_v50, 4  ;;  %v846_v38 = vor.u32 %v844_v37, %v843_v4  ;;  %v848_v30 = vrot.slane %v843_v4, 4  ;;  %v3859_v21 = vsel %vm8619_vm14, %v3857_v51, %v3858_v2  ;;  %374 = vst [vmem:[#allocation2 + $0x98] sm:$0x1] %v373_v48 }
  0xb6   : > { %v1117_v46 = vld [vmem:[#allocation2 + $0x78] sm:$0xf]  ;;  %v1056_v41 = vsel %vm8299_vm10, %v838_v32, %v1055_v42  ;;  %v6556_v5 = vcombine.low %v3856_v52, %v3859_v21  ;;  %v6859_v8 = vunpack.c.l.bf16 %v6967_v55  ;;  %v6860_v17 = vunpack.c.h.bf16 %v6967_v55  ;;  %v8810_v32 = vld [vmem:[%s10082_s0] ss:$0 sm:$0xff] }
  0xb7   : > { %v1403_v6 = vsel %vm8286_vm9, %v1398_v59, %v1402_v22  ;;  %v1118_v2 = vld [vmem:[#allocation2 + $0x7c] sm:$0xf]  ;;  %v1405_v10 = vshrl.u32 %v1117_v46, 16  ;;  %v1408_v19 = vshll.u32 %v1117_v46, 16  ;;  %v847_v62 = vsel %vm8308_vm11, %v839_v56, %v846_v38  ;;  %1057 = vst [vmem:[#allocation2 + $0x84] sm:$0xf] %v1056_v41  ;;  %7498 = vmatpush3.bf16.msra.mxu0 %v7951_v45 }
  0xb8   : > { %v6346_v39 = vcombine.low %v1393_v54, %v1403_v6  ;;  %v1155_v9 = vld [vmem:[#allocation2 + $0x80] sm:$0x1]  ;;  %v1414_v23 = vshll.u32 %v1118_v2, 16  ;;  %v1418_v3 = vshrl.u32 %v1118_v2, 16  ;;  %1058 = vst [vmem:[#allocation2 + $0x88] sm:$0xf] %v847_v62  ;;  %v1060_v29 = vsel %vm8220_vm3, %v848_v30, %v1059_v63  ;;  %7464 = vmatmul.mubr.bf16.gmra.mrb[4].mxu0 %v6556_v5  ;;  %7499 = vmatprep.subr.bf16.mxu0 %v7955_v53 }
  0xb9   : > { %v1407_v36 = vrot.slane %v1405_v10, 4  ;;  %v1410_v16 = vrot.slane %v1408_v19, 5  ;;  %v1424_v11 = vshll.u32 %v1155_v9, 16  ;;  %1061 = vst [vmem:[#allocation2 + $0x8c] sm:$0x1] %v1060_v29  ;;  %v484_v49 = vmul.f32 %v8535_v57, %v6859_v8  ;;  %v7959_v22 = vld [vmem:[%s10085_s3 + $0x1a8] sm:$0xff]  }
  0xba   : > { %7236 = vmatmul.mubr.bf16.gmra.mrb[16].mxu1 %v6346_v39  ;;  %v1416_v43 = vrot.slane %v1414_v23, 5  ;;  %v1420_v35 = vrot.slane %v1418_v3, 4  ;;  %v320_v13 = vsel %vm8220_vm3, 0, %v319_v25  ;;  %v485_v12 = vmul.f32 %v8535_v57, %v6860_v17  ;;  %v8827_v3 = vld [vmem:[%s10083_s1] ss:$0 sm:$0xff] }
  0xbb   : > { %v1411_v33 = vor.u32 %v1410_v16, %v1407_v36  ;;  %v1426_v42 = vrot.slane %v1424_v11, 5  ;;  %321 = vst [vmem:[#allocation2 + $0x9c] sm:$0x1] %v320_v13  ;;  %v376_v45 = vsel %vm8227_vm4, 0, %v375_v61  ;;  %v522_v44 = vadd.f32 %v8551_v34, %v484_v49  ;;  %7500 = vmatpush3.bf16.msra.mxu0 %v7955_v53  ;;  %v7967_v61 = vld [vmem:[%s10085_s3 + $0x1b8] sm:$0xff]  }
  0xbc   : > { %v1421_v60 = vor.u32 %v1420_v35, %v1416_v43  ;;  %377 = vst [vmem:[#allocation2 + $0xa4] sm:$0x1] %v376_v45  ;;  %v6863_v37 = vunpack.c.l.bf16 %v6968_v27  ;;  %v6864_v40 = vunpack.c.h.bf16 %v6968_v27  ;;  %v523_v50 = vadd.f32 %v8551_v34, %v485_v12  ;;  %7501 = vmatprep.subr.bf16.mxu0 %v7959_v22  ;;  %v7963_v34 = vld [vmem:[%s10085_s3 + $0x1b0] sm:$0xff]   ;;  %v3773_v13 = vld [vmem:[#allocation2 + $0x48] sm:$0xe]  ;;  %v8838_v45 = vld [vmem:[%s10085_s3 + $0x1c0] sm:$0xff]  }
  0xbd   : > { %v1412_v55 = vrot.slane %v1411_v33, 4  ;;  %v6525_v4 = vrot.slane %v8791_v7, 9  ;;  %v3862_v52 = vrot.slane %v8580_v28, 5  ;;  %v554_v54 = vmax.f32 %v522_v44, 0.0  ;;  %v1062_v27 = vld [vmem:[#allocation2 + $0x90] sm:$0xf] }
  0xbe   : > { %v1422_v51 = vrot.slane %v1421_v60, 4  ;;  %v1119_v57 = vld [vmem:[#allocation2 + $0x84] sm:$0xf]  ;;  %v486_v56 = vmul.f32 %v8810_v32, %v6863_v37  ;;  %v487_v58 = vmul.f32 %v8810_v32, %v6864_v40  ;;  %v555_v63 = vmax.f32 %v523_v50, 0.0  ;;  %v1066_v44 = vld [vmem:[#allocation2 + $0x98] sm:$0x1] }
  0xbf   : > { %v1417_v28 = vsel %vm8286_vm9, %v1412_v55, %v1416_v43  ;;  %v1120_v59 = vld [vmem:[#allocation2 + $0x88] sm:$0xf]  ;;  %v1429_v38 = vshrl.u32 %v1119_v57, 16  ;;  %v1432_v30 = vshll.u32 %v1119_v57, 16  ;;  %v6771_v48 = vpack.c.bf16 %v554_v54, %v554_v54  ;;  %7502 = vmatpush3.bf16.msra.mxu0 %v7959_v22 }
  0xc0   : > { %v1427_v21 = vsel %vm8286_vm9, %v1422_v51, %v1426_v42  ;;  %v1156_v46 = vld [vmem:[#allocation2 + $0x8c] sm:$0x1]  ;;  %v1438_v41 = vshll.u32 %v1120_v59, 16  ;;  %v1442_v5 = vshrl.u32 %v1120_v59, 16  ;;  %v6772_v19 = vpack.c.bf16 %v555_v63, %v555_v63  ;;  %7503 = vmatprep.subr.bf16.mxu0 %v7963_v34  ;;  %v378_v59 = vld [vmem:[#allocation2 + $0xb0] sm:$0x1] }
  0xc1   : > { %v6347_v8 = vcombine.low %v1417_v28, %v1427_v21  ;;  %v1431_v25 = vrot.slane %v1429_v38, 4  ;;  %v1434_v53 = vrot.slane %v1432_v30, 5  ;;  %v1448_v6 = vshll.u32 %v1156_v46, 16  ;;  %v322_v28 = vld [vmem:[#allocation2 + $0xa8] sm:$0x1] }
  0xc2   : > { %v1440_v2 = vrot.slane %v1438_v41, 5  ;;  %v1444_v10 = vrot.slane %v1442_v5, 4  ;;  %v850_v62 = vshrl.u32 %v6771_v48, 16  ;;  %v853_v23 = vshll.u32 %v6771_v48, 16  ;;  %v6969_v38 = vld [vmem:[%s8217_s28 + $0x68] sm:$0xff]  }
  0xc3   : > { %7239 = vmatprep.mubr.bf16.mxu1 %v6347_v8  ;;  %v1435_v39 = vor.u32 %v1434_v53, %v1431_v25  ;;  %v1450_v9 = vrot.slane %v1448_v6, 5  ;;  %v524_v29 = vadd.f32 %v8827_v3, %v486_v56  ;;  %v858_v16 = vshrl.u32 %v6772_v19, 16  ;;  %7504 = vmatpush3.bf16.msra.mxu0 %v7963_v34  ;;  %v1069_v63 = vld [vmem:[#allocation2 + $0x9c] sm:$0xf]  ;;  %v8043_v21 = vld [vmem:[#allocation2 + $0x44] sm:$0x1] }
  0xc4   : > { %v1445_v7 = vor.u32 %v1444_v10, %v1440_v2  ;;  %v852_v36 = vrot.slane %v850_v62, 7  ;;  %v861_v11 = vshll.u32 %v6772_v19, 16  ;;  %v525_v43 = vadd.f32 %v8827_v3, %v487_v58  ;;  %7505 = vmatprep.subr.bf16.mxu0 %v7967_v61  ;;  %v325_v5 = vld [vmem:[#allocation2 + $0xb4] sm:$0x1]  ;;  %v8044_v53 = vld [vmem:[#allocation2 + $0x4c] sm:$0xf] }
  0xc5   : > { %v1436_v17 = vrot.slane %v1435_v39, 4  ;;  %v556_v35 = vmax.f32 %v524_v29, 0.0  ;;  %v8833_v49 = vsel %vm8619_vm14, %v6525_v4, %v3862_v52  ;;  %v860_v12 = vrot.slane %v858_v16, 7  ;;  %v8045_v19 = vld [vmem:[#allocation2 + $0x50] sm:$0x1] }
  0xc6   : > { %v1446_v22 = vrot.slane %v1445_v7, 4  ;;  %v855_v33 = vor.u32 %v853_v23, %v852_v36  ;;  %v856_v42 = vrot.slane %v852_v36, 4  ;;  %v557_v37 = vmax.f32 %v525_v43, 0.0  ;;  %v1073_v7 = vld [vmem:[#allocation2 + $0xa4] sm:$0x1]  ;;  %v6970_v43 = vld [vmem:[%s8217_s28 + $0x70] sm:$0xff]  }
  0xc7   : > { %v1441_v60 = vsel %vm8286_vm9, %v1436_v17, %v1440_v2  ;;  %v6773_v40 = vpack.c.bf16 %v556_v35, %v556_v35  ;;  %v3864_v55 = vrot.slane %v3862_v52, 4  ;;  %v863_v4 = vor.u32 %v861_v11, %v860_v12  ;;  %7506 = vmatpush3.bf16.msra.mxu0 %v7967_v61  ;;  %v381_v2 = vld [vmem:[#allocation2 + $0xbc] sm:$0x1] }
  0xc8   : > { %v1451_v50 = vsel %vm8286_vm9, %v1446_v22, %v1450_v9  ;;  %v865_v51 = vrot.slane %v860_v12, 4  ;;  %v1063_v57 = vsel %vm8299_vm10, %v855_v33, %v1062_v27  ;;  %v6774_v56 = vpack.c.bf16 %v557_v37, %v557_v37  ;;  %7539 = vmatprep.subr.bf16.mxu0 %v8838_v45 }
  0xc9   : > { %v6348_v54 = vcombine.low %v1441_v60, %v1451_v50  ;;  %1064 = vst [vmem:[#allocation2 + $0x90] sm:$0xf] %v1063_v57  ;;  %v867_v58 = vshrl.u32 %v6773_v40, 16  ;;  %v870_v34 = vshll.u32 %v6773_v40, 16  ;;  %v864_v52 = vsel %vm8308_vm11, %v856_v42, %v863_v4 }
  0xca   : > { %v1067_v30 = vsel %vm8220_vm3, %v865_v51, %v1066_v44  ;;  %v3865_v46 = vrot.slane %v8043_v21, 5  ;;  %v6526_v41 = vrot.slane %v3773_v13, 9  ;;  %1065 = vst [vmem:[#allocation2 + $0x94] sm:$0xf] %v864_v52  ;;  %v875_v8 = vshrl.u32 %v6774_v56, 16 }
  0xcb   : > { %7240 = vmatmul.mubr.bf16.gmra.mrb[20].mxu1 %v6348_v54  ;;  %1068 = vst [vmem:[#allocation2 + $0x98] sm:$0x1] %v1067_v30  ;;  %v869_v48 = vrot.slane %v867_v58, 7  ;;  %v878_v25 = vshll.u32 %v6774_v56, 16  ;;  %v3869_v6 = vrot.slane %v8044_v53, 5  ;;  %v3872_v62 = vrot.slane %v8045_v19, 5 }
  0xcc   : > { %v3866_v10 = vsel %vm8619_vm14, %v3864_v55, %v3865_v46  ;;  %v323_v61 = vsel %vm8220_vm3, 0, %v322_v28  ;;  %v379_v39 = vsel %vm8227_vm4, 0, %v378_v59  ;;  %v877_v29 = vrot.slane %v875_v8, 7  ;;  %v3774_v46 = vld [vmem:[#allocation2 + $0x54] sm:$0xe] }
  0xcd   : > { %v872_v9 = vor.u32 %v870_v34, %v869_v48  ;;  %v873_v23 = vrot.slane %v869_v48, 4  ;;  %v6557_v36 = vcombine.low %v8833_v49, %v3866_v10  ;;  %324 = vst [vmem:[#allocation2 + $0xa8] sm:$0x1] %v323_v61  ;;  %380 = vst [vmem:[#allocation2 + $0xb0] sm:$0x1] %v379_v39  ;;  %v3870_v16 = vsel %vm8619_vm14, %v6526_v41, %v3869_v6 }
  0xce   : > { %v3871_v11 = vrot.slane %v3869_v6, 4  ;;  %v6867_v17 = vunpack.c.l.bf16 %v6969_v38  ;;  %v6868_v27 = vunpack.c.h.bf16 %v6969_v38  ;;  %v880_v35 = vor.u32 %v878_v25, %v877_v29 }
  0xcf   : > { %v882_v13 = vrot.slane %v877_v29, 4  ;;  %v1070_v22 = vsel %vm8299_vm10, %v872_v9, %v1069_v63  ;;  %7467 = vmatprep.mubr.bf16.mxu0 %v6557_v36  ;;  %v326_v33 = vsel %vm8220_vm3, 0, %v325_v5  ;;  %v382_v44 = vsel %vm8227_vm4, 0, %v381_v2 }
  0xd0   : > { %v8866_v42 = vld [vmem:[#allocation2 + $0x90] sm:$0xf]  ;;  %1071 = vst [vmem:[#allocation2 + $0x9c] sm:$0xf] %v1070_v22  ;;  %v3873_v49 = vsel %vm8619_vm14, %v3871_v11, %v3872_v62  ;;  %v488_v12 = vmul.f32 %v8810_v32, %v6867_v17  ;;  %v489_v60 = vmul.f32 %v8810_v32, %v6868_v27  ;;  %327 = vst [vmem:[#allocation2 + $0xb4] sm:$0x1] %v326_v33  ;;  %v6871_v58 = vunpack.c.l.bf16 %v6970_v43 }
  0xd1   : > { %v1453_v37 = vshrl.u32 %v8866_v42, 16  ;;  %v1456_v40 = vshll.u32 %v8866_v42, 16  ;;  %v881_v55 = vsel %vm8308_vm11, %v873_v23, %v880_v35  ;;  %v1074_v50 = vsel %vm8220_vm3, %v882_v13, %v1073_v7  ;;  %383 = vst [vmem:[#allocation2 + $0xbc] sm:$0x1] %v382_v44  ;;  %v8880_v4 = vld [vmem:[#allocation2 + $0x94] sm:$0xf] }
  0xd2   : > { %v1157_v51 = vld [vmem:[#allocation2 + $0x98] sm:$0x1]  ;;  %1072 = vst [vmem:[#allocation2 + $0xa0] sm:$0xf] %v881_v55  ;;  %1075 = vst [vmem:[#allocation2 + $0xa4] sm:$0x1] %v1074_v50  ;;  %v6558_v57 = vcombine.low %v3870_v16, %v3873_v49  ;;  %v526_v54 = vadd.f32 %v8827_v3, %v488_v12  ;;  %v527_v56 = vadd.f32 %v8827_v3, %v489_v60  ;;  %v6872_v21 = vunpack.c.h.bf16 %v6970_v43 }
  0xd3   : > { %v1455_v34 = vrot.slane %v1453_v37, 4  ;;  %v1458_v28 = vrot.slane %v1456_v40, 5  ;;  %v1462_v59 = vshll.u32 %v8880_v4, 16  ;;  %v1466_v38 = vshrl.u32 %v8880_v4, 16 }
  0xd4   : > { %v1472_v52 = vshll.u32 %v1157_v51, 16  ;;  %7468 = vmatmul.mubr.bf16.gmra.mrb[8].mxu0 %v6558_v57  ;;  %v558_v30 = vmax.f32 %v526_v54, 0.0  ;;  %v559_v63 = vmax.f32 %v527_v56, 0.0  ;;  %v490_v8 = vmul.f32 %v8810_v32, %v6871_v58  ;;  %v1076_v37 = vld [vmem:[#allocation2 + $0xa8] sm:$0xf] }
  0xd5   : > { %v1459_v41 = vor.u32 %v1458_v28, %v1455_v34  ;;  %v1464_v5 = vrot.slane %v1462_v59, 5  ;;  %v1468_v48 = vrot.slane %v1466_v38, 4  ;;  %v491_v2 = vmul.f32 %v8810_v32, %v6872_v21  ;;  %v1080_v57 = vld [vmem:[#allocation2 + $0xb0] sm:$0x1] }
  0xd6   : > { %v1474_v25 = vrot.slane %v1472_v52, 5  ;;  %v6775_v53 = vpack.c.bf16 %v558_v30, %v558_v30  ;;  %v6776_v6 = vpack.c.bf16 %v559_v63, %v559_v63  ;;  %v528_v61 = vadd.f32 %v8827_v3, %v490_v8 }
  0xd7   : > { %v1460_v10 = vrot.slane %v1459_v41, 4  ;;  %v1469_v19 = vor.u32 %v1468_v48, %v1464_v5  ;;  %v8888_v62 = vld [vmem:[#allocation2 + $0x9c] sm:$0xf]  ;;  %v6527_v39 = vrot.slane %v3774_v46, 9  ;;  %v529_v43 = vadd.f32 %v8827_v3, %v491_v2 }
  0xd8   : > { %v1477_v9 = vshrl.u32 %v8888_v62, 16  ;;  %v1480_v23 = vshll.u32 %v8888_v62, 16  ;;  %v884_v29 = vshrl.u32 %v6775_v53, 16  ;;  %v887_v7 = vshll.u32 %v6775_v53, 16 }
  0xd9   : > { %v1465_v36 = vsel %vm8286_vm9, %v1460_v10, %v1464_v5  ;;  %v1470_v16 = vrot.slane %v1469_v19, 4  ;;  %v8895_v11 = vld [vmem:[#allocation2 + $0xa0] sm:$0xf]  ;;  %v1158_v17 = vld [vmem:[#allocation2 + $0xa4] sm:$0x1]  ;;  %v892_v27 = vshrl.u32 %v6776_v6, 16 }
  0xda   : > { %v1479_v35 = vrot.slane %v1477_v9, 4  ;;  %v1482_v13 = vrot.slane %v1480_v23, 5  ;;  %v1486_v22 = vshll.u32 %v8895_v11, 16  ;;  %v1490_v33 = vshrl.u32 %v8895_v11, 16 }
  0xdb   : > { %v1475_v49 = vsel %vm8286_vm9, %v1470_v16, %v1474_v25  ;;  %v1496_v12 = vshll.u32 %v1158_v17, 16  ;;  %v886_v60 = vrot.slane %v884_v29, 7  ;;  %v894_v44 = vrot.slane %v892_v27, 7  ;;  %v3775_v25 = vld [vmem:[#allocation2 + $0x60] sm:$0xe] }
  0xdc   : > { %v6349_v40 = vcombine.low %v1465_v36, %v1475_v49  ;;  %v1483_v55 = vor.u32 %v1482_v13, %v1479_v35  ;;  %v1488_v50 = vrot.slane %v1486_v22, 5  ;;  %v1492_v51 = vrot.slane %v1490_v33, 4  ;;  %v3776_v16 = vld [vmem:[#allocation2 + $0x6c] sm:$0xe]  ;;  %v3039_v35 = vld [vmem:[#allocation2 + $0x70] sm:$0xf] }
  0xdd   : > { %v1498_v54 = vrot.slane %v1496_v12, 5  ;;  %v889_v56 = vor.u32 %v887_v7, %v886_v60  ;;  %v890_v58 = vrot.slane %v886_v60, 4  ;;  %v895_v34 = vshll.u32 %v6776_v6, 16  ;;  %v1083_v22 = vld [vmem:[#allocation2 + $0xb4] sm:$0xf] }
  0xde   : > { %7243 = vmatprep.mubr.bf16.mxu1 %v6349_v40  ;;  %v1484_v28 = vrot.slane %v1483_v55, 4  ;;  %v1493_v59 = vor.u32 %v1492_v51, %v1488_v50  ;;  %v899_v38 = vrot.slane %v894_v44, 4  ;;  %v560_v52 = vmax.f32 %v528_v61, 0.0  ;;  %v1087_v12 = vld [vmem:[#allocation2 + $0xbc] sm:$0x1] }
  0xdf   : > { %v897_v30 = vor.u32 %v895_v34, %v894_v44  ;;  %v1077_v63 = vsel %vm8299_vm10, %v889_v56, %v1076_v37  ;;  %v561_v21 = vmax.f32 %v529_v43, 0.0  ;;  %v3876_v46 = vrot.slane %v8675_v15, 5 }
  0xe0   : > { %v1489_v41 = vsel %vm8286_vm9, %v1484_v28, %v1488_v50  ;;  %v1494_v5 = vrot.slane %v1493_v59, 4  ;;  %1078 = vst [vmem:[#allocation2 + $0xa8] sm:$0xf] %v1077_v63  ;;  %v1081_v48 = vsel %vm8220_vm3, %v899_v38, %v1080_v57  ;;  %v6777_v8 = vpack.c.bf16 %v560_v52, %v560_v52 }
  0xe1   : > { %v898_v53 = vsel %vm8308_vm11, %v890_v58, %v897_v30  ;;  %1082 = vst [vmem:[#allocation2 + $0xb0] sm:$0x1] %v1081_v48  ;;  %v6778_v6 = vpack.c.bf16 %v561_v21, %v561_v21  ;;  %v3877_v2 = vsel %vm8619_vm14, %v6527_v39, %v3876_v46  ;;  %v3878_v10 = vrot.slane %v3876_v46, 4  ;;  %v3040_v58 = vld [vmem:[#allocation2 + $0x74] sm:$0x1] }
  0xe2   : > { %v1499_v15 = vsel %vm8286_vm9, %v1494_v5, %v1498_v54  ;;  %1079 = vst [vmem:[#allocation2 + $0xac] sm:$0xf] %v898_v53  ;;  %v901_v19 = vshrl.u32 %v6777_v8, 16  ;;  %v904_v61 = vshll.u32 %v6777_v8, 16  ;;  %v3879_v9 = vrot.slane %v8677_v47, 5 }
  0xe3   : > { %v6350_v23 = vcombine.low %v1489_v41, %v1499_v15  ;;  %v909_v29 = vshrl.u32 %v6778_v6, 16  ;;  %v912_v7 = vshll.u32 %v6778_v6, 16  ;;  %v6528_v36 = vrot.slane %v3775_v25, 9  ;;  %v3777_v6 = vld [vmem:[#allocation2 + $0x78] sm:$0xe] }
  0xe4   : > { %v903_v17 = vrot.slane %v901_v19, 7  ;;  %v3880_v27 = vsel %vm8619_vm14, %v3878_v10, %v3879_v9  ;;  %v3883_v39 = vrot.slane %v8686_v31, 5  ;;  %v3886_v43 = vrot.slane %v8693_v26, 5  ;;  %v8942_v10 = vld [vmem:[#allocation2 + $0x7c] sm:$0xf] }
  0xe5   : > { %7244 = vmatmul.mubr.bf16.gmra.mrb[24].mxu1 %v6350_v23  ;;  %v911_v13 = vrot.slane %v909_v29, 7  ;;  %v6559_v33 = vcombine.low %v3877_v2, %v3880_v27  ;;  %v6529_v31 = vrot.slane %v3776_v16, 9  ;;  %v3890_v50 = vrot.slane %v3039_v35, 5  ;;  %v8944_v15 = vld [vmem:[#allocation2 + $0x80] sm:$0x1] }
  0xe6   : > { %v906_v49 = vor.u32 %v904_v61, %v903_v17  ;;  %v907_v47 = vrot.slane %v903_v17, 4  ;;  %v3884_v60 = vsel %vm8619_vm14, %v6528_v36, %v3883_v39  ;;  %v3885_v44 = vrot.slane %v3883_v39, 4  ;;  %v3045_v39 = vld [vmem:[#allocation2 + $0x88] sm:$0xf]  ;;  %v3778_v35 = vld [vmem:[#allocation2 + $0x84] sm:$0xe] }
  0xe7   : > { %v8922_v37 = vld [vmem:[#allocation2 + $0xa8] sm:$0xf]  ;;  %v914_v40 = vor.u32 %v912_v7, %v911_v13  ;;  %v916_v55 = vrot.slane %v911_v13, 4  ;;  %7471 = vmatprep.mubr.bf16.mxu0 %v6559_v33  ;;  %v3891_v41 = vsel %vm8619_vm14, %v6529_v31, %v3890_v50  ;;  %v3892_v5 = vrot.slane %v3890_v50, 4 }
  0xe8   : > { %v1159_v26 = vld [vmem:[#allocation2 + $0xb0] sm:$0x1]  ;;  %v1501_v51 = vshrl.u32 %v8922_v37, 16  ;;  %v1504_v57 = vshll.u32 %v8922_v37, 16  ;;  %v1084_v54 = vsel %vm8299_vm10, %v906_v49, %v1083_v22  ;;  %v3887_v56 = vsel %vm8619_vm14, %v3885_v44, %v3886_v43  ;;  %v3046_v43 = vld [vmem:[#allocation2 + $0x8c] sm:$0x1] }
  0xe9   : > { %v8930_v34 = vld [vmem:[#allocation2 + $0xac] sm:$0xf]  ;;  %v1520_v28 = vshll.u32 %v1159_v26, 16  ;;  %v915_v59 = vsel %vm8308_vm11, %v907_v47, %v914_v40  ;;  %1085 = vst [vmem:[#allocation2 + $0xb4] sm:$0xf] %v1084_v54  ;;  %v1088_v38 = vsel %vm8220_vm3, %v916_v55, %v1087_v12  ;;  %v6560_v52 = vcombine.low %v3884_v60, %v3887_v56 }
  0xea   : > { %v1503_v30 = vrot.slane %v1501_v51, 4  ;;  %v1506_v63 = vrot.slane %v1504_v57, 5  ;;  %v1510_v21 = vshll.u32 %v8930_v34, 16  ;;  %v1514_v46 = vshrl.u32 %v8930_v34, 16  ;;  %1086 = vst [vmem:[#allocation2 + $0xb8] sm:$0xf] %v915_v59 }
  0xeb   : > { %1089 = vst [vmem:[#allocation2 + $0xbc] sm:$0x1] %v1088_v38  ;;  %7472 = vmatmul.mubr.bf16.gmra.mrb[12].mxu0 %v6560_v52  ;;  %v3893_v48 = vrot.slane %v3040_v58, 5  ;;  %v1522_v9 = vrot.slane %v1520_v28, 5  ;;  %v6530_v29 = vrot.slane %v3777_v6, 9  ;;  %v3897_v17 = vrot.slane %v8942_v10, 5 }
  0xec   : > { %v1507_v8 = vor.u32 %v1506_v63, %v1503_v30  ;;  %v1512_v25 = vrot.slane %v1510_v21, 5  ;;  %v1516_v53 = vrot.slane %v1514_v46, 4  ;;  %v3900_v27 = vrot.slane %v8944_v15, 5  ;;  %v3779_v40 = vld [vmem:[#allocation2 + $0x90] sm:$0xe] }
  0xed   : > { %v3894_v2 = vsel %vm8619_vm14, %v3892_v5, %v3893_v48  ;;  %v3898_v26 = vsel %vm8619_vm14, %v6530_v29, %v3897_v17  ;;  %v3048_v51 = vld [vmem:[#allocation2 + $0x94] sm:$0xf]  ;;  %v3049_v57 = vld [vmem:[#allocation2 + $0x98] sm:$0x1]  ;;  %v3899_v28 = vrot.slane %v3897_v17, 4  ;;  %v6531_v38 = vrot.slane %v3778_v35, 9 }
  0xee   : > { %v1508_v19 = vrot.slane %v1507_v8, 4  ;;  %v1517_v61 = vor.u32 %v1516_v53, %v1512_v25  ;;  %v6561_v23 = vcombine.low %v3891_v41, %v3894_v2  ;;  %v3904_v52 = vrot.slane %v3045_v39, 5  ;;  %v3051_v53 = vld [vmem:[#allocation2 + $0xa0] sm:$0xf]  ;;  %v3780_v6 = vld [vmem:[#allocation2 + $0x9c] sm:$0xe] }
  0xef   : > { %v3907_v30 = vrot.slane %v3046_v43, 5  ;;  %v3901_v21 = vsel %vm8619_vm14, %v3899_v28, %v3900_v27  ;;  %v6532_v46 = vrot.slane %v3779_v40, 9  ;;  %v3911_v41 = vrot.slane %v3048_v51, 5  ;;  %v8968_v29 = vld [vmem:[#allocation2 + $0x4] sm:$0xf] }
  0xf0   : > { %v1513_v7 = vsel %vm8286_vm9, %v1508_v19, %v1512_v25  ;;  %v1518_v36 = vrot.slane %v1517_v61, 4  ;;  %v8948_v16 = vld [vmem:[#allocation2 + $0xb4] sm:$0xf]  ;;  %7475 = vmatprep.mubr.bf16.mxu0 %v6561_v23  ;;  %v6562_v48 = vcombine.low %v3898_v26, %v3901_v21  ;;  %v3905_v8 = vsel %vm8619_vm14, %v6531_v38, %v3904_v52  ;;  %v3054_v39 = vld [vmem:[#allocation2 + $0xac] sm:$0xf] }
  0xf1   : > { %v8952_v13 = vld [vmem:[#allocation2 + $0xb8] sm:$0xf]  ;;  %v1525_v33 = vshrl.u32 %v8948_v16, 16  ;;  %v1528_v49 = vshll.u32 %v8948_v16, 16  ;;  %v3906_v25 = vrot.slane %v3904_v52, 4  ;;  %v3913_v19 = vrot.slane %v3911_v41, 4 }
  0xf2   : > { %v1160_v22 = vld [vmem:[#allocation2 + $0xbc] sm:$0x1]  ;;  %v1523_v47 = vsel %vm8286_vm9, %v1518_v36, %v1522_v9  ;;  %v1534_v12 = vshll.u32 %v8952_v13, 16  ;;  %v1538_v60 = vshrl.u32 %v8952_v13, 16  ;;  %v3914_v61 = vrot.slane %v3049_v57, 5 }
  0xf3   : > { %v1544_v44 = vshll.u32 %v1160_v22, 16  ;;  %v6351_v55 = vcombine.low %v1513_v7, %v1523_v47  ;;  %v1527_v31 = vrot.slane %v1525_v33, 4  ;;  %v1530_v50 = vrot.slane %v1528_v49, 5  ;;  %v3052_v9 = vld [vmem:[#allocation2 + $0xa4] sm:$0x1]  ;;  %7476 = vmatmul.mubr.bf16.gmra.mrb[16].mxu0 %v6562_v48 }
  0xf4   : > { %v1536_v54 = vrot.slane %v1534_v12, 5  ;;  %v1540_v56 = vrot.slane %v1538_v60, 4  ;;  %v8047_v7 = vld [vmem:[#allocation2] sm:$0xf]  ;;  %v3908_v17 = vsel %vm8619_vm14, %v3906_v25, %v3907_v30  ;;  %v3912_v27 = vsel %vm8619_vm14, %v6532_v46, %v3911_v41  ;;  %v3055_v43 = vld [vmem:[#allocation2 + $0xb0] sm:$0x1] }
  0xf5   : > { %v1546_v58 = vrot.slane %v1544_v44, 5  ;;  %7247 = vmatprep.mubr.bf16.mxu1 %v6351_v55  ;;  %v1531_v59 = vor.u32 %v1530_v50, %v1527_v31  ;;  %v6361_v36 = vcombine.low %v8047_v7, %v8968_v29  ;;  %v6563_v22 = vcombine.low %v3905_v8, %v3908_v17  ;;  %v3781_v47 = vld [vmem:[#allocation2 + $0xa8] sm:$0xe]  ;;  %v3782_v12 = vld [vmem:[#allocation2 + $0xb4] sm:$0xe] }
  0xf6   : > { %v1541_v63 = vor.u32 %v1540_v56, %v1536_v54  ;;  %v3915_v33 = vsel %vm8619_vm14, %v3913_v19, %v3914_v61  ;;  %v6533_v49 = vrot.slane %v3780_v6, 9  ;;  %v3918_v44 = vrot.slane %v3051_v53, 5  ;;  %v3057_v55 = vld [vmem:[#allocation2 + $0xb8] sm:$0xf]  ;;  %v3058_v31 = vld [vmem:[#allocation2 + $0xbc] sm:$0x1] }
  0xf7   : > { %v1532_v5 = vrot.slane %v1531_v59, 4  ;;  %v3921_v40 = vrot.slane %v3052_v9, 5  ;;  %7479 = vmatprep.mubr.bf16.mxu0 %v6563_v22  ;;  %v6564_v50 = vcombine.low %v3912_v27, %v3915_v33  ;;  %v3925_v26 = vrot.slane %v3054_v39, 5  ;;  %v328_v51 = vld [vmem:[#allocation2 + $0xc0] sm:$0x1]  ;;  %v7958_v17 = vld [vmem:[%s10085_s3 + $0x88] sm:$0xff]  }
  0xf8   : > { %v1542_v2 = vrot.slane %v1541_v63, 4  ;;  %v384_v57 = vld [vmem:[#allocation2 + $0xc8] sm:$0x1]  ;;  %v3919_v56 = vsel %vm8619_vm14, %v6533_v49, %v3918_v44  ;;  %v6534_v28 = vrot.slane %v3781_v47, 9  ;;  %v3928_v59 = vrot.slane %v3055_v43, 5  ;;  %v8052_v47 = vld [vmem:[%s10085_s3 + $0x80] sm:$0xff]  }
  0xf9   : > { %v1537_v23 = vsel %vm8286_vm9, %v1532_v5, %v1536_v54  ;;  %v6971_v54 = vld [vmem:[%s8217_s28 + $0x78] sm:$0xff]   ;;  %v3927_v38 = vrot.slane %v3925_v26, 4  ;;  %v6535_v52 = vrot.slane %v3782_v12, 9  ;;  %v3932_v30 = vrot.slane %v3057_v55, 5  ;;  %v8048_v25 = vld [vmem:[#allocation2 + $0xc] sm:$0xf] }
  0xfa   : > { %v1547_v35 = vsel %vm8286_vm9, %v1542_v2, %v1546_v58  ;;  %v3920_v58 = vrot.slane %v3918_v44, 4  ;;  %v3935_v63 = vrot.slane %v3058_v31, 5  ;;  %v329_v46 = vsel %vm8220_vm3, 0, %v328_v51  ;;  %v8988_v53 = vld [vmem:[#allocation2 + $0x10] sm:$0xf] }
  0xfb   : > { %v6352_v60 = vcombine.low %v1537_v23, %v1547_v35  ;;  %v385_v41 = vsel %vm8227_vm4, 0, %v384_v57  ;;  %v6875_v5 = vunpack.c.l.bf16 %v6971_v54  ;;  %v3934_v8 = vrot.slane %v3932_v30, 4  ;;  %330 = vst [vmem:[#allocation2 + $0xc0] sm:$0x1] %v329_v46  ;;  %7480 = vmatmul.mubr.bf16.gmra.mrb[20].mxu0 %v6564_v50  ;;  %v8050_v61 = vld [vmem:[#allocation2 + $0x18] sm:$0xf] }
  0xfc   : > { %v3922_v21 = vsel %vm8619_vm14, %v3920_v58, %v3921_v40  ;;  %386 = vst [vmem:[#allocation2 + $0xc8] sm:$0x1] %v385_v41  ;;  %v6362_v6 = vcombine.low %v8048_v25, %v8988_v53  ;;  %v6876_v2 = vunpack.c.h.bf16 %v6971_v54  ;;  %v8992_v9 = vld [vmem:[#allocation2 + $0x1c] sm:$0xf]  ;;  %v3926_v7 = vsel %vm8619_vm14, %v6534_v28, %v3925_v26  ;;  %v8053_v40 = vld [vmem:[#allocation2 + $0x24] sm:$0xf] }
  0xfd   : > { %7248 = vmatmul.mubr.bf16.gmra.mrb[28].mxu1 %v6352_v60  ;;  %v6565_v48 = vcombine.low %v3919_v56, %v3922_v21  ;;  %v492_v19 = vmul.f32 %v8810_v32, %v6875_v5  ;;  %v6363_v23 = vcombine.low %v8050_v61, %v8992_v9  ;;  %v3933_v27 = vsel %vm8619_vm14, %v6535_v52, %v3932_v30  ;;  %v7962_v60 = vld [vmem:[%s10085_s3 + $0x90] sm:$0xff]   ;;  %v9015_v55 = vld [vmem:[#allocation2 + $0x28] sm:$0xf]  ;;  %v7966_v56 = vld [vmem:[%s10085_s3 + $0x98] sm:$0xff]  }
  0xfe   : > { %7267 = vmatprep.mubr.bf16.mxu1 %v6361_v36  ;;  %v3929_v36 = vsel %vm8619_vm14, %v3927_v38, %v3928_v59  ;;  %v3936_v39 = vsel %vm8619_vm14, %v3934_v8, %v3935_v63  ;;  %v493_v43 = vmul.f32 %v8810_v32, %v6876_v2  ;;  %v8055_v51 = vld [vmem:[#allocation2 + $0x30] sm:$0xf]  ;;  %v9018_v57 = vld [vmem:[#allocation2 + $0x34] sm:$0xf]  ;;  %v8057_v8 = vld [vmem:[#allocation2 + $0x3c] sm:$0xf] }
  0xff   : > { %7483 = vmatprep.mubr.bf16.mxu0 %v6565_v48  ;;  %v530_v35 = vadd.f32 %v8827_v3, %v492_v19  ;;  %v6566_v22 = vcombine.low %v3926_v7, %v3929_v36  ;;  %v6567_v12 = vcombine.low %v3933_v27, %v3936_v39  ;;  %v6365_v54 = vcombine.low %v8055_v51, %v9018_v57  ;;  %v7970_v48 = vld [vmem:[%s10085_s3 + $0xa0] sm:$0xff]   ;;  %v8059_v61 = vld [vmem:[#allocation2 + $0x48] sm:$0xf]  ;;  %v331_v7 = vld [vmem:[#allocation2 + $0xcc] sm:$0x1] }
 0x100   : > { %v531_v33 = vadd.f32 %v8827_v3, %v493_v43  ;;  %v6364_v3 = vcombine.low %v8053_v40, %v9015_v55  ;;  %v9029_v25 = vld [vmem:[#allocation2 + $0x40] sm:$0xf]  ;;  %v7976_v36 = vld [vmem:[%s10085_s3 + $0xa8] sm:$0xff]   ;;  %v332_v24 = vsel %vm8220_vm3, 0, %v331_v7  ;;  %v7982_v27 = vld [vmem:[%s10085_s3 + $0xb0] sm:$0xff]   ;;  %v3288_v40 = vshll.u32 %v8942_v10, 16 }
 0x101   : > { %v562_v49 = vmax.f32 %v530_v35, 0.0  ;;  %333 = vst [vmem:[#allocation2 + $0xcc] sm:$0x1] %v332_v24  ;;  %v8061_v43 = vld [vmem:[#allocation2 + $0x54] sm:$0xf] }
 0x102   : > { %v563_v32 = vmax.f32 %v531_v33, 0.0  ;;  %v1090_v38 = vld [vmem:[#allocation2 + $0xc0] sm:$0xf]  ;;  %v9047_v35 = vld [vmem:[#allocation2 + $0x58] sm:$0xf] }
 0x103   : > { %v6779_v44 = vpack.c.bf16 %v562_v49, %v562_v49  ;;  %7484 = vmatmul.mubr.bf16.gmra.mrb[24].mxu0 %v6566_v22  ;;  %v1094_v21 = vld [vmem:[#allocation2 + $0xc8] sm:$0x1]  ;;  %v6368_v22 = vcombine.low %v8061_v43, %v9047_v35  ;;  %v9077_v24 = vld [vmem:[#allocation2 + $0x7c] sm:$0xf]  ;;  %v2146_v43 = vld [vmem:[#allocation2 + $0x24] sm:$0xe] }
 0x104   : > { %v6780_v31 = vpack.c.bf16 %v563_v32, %v563_v32  ;;  %7487 = vmatprep.mubr.bf16.mxu0 %v6567_v12  ;;  %v8063_v12 = vld [vmem:[#allocation2 + $0x60] sm:$0xf] }
 0x105   : > { %7268 = vmatmul.mubr.bf16.vlgmr.msra.gmra.mrb[0].mxu1 %v6362_v6  ;;  %v918_v50 = vshrl.u32 %v6779_v44, 16  ;;  %v921_v26 = vshll.u32 %v6779_v44, 16  ;;  %v6366_v6 = vcombine.low %v8057_v8, %v9029_v25  ;;  %v7988_v44 = vld [vmem:[%s10085_s3 + $0xb8] sm:$0xff]  }
 0x106   : > { %7300 = vmatpush3.bf16.msra.mxu1 %v8052_v47  ;;  %7271 = vmatprep.mubr.bf16.mxu1 %v6363_v23  ;;  %v926_v28 = vshrl.u32 %v6780_v31, 16  ;;  %v929_v59 = vshll.u32 %v6780_v31, 16  ;;  %v9036_v23 = vld [vmem:[#allocation2 + $0x4c] sm:$0xf]  ;;  %v2143_v31 = vld [vmem:[#allocation2] sm:$0xe] }
 0x107   : > { %7301 = vmatprep.subr.bf16.mxu1 %v7958_v17  ;;  %v920_v58 = vrot.slane %v918_v50, 7  ;;  %v6367_v20 = vcombine.low %v8059_v61, %v9036_v23  ;;  %v2144_v50 = vld [vmem:[#allocation2 + $0xc] sm:$0xe] }
 0x108   : > { %v928_v63 = vrot.slane %v926_v28, 7  ;;  %v2210_v28 = vrot.slane %v8992_v9, 5  ;;  %v9074_v9 = vld [vmem:[#allocation2 + $0x70] sm:$0xf]  ;;  %v6386_v8 = vrot.slane %v2144_v50, 9 }
 0x109   : > { %v923_v52 = vor.u32 %v921_v26, %v920_v58  ;;  %v924_v30 = vrot.slane %v920_v58, 4  ;;  %v2203_v58 = vrot.slane %v8988_v53, 5  ;;  %v8067_v53 = vld [vmem:[#allocation2 + $0x6c] sm:$0xf] }
 0x10a   : > { %7302 = vmatpush3.bf16.msra.mxu1 %v7958_v17  ;;  %v931_v46 = vor.u32 %v929_v59, %v928_v63  ;;  %v933_v41 = vrot.slane %v928_v63, 4  ;;  %v8065_v59 = vld [vmem:[#allocation2 + $0x8] sm:$0x1]  ;;  %v2212_v61 = vrot.slane %v2210_v28, 4 }
 0x10b   : > { %7303 = vmatprep.subr.bf16.mxu1 %v7962_v60  ;;  %v1091_v5 = vsel %vm8299_vm10, %v923_v52, %v1090_v38  ;;  %v2199_v38 = vrot.slane %v8065_v59, 5  ;;  %v7971_v52 = vld [vmem:[#allocation2 + $0x18] sm:$0xff]   ;;  %v9114_v59 = vld [vmem:[#allocation2 + $0x88] sm:$0xf] }
 0x10c   : > { %1092 = vst [vmem:[#allocation2 + $0xc0] sm:$0xf] %v1091_v5  ;;  %v932_v2 = vsel %vm8308_vm11, %v924_v30, %v931_v46  ;;  %v1095_v19 = vsel %vm8220_vm3, %v933_v41, %v1094_v21  ;;  %v8066_v30 = vld [vmem:[#allocation2 + $0x14] sm:$0x1]  ;;  %v9065_v21 = vrot.slane %v3288_v40, 5  ;;  %v6370_v5 = vcombine.low %v8067_v53, %v9074_v9 }
 0x10d   : > { %7272 = vmatmul.mubr.bf16.gmra.mrb[4].mxu1 %v6364_v3  ;;  %1093 = vst [vmem:[#allocation2 + $0xc4] sm:$0xf] %v932_v2  ;;  %1096 = vst [vmem:[#allocation2 + $0xc8] sm:$0x1] %v1095_v19  ;;  %v3292_v3 = vshrl.u32 %v8942_v10, 16  ;;  %v2206_v63 = vrot.slane %v8066_v30, 5 }
 0x10e   : > { %7275 = vmatprep.mubr.bf16.mxu1 %v6365_v54  ;;  %7304 = vmatpush3.bf16.msra.mxu1 %v7962_v60  ;;  %v9050_v60 = vld [vmem:[#allocation2 + $0x64] sm:$0xf]  ;;  %v2145_v54 = vld [vmem:[#allocation2 + $0x18] sm:$0xe]  ;;  %10113 = vst [vmem:[#allocation3_spill] sm:$0xff] %v9065_v21  ;;  %v2205_v19 = vrot.slane %v2203_v58, 4 }
 0x10f   : > { %7305 = vmatprep.subr.bf16.mxu1 %v7966_v56  ;;  %v6369_v32 = vcombine.low %v8063_v12, %v9050_v60  ;;  %v9067_v46 = vrot.slane %v3292_v3, 4  ;;  %v9110_v3 = vld [vmem:[#allocation2 + $0x3c] sm:$0xe] }
 0x112   : > { %7306 = vmatpush3.bf16.msra.mxu1 %v7966_v56  ;;  %v2196_v56 = vrot.slane %v8968_v29, 5  ;;  %v9072_v29 = vld [vmem:[%s10085_s3 + $0xc0] sm:$0xff]  }
 0x113   : > { %7307 = vmatprep.subr.bf16.mxu1 %v7970_v48  ;;  %v3783_v17 = vld [vmem:[#allocation2 + $0xc0] sm:$0xe] }
 0x114   : > { %v6536_v39 = vrot.slane %v3783_v17, 9  ;;  %v3060_v33 = vld [vmem:[#allocation2 + $0xc4] sm:$0xf]  ;;  %v3061_v49 = vld [vmem:[#allocation2 + $0xc8] sm:$0x1]  ;;  %v2198_v2 = vrot.slane %v2196_v56, 4 }
 0x115   : > { %7276 = vmatmul.mubr.bf16.gmra.mrb[8].mxu1 %v6366_v6  ;;  %v3939_v47 = vrot.slane %v3060_v33, 5  ;;  %v3942_v14 = vrot.slane %v3061_v49, 5  ;;  %v6387_v6 = vrot.slane %v2145_v54, 9  ;;  %v2224_v33 = vrot.slane %v9018_v57, 5  ;;  %v2151_v49 = vld [vmem:[#allocation2 + $0x60] sm:$0xe] }
 0x116   : > { %7279 = vmatprep.mubr.bf16.mxu1 %v6367_v20  ;;  %7308 = vmatpush3.bf16.msra.mxu1 %v7970_v48  ;;  %v6385_v48 = vrot.slane %v2143_v31, 9  ;;  %v8069_v20 = vld [vmem:[#allocation2 + $0x20] sm:$0x1]  ;;  %v9100_v57 = vsel %vm8619_vm14, %v2205_v19, %v2206_v63  ;;  %v6388_v31 = vrot.slane %v2146_v43, 9  ;;  %v2231_v63 = vrot.slane %v9029_v25, 5 }
 0x117   : > { %7309 = vmatprep.subr.bf16.mxu1 %v7976_v36  ;;  %v3940_v26 = vsel %vm8619_vm14, %v6536_v39, %v3939_v47  ;;  %v3941_v51 = vrot.slane %v3939_v47, 4  ;;  %v2213_v7 = vrot.slane %v8069_v20, 5  ;;  %v7973_v39 = vld [vmem:[#allocation2 + $0x24] sm:$0xff]  }
 0x118   : > { %v9088_v12 = vsel %vm8619_vm14, %v6385_v48, %v2196_v56  ;;  %v9112_v56 = vld [vmem:[#allocation2 + $0x48] sm:$0xe]  ;;  %v2233_v43 = vrot.slane %v2231_v63, 4 }
 0x119   : > { %v3943_v10 = vsel %vm8619_vm14, %v3941_v51, %v3942_v14  ;;  %v7977_v14 = vld [vmem:[#allocation2 + $0x30] sm:$0xff]   ;;  %v9108_v40 = vsel %vm8619_vm14, %v2212_v61, %v2213_v7  ;;  %v6390_v7 = vrot.slane %v9110_v3, 9 }
 0x11a   : > { %7310 = vmatpush3.bf16.msra.mxu1 %v7976_v36  ;;  %v6568_v41 = vcombine.low %v3940_v26, %v3943_v10  ;;  %v8070_v36 = vld [vmem:[#allocation2 + $0x78] sm:$0xf]  ;;  %v8072_v26 = vld [vmem:[#allocation2 + $0x2c] sm:$0x1]  ;;  %v2226_v10 = vrot.slane %v2224_v33, 4 }
 0x11b   : > { %7311 = vmatprep.subr.bf16.mxu1 %v7982_v27  ;;  %v6371_v17 = vcombine.low %v8070_v36, %v9077_v24  ;;  %v2220_v51 = vrot.slane %v8072_v26, 5  ;;  %v4654_v36 = vld [vmem:[#allocation2 + $0x1c] sm:$0xf]  ;;  %v9160_v3 = vld [vmem:[#allocation2 + $0x50] sm:$0x1]  ;;  %v9174_v47 = vsel %vm8619_vm14, %v6390_v7, %v2231_v63 }
 0x11c   : > { %7488 = vmatmul.mubr.bf16.gmra.mrb[28].mxu0 %v6568_v41  ;;  %v6373_v41 = vcombine.low %v8866_v42, %v8880_v4  ;;  %v10089_v4 = vrot.slane %v9036_v23, 5  ;;  %v2152_v42 = vld [vmem:[#allocation2 + $0x6c] sm:$0xe]  ;;  %v8078_v26 = vld [vmem:[#allocation2 + $0x5c] sm:$0x1] }
 0x11d   : > { %7280 = vmatmul.mubr.bf16.gmra.mrb[12].mxu1 %v6368_v22  ;;  %7507 = vmatprep.mubr.bf16.mxu0 %v7971_v52  ;;  %v2147_v22 = vld [vmem:[#allocation2 + $0x30] sm:$0xe]  ;;  %v8075_v52 = vld [vmem:[#allocation2 + $0x38] sm:$0x1] }
 0x11e   : > { %7283 = vmatprep.mubr.bf16.mxu1 %v6369_v32  ;;  %7312 = vmatpush3.bf16.msra.mxu1 %v7982_v27  ;;  %v2217_v27 = vrot.slane %v9015_v55, 5  ;;  %v9092_v55 = vsel %vm8619_vm14, %v6386_v8, %v2203_v58  ;;  %v9096_v32 = vsel %vm8619_vm14, %v2198_v2, %v2199_v38  ;;  %v6389_v54 = vrot.slane %v2147_v22, 9  ;;  %v8073_v58 = vld [vmem:[#allocation2 + $0x84] sm:$0xf]  ;;  %v7978_v38 = vld [vmem:[%s10085_s3 + $0x1c8] sm:$0xff]  }
 0x11f   : > { %7313 = vmatprep.subr.bf16.mxu1 %v7988_v44  ;;  %v2227_v30 = vrot.slane %v8075_v52, 5  ;;  %v9129_v8 = vld [vmem:[#allocation2 + $0x54] sm:$0xe]  ;;  %v4653_v2 = vld [vmem:[#allocation2 + $0x18] sm:$0xf]  ;;  %v2240_v52 = vrot.slane %v10089_v4, 4 }
 0x120   : > { %v2219_v50 = vrot.slane %v2217_v27, 4  ;;  %v9141_v19 = vsel %vm8619_vm14, %v6388_v31, %v2217_v27  ;;  %v9149_v20 = vsel %vm8619_vm14, %v6389_v54, %v2224_v33  ;;  %v8076_v22 = vld [vmem:[#allocation2 + $0x44] sm:$0x1]  ;;  %v6391_v33 = vrot.slane %v9112_v56, 9  ;;  %v4657_v31 = vld [vmem:[#allocation2 + $0x28] sm:$0xf] }
 0x121   : > { %v9157_v27 = vsel %vm8619_vm14, %v2226_v10, %v2227_v30  ;;  %v4702_v54 = vshrl.u32 %v4653_v2, 16  ;;  %v7990_v10 = vld [vmem:[%s10085_s3 + $0x1d8] sm:$0xff]   ;;  %v2245_v56 = vrot.slane %v9047_v35, 5  ;;  %v4711_v30 = vshll.u32 %v4654_v36, 16 }
 0x122   : > { %7314 = vmatpush3.bf16.msra.mxu1 %v7988_v44  ;;  %v9104_v44 = vsel %vm8619_vm14, %v6387_v6, %v2210_v28  ;;  %v6372_v28 = vcombine.low %v8073_v58, %v9114_v59  ;;  %v9145_v61 = vsel %vm8619_vm14, %v2219_v50, %v2220_v51  ;;  %v7983_v50 = vld [vmem:[#allocation2 + $0x48] sm:$0xff]   ;;  %v6392_v51 = vrot.slane %v9129_v8, 9 }
 0x123   : > { %7347 = vmatprep.subr.bf16.mxu1 %v9072_v29  ;;  %v4705_v58 = vshll.u32 %v4653_v2, 16  ;;  %v4735_v6 = vshll.u32 %v4657_v31, 16  ;;  %v4739_v2 = vshrl.u32 %v4657_v31, 16  ;;  %v2252_v35 = vrot.slane %v9050_v60, 5  ;;  %v4658_v60 = vld [vmem:[#allocation2 + $0x2c] sm:$0x1] }
 0x124   : > { %7508 = vmatmul.mubr.bf16.vlgmr.msra.gmra.mrb[0].mxu0 %v7973_v39  ;;  %v7979_v39 = vld [vmem:[#allocation2 + $0x3c] sm:$0xff]   ;;  %v4704_v31 = vrot.slane %v4702_v54, 4  ;;  %v9184_v63 = vrot.slane %v4711_v30, 5  ;;  %v8079_v54 = vld [vmem:[#allocation2 + $0x68] sm:$0x1] }
 0x125   : > { %7284 = vmatmul.mubr.bf16.gmra.mrb[16].mxu1 %v6370_v5  ;;  %7540 = vmatpush3.bf16.msra.mxu0 %v8838_v45  ;;  %v7984_v45 = vld [vmem:[%s10085_s3 + $0x1d0] sm:$0xff]   ;;  %v4707_v48 = vrot.slane %v4705_v58, 5  ;;  %v2248_v5 = vrot.slane %v8078_v26, 5  ;;  %v9186_v53 = vrot.slane %v4735_v6, 5  ;;  %v2255_v26 = vrot.slane %v8079_v54, 5 }
 0x126   : > { %7287 = vmatprep.mubr.bf16.mxu1 %v6371_v17  ;;  %7511 = vmatprep.mubr.bf16.mxu0 %v7977_v14  ;;  %v4656_v17 = vld [vmem:[#allocation2 + $0x24] sm:$0xf]  ;;  %v2234_v14 = vrot.slane %v8076_v22, 5  ;;  %v4715_v22 = vshrl.u32 %v4654_v36, 16  ;;  %v2259_v36 = vrot.slane %v9074_v9, 5  ;;  %v6394_v58 = vrot.slane %v2152_v42, 9 }
 0x127   : > { %7541 = vmatprep.subr.bf16.mxu0 %v7978_v38  ;;  %v4726_v25 = vshrl.u32 %v4656_v17, 16  ;;  %v4729_v8 = vshll.u32 %v4656_v17, 16  ;;  %v10114_v6 = vcombine.low %v8888_v62, %v8895_v11  ;;  %v4745_v54 = vshll.u32 %v4658_v60, 16  ;;  %v7989_v62 = vld [vmem:[#allocation2 + $0x60] sm:$0xff]  }
 0x128   : > { %v9182_v17 = vsel %vm8619_vm14, %v2233_v43, %v2234_v14  ;;  %v4717_v7 = vrot.slane %v4715_v22, 4  ;;  %v7994_v43 = vld [vmem:[%s10085_s3 + $0x1e0] sm:$0xff]   ;;  %v2254_v14 = vrot.slane %v2252_v35, 4  ;;  %v2261_v30 = vrot.slane %v2259_v36, 4  ;;  %v8080_v22 = vld [vmem:[#allocation2 + $0x74] sm:$0x1] }
 0x129   : > { %7542 = vmatpush3.bf16.msra.mxu0 %v7978_v38  ;;  %v4655_v38 = vld [vmem:[#allocation2 + $0x20] sm:$0x1]  ;;  %v4728_v9 = vrot.slane %v4726_v25, 4  ;;  %v4731_v4 = vrot.slane %v4729_v8, 5  ;;  %v2262_v21 = vrot.slane %v8080_v22, 5  ;;  %v7985_v25 = vld [vmem:[#allocation2 + $0x54] sm:$0xff]  }
 0x12a   : > { %7543 = vmatprep.subr.bf16.mxu0 %v7984_v45  ;;  %v10115_v8 = vrot.slane %v9036_v23, 5  ;;  %v4718_v42 = vor.u32 %v4717_v7, %v9184_v63  ;;  %v10117_v11 = vrot.slane %v9160_v3, 5  ;;  %v8081_v60 = vld [vmem:[#allocation2 + $0x80] sm:$0x1] }
 0x12c   : > { %7512 = vmatmul.mubr.bf16.gmra.mrb[4].mxu0 %v7979_v39  ;;  %v6393_v39 = vrot.slane %v2151_v49, 9  ;;  %v9202_v49 = vsel %vm8619_vm14, %v6392_v51, %v2245_v56  ;;  %v9212_v23 = vsel %vm8619_vm14, %v2240_v52, %v10117_v11  ;;  %v2153_v51 = vld [vmem:[#allocation2 + $0x78] sm:$0xe]  ;;  %v9234_v52 = vsel %vm8619_vm14, %v2254_v14, %v2255_v26 }
 0x12d   : > { %7288 = vmatmul.mubr.bf16.gmra.mrb[20].mxu1 %v6372_v28  ;;  %v2247_v28 = vrot.slane %v2245_v56, 4  ;;  %7515 = vmatprep.mubr.bf16.mxu0 %v7983_v50  ;;  %v4708_v50 = vor.u32 %v4707_v48, %v4704_v31  ;;  %v10116_v48 = vcombine.low %v8922_v37, %v8930_v34  ;;  %v2266_v56 = vrot.slane %v9077_v24, 5  ;;  %v7998_v37 = vld [vmem:[%s10085_s3 + $0x1e8] sm:$0xff]  }
 0x12e   : > { %7291 = vmatprep.mubr.bf16.mxu1 %v6373_v41  ;;  %7544 = vmatpush3.bf16.msra.mxu0 %v7984_v45  ;;  %v4741_v41 = vrot.slane %v4739_v2, 4  ;;  %v4721_v45 = vshll.u32 %v4655_v38, 16  ;;  %v9198_v2 = vsel %vm8619_vm14, %v6391_v33, %v10115_v8  ;;  %v4732_v33 = vor.u32 %v4731_v4, %v4728_v9  ;;  %v9323_v8 = vld [vmem:[#allocation2 + $0x58] sm:$0xf] }
 0x12f   : > { %7545 = vmatprep.subr.bf16.mxu0 %v7990_v10  ;;  %v9221_v34 = vsel %vm8619_vm14, %v2247_v28, %v2248_v5  ;;  %v9225_v3 = vsel %vm8619_vm14, %v6393_v39, %v2252_v35  ;;  %v9229_v4 = vsel %vm8619_vm14, %v6394_v58, %v2259_v36  ;;  %v2273_v24 = vrot.slane %v9114_v59, 5  ;;  %v4659_v35 = vld [vmem:[#allocation2 + $0x30] sm:$0xf]  ;;  %10124 = vst [vmem:[#allocation7_spill] sm:$0xff] %v9323_v8 }
 0x130   : > { %v4742_v38 = vor.u32 %v4741_v41, %v9186_v53  ;;  %v9238_v41 = vsel %vm8619_vm14, %v2261_v30, %v2262_v21  ;;  %v9240_v5 = vrot.slane %v4708_v50, 4  ;;  %v9242_v28 = vrot.slane %v4721_v45, 5  ;;  %v8002_v21 = vld [vmem:[%s10085_s3 + $0x1f0] sm:$0xff]   ;;  %v8082_v30 = vld [vmem:[#allocation2 + $0x8c] sm:$0x1] }
 0x131   : > { %v4719_v31 = vrot.slane %v4718_v42, 4  ;;  %v9244_v36 = vrot.slane %v4745_v54, 5  ;;  %v6395_v7 = vrot.slane %v2153_v51, 9  ;;  %v2269_v59 = vrot.slane %v8081_v60, 5  ;;  %v7991_v54 = vld [vmem:[#allocation2 + $0x6c] sm:$0xff]  }
 0x132   : > { %7546 = vmatpush3.bf16.msra.mxu0 %v7990_v10  ;;  %v2154_v10 = vld [vmem:[#allocation2 + $0x84] sm:$0xe]  ;;  %v4733_v9 = vrot.slane %v4732_v33, 4  ;;  %v4743_v39 = vrot.slane %v4742_v38, 4  ;;  %v2268_v14 = vrot.slane %v2266_v56, 4  ;;  %v2275_v58 = vrot.slane %v2273_v24, 4 }
 0x133   : > { %7547 = vmatprep.subr.bf16.mxu0 %v7994_v43  ;;  %v6396_v26 = vrot.slane %v2154_v10, 9  ;;  %v2276_v22 = vrot.slane %v8082_v30, 5  ;;  %v4750_v50 = vshrl.u32 %v4659_v35, 16  ;;  %v4753_v45 = vshll.u32 %v4659_v35, 16  ;;  %v4660_v38 = vld [vmem:[#allocation2 + $0x34] sm:$0xf] }
 0x134   : > { %7516 = vmatmul.mubr.bf16.gmra.mrb[8].mxu0 %v7985_v25  ;;  %v10118_v42 = vcombine.low %v8948_v16, %v8952_v13  ;;  %v4724_v11 = vsel %vm8286_vm9, %v4719_v31, %v9242_v28  ;;  %v9271_v33 = vsel %vm8619_vm14, %v6395_v7, %v2266_v56  ;;  %v4662_v16 = vld [vmem:[#allocation2 + $0x3c] sm:$0xf]  ;;  %v10119_v13 = vshll.u32 %v8944_v15, 16  ;;  %v4663_v15 = vld [vmem:[#allocation2 + $0x40] sm:$0xf] }
 0x135   : > { %7292 = vmatmul.mubr.bf16.gmra.mrb[24].mxu1 %v10114_v6  ;;  %7519 = vmatprep.mubr.bf16.mxu0 %v7989_v62  ;;  %v4714_v62 = vsel %vm8286_vm9, %v9240_v5, %v9184_v63  ;;  %v10121_v10 = vcombine.low %v9088_v12, %v9096_v32  ;;  %v7993_v35 = vld [vmem:[#allocation2 + $0x78] sm:$0xff]   ;;  %v4738_v63 = vsel %vm8286_vm9, %v4733_v9, %v9186_v53  ;;  %v4665_v28 = vld [vmem:[#allocation2 + $0x48] sm:$0xf]  ;;  %v4755_v31 = vrot.slane %v4753_v45, 5  ;;  %v9301_v7 = vld [vmem:[#allocation2 + $0x4c] sm:$0xf] }
 0x136   : > { %7295 = vmatprep.mubr.bf16.mxu1 %v10116_v48  ;;  %7548 = vmatpush3.bf16.msra.mxu0 %v7994_v43  ;;  %v9275_v51 = vrot.slane %v10119_v13, 5  ;;  %v9285_v56 = vsel %vm8619_vm14, %v2268_v14, %v2269_v59  ;;  %v9289_v5 = vsel %vm8619_vm14, %v6396_v26, %v2273_v24  ;;  %v8006_v12 = vld [vmem:[%s10085_s3 + $0x1f8] sm:$0xff]   ;;  %v4748_v32 = vsel %vm8286_vm9, %v4743_v39, %v9244_v36  ;;  %v7996_v36 = vld [vmem:[%s10085_s3 + $0xc8] sm:$0xff]  }
 0x137   : > { %7549 = vmatprep.subr.bf16.mxu0 %v7998_v37  ;;  %v9299_v53 = vsel %vm8619_vm14, %v2275_v58, %v2276_v22  ;;  %10123 = vst [vmem:[#allocation6_spill] sm:$0xff] %v9301_v7  ;;  %v4661_v24 = vld [vmem:[#allocation2 + $0x38] sm:$0x1]  ;;  %v4759_v60 = vshll.u32 %v4660_v38, 16  ;;  %v4763_v59 = vshrl.u32 %v4660_v38, 16  ;;  %v4774_v9 = vshrl.u32 %v4662_v16, 16 }
 0x138   : > { %10120 = vst [vmem:[#allocation4_spill] sm:$0xff] %v9275_v51  ;;  %10122 = vst [vmem:[#allocation5_spill] sm:$0xff] %v9299_v53  ;;  %v4777_v14 = vshll.u32 %v4662_v16, 16  ;;  %v4783_v26 = vshll.u32 %v4663_v15, 16  ;;  %v4787_v30 = vshrl.u32 %v4663_v15, 16  ;;  %v4801_v13 = vshll.u32 %v4665_v28, 16 }
 0x139   : > { %v9306_v39 = vcombine.low %v4714_v62, %v4724_v11  ;;  %v4807_v22 = vshll.u32 %v9301_v7, 16  ;;  %v7995_v45 = vld [vmem:[#allocation2 + $0x84] sm:$0xff]   ;;  %v9317_v38 = vcombine.low %v4738_v63, %v4748_v32  ;;  %v4769_v11 = vshll.u32 %v4661_v24, 16 }
 0x13a   : > { %7550 = vmatpush3.bf16.msra.mxu0 %v7998_v37  ;;  %v4752_v37 = vrot.slane %v4750_v50, 4  ;;  %v4811_v50 = vshrl.u32 %v9301_v7, 16  ;;  %v4664_v16 = vld [vmem:[#allocation2 + $0x44] sm:$0x1]  ;;  %v9321_v15 = vrot.slane %v4759_v60, 5  ;;  %v4776_v58 = vrot.slane %v4774_v9, 4 }
 0x13b   : > { %7551 = vmatprep.subr.bf16.mxu0 %v8002_v21  ;;  %v4779_v48 = vrot.slane %v4777_v14, 5  ;;  %v10125_v25 = vcombine.low %v9092_v55, %v9100_v57  ;;  %v9328_v63 = vrot.slane %v4783_v26, 5  ;;  %v4789_v32 = vrot.slane %v4787_v30, 4  ;;  %v9336_v60 = vld [vmem:[#allocation2 + $0x50] sm:$0x1] }
 0x13c   : > { %7520 = vmatmul.mubr.bf16.gmra.mrb[12].mxu0 %v7991_v54  ;;  %v9315_v54 = vld [vmem:[%s10085_s3 + $0x200] sm:$0xff]   ;;  %v4756_v62 = vor.u32 %v4755_v31, %v4752_v37  ;;  %v4803_v31 = vrot.slane %v4801_v13, 5  ;;  %v10126_v24 = vcombine.low %v9104_v44, %v9108_v40  ;;  %10127 = vst [vmem:[#allocation8_spill] sm:$0xff] %v9336_v60  ;;  %v4813_v9 = vrot.slane %v4811_v50, 4  ;;  %v8083_v13 = vld [vmem:[#allocation2 + $0x94] sm:$0xf] }
 0x13d   : > { %7296 = vmatmul.mubr.bf16.gmra.mrb[28].mxu1 %v10118_v42  ;;  %v4798_v42 = vshrl.u32 %v4665_v28, 16  ;;  %7523 = vmatprep.mubr.bf16.mxu0 %v7993_v35  ;;  %v7997_v35 = vld [vmem:[#allocation2 + $0x90] sm:$0xff]   ;;  %v4765_v28 = vrot.slane %v4763_v59, 4  ;;  %v9338_v59 = vrot.slane %v4807_v22, 5  ;;  %v9343_v14 = vrot.slane %v4769_v11, 5 }
 0x13e   : > { %7315 = vmatprep.mubr.bf16.mxu1 %v10121_v10  ;;  %7552 = vmatpush3.bf16.msra.mxu0 %v8002_v21  ;;  %v4668_v10 = vld [vmem:[#allocation2 + $0x54] sm:$0xf]  ;;  %v9330_v21 = vld [vmem:[#allocation2 + $0x90] sm:$0xe]  ;;  %v4831_v26 = vshll.u32 %v9323_v8, 16  ;;  %v4835_v44 = vshrl.u32 %v9323_v8, 16  ;;  %v4790_v50 = vor.u32 %v4789_v32, %v9328_v63 }
 0x13f   : > { %7553 = vmatprep.subr.bf16.mxu0 %v8006_v12  ;;  %v4800_v37 = vrot.slane %v4798_v42, 4  ;;  %v4822_v55 = vshrl.u32 %v4668_v10, 16  ;;  %v4825_v57 = vshll.u32 %v4668_v10, 16  ;;  %v9348_v40 = vrot.slane %v4756_v62, 4  ;;  %v2156_v11 = vld [vmem:[#allocation2 + $0x9c] sm:$0xe] }
 0x140   : > { %v4766_v30 = vor.u32 %v4765_v28, %v9321_v15  ;;  %v4780_v42 = vor.u32 %v4779_v48, %v4776_v58  ;;  %v2280_v22 = vrot.slane %v8083_v13, 5  ;;  %v4814_v62 = vor.u32 %v4813_v9, %v9338_v59  ;;  %v8004_v48 = vld [vmem:[%s10085_s3 + $0xd8] sm:$0xff]   ;;  %v8086_v8 = vld [vmem:[#allocation2 + $0xa4] sm:$0x1]  ;;  %v8087_v7 = vld [vmem:[#allocation2 + $0xac] sm:$0xf] }
 0x141   : > { %v4804_v43 = vor.u32 %v4803_v31, %v4800_v37  ;;  %v4824_v6 = vrot.slane %v4822_v55, 4  ;;  %v4827_v28 = vrot.slane %v4825_v57, 5  ;;  %v9358_v32 = vrot.slane %v4831_v26, 5  ;;  %v9360_v37 = vld [vmem:[#allocation2 + $0x5c] sm:$0x1] }
 0x142   : > { %7554 = vmatpush3.bf16.msra.mxu0 %v8006_v12  ;;  %v6397_v12 = vrot.slane %v9330_v21, 9  ;;  %v4837_v13 = vrot.slane %v4835_v44, 4  ;;  %v4781_v51 = vrot.slane %v4780_v42, 4  ;;  %v10128_v31 = vcombine.low %v9141_v19, %v9145_v61  ;;  %v7999_v9 = vld [vmem:[#allocation2 + $0x9c] sm:$0xff]   ;;  %v8001_v44 = vld [vmem:[#allocation2 + $0xa8] sm:$0xff]  }
 0x143   : > { %7587 = vmatprep.subr.bf16.mxu0 %v9315_v54  ;;  %v4791_v55 = vrot.slane %v4790_v50, 4  ;;  %v10129_v26 = vcombine.low %v9149_v20, %v9157_v27  ;;  %v4815_v42 = vrot.slane %v4814_v62, 4  ;;  %v2294_v53 = vrot.slane %v8087_v7, 5  ;;  %v8008_v19 = vld [vmem:[%s10085_s3 + $0xe0] sm:$0xff]   ;;  %v2158_v62 = vld [vmem:[#allocation2 + $0xb4] sm:$0xe] }
 0x144   : > { %7524 = vmatmul.mubr.bf16.gmra.mrb[16].mxu0 %v7995_v45  ;;  %v8085_v45 = vld [vmem:[#allocation2 + $0x98] sm:$0x1]  ;;  %v4762_v61 = vsel %vm8286_vm9, %v9348_v40, %v9321_v15  ;;  %v9377_v20 = vsel %vm8619_vm14, %v6397_v12, %v2280_v22  ;;  %v4838_v27 = vor.u32 %v4837_v13, %v9358_v32 }
 0x145   : > { %7316 = vmatmul.mubr.bf16.vlgmr.msra.gmra.mrb[0].mxu1 %v10125_v25  ;;  %v8000_v25 = vld [vmem:[%s10085_s3 + $0xd0] sm:$0xff]   ;;  %7527 = vmatprep.mubr.bf16.mxu0 %v7997_v35  ;;  %v2283_v21 = vrot.slane %v8085_v45, 5  ;;  %v2282_v35 = vrot.slane %v2280_v22, 4  ;;  %v2157_v45 = vld [vmem:[#allocation2 + $0xa8] sm:$0xe] }
 0x146   : > { %7348 = vmatpush3.bf16.msra.mxu1 %v9072_v29  ;;  %7319 = vmatprep.mubr.bf16.mxu1 %v10126_v24  ;;  %v4793_v29 = vshll.u32 %v4664_v16, 16  ;;  %v8084_v16 = vld [vmem:[#allocation2 + $0xa0] sm:$0xf]  ;;  %v4817_v24 = vshll.u32 %v9336_v60, 16  ;;  %v8088_v22 = vld [vmem:[#allocation2 + $0xb0] sm:$0x1] }
 0x147   : > { %7349 = vmatprep.subr.bf16.mxu1 %v7996_v36  ;;  %v2287_v10 = vrot.slane %v8084_v16, 5  ;;  %v4767_v16 = vrot.slane %v4766_v30, 4  ;;  %v4805_v30 = vrot.slane %v4804_v43, 4  ;;  %v9389_v7 = vsel %vm8619_vm14, %v2282_v35, %v2283_v21  ;;  %v9411_v35 = vld [vmem:[#allocation2 + $0x64] sm:$0xf] }
 0x148   : > { %v4795_v58 = vrot.slane %v4793_v29, 5  ;;  %v2290_v29 = vrot.slane %v8086_v8, 5  ;;  %v4819_v60 = vrot.slane %v4817_v24, 5  ;;  %v4786_v8 = vsel %vm8286_vm9, %v4781_v51, %v9328_v63  ;;  %v4671_v51 = vld [vmem:[#allocation2 + $0x60] sm:$0xf] }
 0x149   : > { %v2289_v57 = vrot.slane %v2287_v10, 4  ;;  %v4772_v43 = vsel %vm8286_vm9, %v4767_v16, %v9343_v14  ;;  %v6399_v14 = vrot.slane %v2157_v45, 9  ;;  %v2297_v50 = vrot.slane %v8088_v22, 5 }
 0x14a   : > { %7350 = vmatpush3.bf16.msra.mxu1 %v7996_v36  ;;  %v6398_v36 = vrot.slane %v2156_v11, 9  ;;  %v4828_v11 = vor.u32 %v4827_v28, %v4824_v6  ;;  %v4841_v6 = vshll.u32 %v9360_v37, 16  ;;  %v4810_v63 = vsel %vm8286_vm9, %v4805_v30, %v9338_v59  ;;  %v8010_v28 = vld [vmem:[%s10085_s3 + $0xe8] sm:$0xff]  }
 0x14b   : > { %7351 = vmatprep.subr.bf16.mxu1 %v8000_v25  ;;  %v9399_v40 = vsel %vm8619_vm14, %v2289_v57, %v2290_v29  ;;  %v4820_v12 = vsel %vm8286_vm9, %v4815_v42, %v4819_v60  ;;  %v2296_v24 = vrot.slane %v2294_v53, 4  ;;  %v4839_v21 = vrot.slane %v4838_v27, 4  ;;  %v8003_v57 = vld [vmem:[#allocation2 + $0xb4] sm:$0xff]   ;;  %v4674_v42 = vld [vmem:[#allocation2 + $0x6c] sm:$0xf] }
 0x14c   : > { %v9393_v15 = vsel %vm8619_vm14, %v6398_v36, %v2287_v10  ;;  %7528 = vmatmul.mubr.bf16.gmra.mrb[20].mxu0 %v7999_v9  ;;  %v4829_v10 = vrot.slane %v4828_v11, 4  ;;  %v4843_v13 = vrot.slane %v4841_v6, 5  ;;  %v9417_v36 = vld [vmem:[#allocation2 + $0x68] sm:$0x1]  ;;  %v4849_v9 = vshll.u32 %v4671_v51, 16 }
 0x14d   : > { %7320 = vmatmul.mubr.bf16.gmra.mrb[4].mxu1 %v10128_v31  ;;  %7531 = vmatprep.mubr.bf16.mxu0 %v8001_v44  ;;  %v4846_v31 = vshrl.u32 %v4671_v51, 16  ;;  %v9428_v44 = vsel %vm8619_vm14, %v6399_v14, %v2294_v53  ;;  %v6400_v30 = vrot.slane %v2158_v62, 9  ;;  %v9430_v11 = vld [vmem:[#allocation2 + $0x70] sm:$0xf]  ;;  %v10131_v45 = vcombine.low %v9198_v2, %v9212_v23  ;;  %v4677_v6 = vld [vmem:[#allocation2 + $0x78] sm:$0xf] }
 0x14e   : > { %7323 = vmatprep.mubr.bf16.mxu1 %v10129_v26  ;;  %7352 = vmatpush3.bf16.msra.mxu1 %v8000_v25  ;;  %v4796_v25 = vsel %vm8286_vm9, %v4791_v55, %v4795_v58  ;;  %v9409_v58 = vcombine.low %v4762_v61, %v4772_v43  ;;  %v10130_v55 = vcombine.low %v9174_v47, %v9182_v17  ;;  %v8005_v47 = vld [vmem:[#allocation2 + $0xc0] sm:$0xff]   ;;  %v4855_v53 = vshll.u32 %v9411_v35, 16  ;;  %v8012_v2 = vld [vmem:[%s10085_s3 + $0xf0] sm:$0xff]   ;;  %v8090_v43 = vld [vmem:[#allocation2 + $0xbc] sm:$0x1] }
 0x14f   : > { %7353 = vmatprep.subr.bf16.mxu1 %v8004_v48  ;;  %v9413_v59 = vcombine.low %v4786_v8, %v4796_v25  ;;  %v9424_v26 = vcombine.low %v4810_v63, %v4820_v12  ;;  %v4834_v17 = vsel %vm8286_vm9, %v4829_v10, %v9358_v32  ;;  %v9440_v61 = vsel %vm8619_vm14, %v2296_v24, %v2297_v50  ;;  %v9450_v25 = vld [vmem:[#allocation2 + $0x7c] sm:$0xf] }
 0x150   : > { %v4859_v27 = vshrl.u32 %v9411_v35, 16  ;;  %v4844_v23 = vsel %vm8286_vm9, %v4839_v21, %v4843_v13  ;;  %v2304_v32 = vrot.slane %v8090_v43, 5  ;;  %v4865_v8 = vshll.u32 %v9417_v36, 16  ;;  %10132 = vst [vmem:[#allocation9_spill] sm:$0xff] %v9450_v25  ;;  %v8014_v62 = vld [vmem:[%s10085_s3 + $0xf8] sm:$0xff]  }
 0x151   : > { %v9452_v14 = vrot.slane %v4846_v31, 4  ;;  %v9454_v22 = vrot.slane %v4849_v9, 5  ;;  %v4870_v50 = vshrl.u32 %v4674_v42, 16  ;;  %v4873_v51 = vshll.u32 %v4674_v42, 16  ;;  %v9479_v42 = vld [vmem:[#allocation2 + $0x74] sm:$0x1] }
 0x152   : > { %7354 = vmatpush3.bf16.msra.mxu1 %v8004_v48  ;;  %v8089_v48 = vld [vmem:[#allocation2 + $0xb8] sm:$0xf]  ;;  %v4879_v63 = vshll.u32 %v9430_v11, 16  ;;  %v4883_v12 = vshrl.u32 %v9430_v11, 16  ;;  %v4894_v10 = vshrl.u32 %v4677_v6, 16  ;;  %v4897_v24 = vshll.u32 %v4677_v6, 16 }
 0x153   : > { %7355 = vmatprep.subr.bf16.mxu1 %v8008_v19  ;;  %v2301_v16 = vrot.slane %v8089_v48, 5  ;;  %v9461_v21 = vrot.slane %v4855_v53, 5  ;;  %v9463_v13 = vrot.slane %v4859_v27, 4  ;;  %v4903_v48 = vshll.u32 %v9450_v25, 16  ;;  %v4683_v53 = vld [vmem:[#allocation2 + $0x90] sm:$0xf] }
 0x154   : > { %7532 = vmatmul.mubr.bf16.gmra.mrb[24].mxu0 %v8003_v57  ;;  %v4907_v31 = vshrl.u32 %v9450_v25, 16  ;;  %v9467_v9 = vcombine.low %v4834_v17, %v4844_v23  ;;  %v4852_v17 = vor.u32 %v9454_v22, %v9452_v14  ;;  %v9485_v27 = vrot.slane %v4865_v8, 5  ;;  %v9487_v43 = vld [vmem:[#allocation2 + $0x94] sm:$0xf]  ;;  %v9499_v14 = vld [vmem:[#allocation2 + $0x80] sm:$0x1] }
 0x155   : > { %7324 = vmatmul.mubr.bf16.gmra.mrb[8].mxu1 %v10130_v55  ;;  %7535 = vmatprep.mubr.bf16.mxu0 %v8005_v47  ;;  %v9481_v47 = vld [vmem:[#allocation2 + $0x88] sm:$0xf]  ;;  %v4872_v6 = vrot.slane %v4870_v50, 4  ;;  %v4875_v23 = vrot.slane %v4873_v51, 5  ;;  %10134 = vst [vmem:[#allocation11_spill] sm:$0xff] %v9487_v43  ;;  %v4896_v55 = vrot.slane %v4894_v10, 4  ;;  %v10136_v60 = vcombine.low %v9225_v3, %v9234_v52 }
 0x156   : > { %7327 = vmatprep.mubr.bf16.mxu1 %v10131_v45  ;;  %7356 = vmatpush3.bf16.msra.mxu1 %v8008_v19  ;;  %v2303_v19 = vrot.slane %v2301_v16, 4  ;;  %v4680_v45 = vld [vmem:[#allocation2 + $0x84] sm:$0xf]  ;;  %10133 = vst [vmem:[#allocation10_spill] sm:$0xff] %v9481_v47  ;;  %v4899_v29 = vrot.slane %v4897_v24, 5  ;;  %v4862_v8 = vor.u32 %v9463_v13, %v9461_v21  ;;  %10137 = vst [vmem:[#allocation12_spill] sm:$0xff] %v9499_v14 }
 0x157   : > { %7357 = vmatprep.subr.bf16.mxu1 %v8010_v28  ;;  %v9501_v22 = vrot.slane %v4903_v48, 5  ;;  %v4921_v50 = vshll.u32 %v4680_v45, 16  ;;  %v4927_v51 = vshll.u32 %v9481_v47, 16  ;;  %v4686_v10 = vld [vmem:[#allocation2 + $0x9c] sm:$0xf]  ;;  %v4889_v3 = vshll.u32 %v9479_v42, 16 }
 0x158   : > { %v9477_v57 = vsel %vm8619_vm14, %v2303_v19, %v2304_v32  ;;  %v9492_v19 = vrot.slane %v4879_v63, 5  ;;  %v4885_v32 = vrot.slane %v4883_v12, 4  ;;  %v4931_v63 = vshrl.u32 %v9481_v47, 16 }
 0x159   : > { %v4942_v12 = vshrl.u32 %v4683_v53, 16  ;;  %v4945_v52 = vshll.u32 %v4683_v53, 16  ;;  %v4876_v24 = vor.u32 %v4875_v23, %v4872_v6  ;;  %v4900_v48 = vor.u32 %v4899_v29, %v4896_v55 }
 0x15a   : > { %7358 = vmatpush3.bf16.msra.mxu1 %v8010_v28  ;;  %v9473_v28 = vsel %vm8619_vm14, %v6400_v30, %v2301_v16  ;;  %v10135_v16 = vcombine.low %v9202_v49, %v9221_v34  ;;  %v8007_v30 = vld [vmem:[#allocation2 + $0xcc] sm:$0xff]   ;;  %v4909_v49 = vrot.slane %v4907_v31, 4  ;;  %v4918_v34 = vshrl.u32 %v4680_v45, 16  ;;  %v387_v45 = vld [vmem:[#allocation2 + $0xd4] sm:$0x1] }
 0x15b   : > { %7359 = vmatprep.subr.bf16.mxu1 %v8012_v2  ;;  %v4886_v13 = vor.u32 %v4885_v32, %v9492_v19  ;;  %v4913_v31 = vshll.u32 %v9499_v14, 16  ;;  %v4966_v25 = vshrl.u32 %v4686_v10, 16  ;;  %v4969_v53 = vshll.u32 %v4686_v10, 16  ;;  %v9529_v14 = vld [vmem:[#allocation2 + $0x98] sm:$0x1] }
 0x15c   : > { %7536 = vmatmul.mubr.bf16.gmra.mrb[28].mxu0 %v8007_v30  ;;  %v4920_v47 = vrot.slane %v4918_v34, 4  ;;  %v4923_v6 = vrot.slane %v4921_v50, 5  ;;  %v9518_v29 = vrot.slane %v4927_v51, 5  ;;  %v4933_v55 = vrot.slane %v4931_v63, 4  ;;  %v9520_v30 = vld [vmem:[#allocation2 + $0x8c] sm:$0x1] }
 0x15d   : > { %7328 = vmatmul.mubr.bf16.gmra.mrb[12].mxu1 %v10135_v16  ;;  %7555 = vmatprep.mubr.bf16.mxu0 %v9306_v39  ;;  %v4910_v16 = vor.u32 %v4909_v49, %v9501_v22  ;;  %v4944_v23 = vrot.slane %v4942_v12, 4  ;;  %v4947_v39 = vrot.slane %v4945_v52, 5  ;;  %v388_v49 = vsel %vm8227_vm4, 0, %v387_v45 }
 0x15e   : > { %7331 = vmatprep.mubr.bf16.mxu1 %v10136_v60  ;;  %7360 = vmatpush3.bf16.msra.mxu1 %v8012_v2  ;;  %v4951_v60 = vshll.u32 %v9487_v43, 16  ;;  %v4955_v2 = vshrl.u32 %v9487_v43, 16  ;;  %v9515_v43 = vld [vmem:[%s10085_s3 + $0x100] sm:$0xff]   ;;  %v10139_v34 = vcombine.low %v9229_v4, %v9238_v41  ;;  %v4853_v10 = vrot.slane %v4852_v17, 4  ;;  %389 = vst [vmem:[#allocation2 + $0xd4] sm:$0x1] %v388_v49 }
 0x15f   : > { %7361 = vmatprep.subr.bf16.mxu1 %v8014_v62  ;;  %10138 = vst [vmem:[#allocation13_spill] sm:$0xff] %v9515_v43  ;;  %v4877_v50 = vrot.slane %v4876_v24, 4  ;;  %v4891_v51 = vrot.slane %v4889_v3, 5  ;;  %v10140_v63 = vcombine.low %v9271_v33, %v9285_v56  ;;  %v4887_v12 = vrot.slane %v4886_v13, 4  ;;  %v8011_v4 = vld [vmem:[%s10085_s3 + $0x208] sm:$0xff]  }
 0x160   : > { %v4957_v32 = vrot.slane %v4955_v2, 4  ;;  %v4901_v52 = vrot.slane %v4900_v48, 4  ;;  %v4968_v18 = vrot.slane %v4966_v25, 4  ;;  %v4971_v2 = vrot.slane %v4969_v53, 5 }
 0x161   : > { %v4915_v41 = vrot.slane %v4913_v31, 5  ;;  %v4924_v17 = vor.u32 %v4923_v6, %v4920_v47  ;;  %v4937_v3 = vshll.u32 %v9520_v30, 16  ;;  %v4911_v24 = vrot.slane %v4910_v16, 4  ;;  %v10141_v31 = vld [vmem:[#allocation3_spill] sm:$0xff]  ;;  %v4689_v6 = vld [vmem:[#allocation2 + $0xa8] sm:$0xf] }
 0x162   : > { %7362 = vmatpush3.bf16.msra.mxu1 %v8014_v62  ;;  %v9522_v62 = vrot.slane %v4951_v60, 5  ;;  %v9534_v60 = vld [vmem:[#allocation2 + $0xa0] sm:$0xf]  ;;  %v4948_v45 = vor.u32 %v4947_v39, %v4944_v23  ;;  %v4961_v56 = vshll.u32 %v9529_v14, 16  ;;  %v4858_v25 = vsel %vm8286_vm9, %v4853_v10, %v9461_v21 }
 0x163   : > { %7635 = vmatprep.subr.bf16.mxu1 %v9515_v43  ;;  %v4863_v43 = vrot.slane %v4862_v8, 4  ;;  %v4934_v8 = vor.u32 %v4933_v55, %v9518_v29  ;;  %v4975_v13 = vshll.u32 %v9534_v60, 16  ;;  %v4979_v48 = vshrl.u32 %v9534_v60, 16 }
 0x164   : > { %v4958_v33 = vor.u32 %v4957_v32, %v9522_v62  ;;  %7556 = vmatmul.mubr.bf16.vlgmr.msra.gmra.mrb[0].mxu0 %v9317_v38  ;;  %v10142_v16 = vor.u32 %v9067_v46, %v10141_v31  ;;  %v4882_v38 = vsel %vm8286_vm9, %v4877_v50, %v9492_v19  ;;  %v4892_v21 = vsel %vm8286_vm9, %v4887_v12, %v4891_v51  ;;  %v8013_v46 = vld [vmem:[%s10085_s3 + $0x210] sm:$0xff]   ;;  %v5411_v12 = vld [vmem:[#allocation2 + $0x48] sm:$0xe] }
 0x165   : > { %7332 = vmatmul.mubr.bf16.gmra.mrb[16].mxu1 %v10139_v34  ;;  %v4868_v47 = vsel %vm8286_vm9, %v4863_v43, %v9485_v27  ;;  %7588 = vmatpush3.bf16.msra.mxu0 %v9315_v54  ;;  %v9564_v27 = vld [vmem:[#allocation2 + $0xa4] sm:$0x1]  ;;  %v4972_v43 = vor.u32 %v4971_v2, %v4968_v18  ;;  %v4906_v54 = vsel %vm8286_vm9, %v4901_v52, %v9501_v22  ;;  %v9574_v55 = vrot.slane %v4934_v8, 4  ;;  %v10143_v34 = vld [vmem:[#allocation5_spill] sm:$0xff]  ;;  %v8015_v8 = vld [vmem:[%s10085_s3 + $0x218] sm:$0xff]  }
 0x166   : > { %7335 = vmatprep.mubr.bf16.mxu1 %v10140_v63  ;;  %v9555_v53 = vrot.slane %v10142_v16, 4  ;;  %7559 = vmatprep.mubr.bf16.mxu0 %v9409_v58  ;;  %v9572_v58 = vrot.slane %v4924_v17, 4  ;;  %v9576_v19 = vrot.slane %v4937_v3, 5  ;;  %v4916_v23 = vsel %vm8286_vm9, %v4911_v24, %v4915_v41  ;;  %v9603_v41 = vld [vmem:[#allocation2 + $0xac] sm:$0xf] }
 0x167   : > { %7589 = vmatprep.subr.bf16.mxu0 %v8011_v4  ;;  %v9580_v39 = vrot.slane %v4948_v45, 4  ;;  %v9582_v32 = vrot.slane %v4958_v33, 4  ;;  %v9584_v49 = vrot.slane %v4961_v56, 5  ;;  %v10144_v10 = vcombine.low %v9289_v5, %v10143_v34  ;;  %v9628_v33 = vld [vmem:[#allocation2 + $0xb0] sm:$0x1] }
 0x168   : > { %v9589_v22 = vrot.slane %v4975_v13, 5  ;;  %v9591_v50 = vrot.slane %v4979_v48, 4  ;;  %v4985_v51 = vshll.u32 %v9564_v27, 16  ;;  %v4990_v63 = vshrl.u32 %v4689_v6, 16  ;;  %v5412_v13 = vld [vmem:[#allocation2 + $0x54] sm:$0xe] }
 0x169   : > { %7590 = vmatpush3.bf16.msra.mxu0 %v8011_v4  ;;  %v10145_v52 = vcombine.low %v9377_v20, %v9389_v7  ;;  %v6432_v18 = vcombine.low %v9473_v28, %v9477_v57  ;;  %v9599_v2 = vcombine.low %v4858_v25, %v4868_v47  ;;  %v9601_v5 = vrot.slane %v4972_v43, 4  ;;  %v10146_v25 = vld [vmem:[#allocation6_spill] sm:$0xff]  ;;  %v5413_v43 = vld [vmem:[#allocation2 + $0x60] sm:$0xe] }
 0x16a   : > { %v4993_v17 = vshll.u32 %v4689_v6, 16  ;;  %7591 = vmatprep.subr.bf16.mxu0 %v8013_v46  ;;  %v9608_v4 = vcombine.low %v4882_v38, %v4892_v21  ;;  %v9610_v3 = vcombine.low %v4906_v54, %v4916_v23  ;;  %v4930_v20 = vsel %vm8286_vm9, %v9572_v58, %v9518_v29  ;;  %v9645_v23 = vld [vmem:[#allocation2 + $0xb4] sm:$0xf]  ;;  %v10153_v28 = vld [vmem:[#allocation12_spill] sm:$0xff] }
 0x16b   : > { %v4940_v7 = vsel %vm8286_vm9, %v9574_v55, %v9576_v19  ;;  %v6661_v56 = vrot.slane %v5411_v12, 9  ;;  %v5501_v47 = vrot.slane %v10146_v25, 5  ;;  %v4982_v48 = vor.u32 %v9591_v50, %v9589_v22 }
 0x16c   : > { %7560 = vmatmul.mubr.bf16.gmra.mrb[4].mxu0 %v9413_v59  ;;  %v9634_v16 = vrot.slane %v4985_v51, 5  ;;  %v9636_v38 = vrot.slane %v4990_v63, 4  ;;  %v4999_v21 = vshll.u32 %v9603_v41, 16  ;;  %v4995_v54 = vrot.slane %v4993_v17, 5  ;;  %v10148_v63 = vld [vmem:[#allocation7_spill] sm:$0xff] }
 0x16d   : > { %7336 = vmatmul.mubr.bf16.gmra.mrb[20].mxu1 %v10144_v10  ;;  %7563 = vmatprep.mubr.bf16.mxu0 %v9424_v26  ;;  %v5003_v59 = vshrl.u32 %v9603_v41, 16  ;;  %v9649_v34 = vsel %vm8619_vm14, %v6661_v56, %v5501_v47  ;;  %v8018_v26 = vld [vmem:[%s10085_s3 + $0x220] sm:$0xff]   ;;  %v6662_v51 = vrot.slane %v5412_v13, 9  ;;  %v5508_v12 = vrot.slane %v10148_v63, 5  ;;  %v5414_v56 = vld [vmem:[#allocation2 + $0x6c] sm:$0xe] }
 0x16e   : > { %7339 = vmatprep.mubr.bf16.mxu1 %v10145_v52  ;;  %7592 = vmatpush3.bf16.msra.mxu0 %v8013_v46  ;;  %v5503_v46 = vrot.slane %v5501_v47, 4  ;;  %v10147_v10 = vld [vmem:[#allocation8_spill] sm:$0xff]  ;;  %v5009_v52 = vshll.u32 %v9628_v33, 16  ;;  %v5511_v17 = vrot.slane %v9360_v37, 5  ;;  %v6663_v25 = vrot.slane %v5413_v43, 9  ;;  %v8021_v43 = vld [vmem:[%s10085_s3 + $0x228] sm:$0xff]  }
 0x16f   : > { %7593 = vmatprep.subr.bf16.mxu0 %v8015_v8  ;;  %v5504_v50 = vrot.slane %v10147_v10, 5  ;;  %v5515_v6 = vrot.slane %v9411_v35, 5  ;;  %v10149_v24 = vcombine.low %v9393_v15, %v9399_v40  ;;  %v5014_v45 = vshrl.u32 %v9645_v23, 16 }
 0x170   : > { %v9669_v13 = vsel %vm8619_vm14, %v6662_v51, %v5508_v12  ;;  %v5510_v10 = vrot.slane %v5508_v12, 4  ;;  %v10150_v37 = vcombine.low %v9428_v44, %v9440_v61  ;;  %v6664_v61 = vrot.slane %v5414_v56, 9  ;;  %v9693_v51 = vld [vmem:[#allocation2 + $0xb8] sm:$0xf] }
 0x171   : > { %v9665_v47 = vsel %vm8619_vm14, %v5503_v46, %v5504_v50  ;;  %v9678_v40 = vsel %vm8619_vm14, %v6663_v25, %v5515_v6  ;;  %v5517_v35 = vrot.slane %v5515_v6, 4  ;;  %v5525_v46 = vrot.slane %v9479_v42, 5  ;;  %v3041_v12 = vld [vmem:[#allocation2 + $0x78] sm:$0xf]  ;;  %v10152_v42 = vld [vmem:[#allocation9_spill] sm:$0xff] }
 0x172   : > { %7594 = vmatpush3.bf16.msra.mxu0 %v8015_v8  ;;  %v9686_v44 = vsel %vm8619_vm14, %v5510_v10, %v5511_v17  ;;  %v5522_v8 = vrot.slane %v9430_v11, 5  ;;  %v9690_v50 = vrot.slane %v4982_v48, 4  ;;  %v4996_v6 = vor.u32 %v4995_v54, %v9636_v38  ;;  %v8016_v17 = vld [vmem:[#allocation2 + $0xc] sm:$0xff]  }
 0x173   : > { %7595 = vmatprep.subr.bf16.mxu0 %v8018_v26  ;;  %v9702_v11 = vrot.slane %v4999_v21, 5  ;;  %v5005_v54 = vrot.slane %v5003_v59, 4  ;;  %v9711_v25 = vrot.slane %v5009_v52, 5  ;;  %v9713_v56 = vrot.slane %v5014_v45, 4  ;;  %v5415_v21 = vld [vmem:[#allocation2 + $0x78] sm:$0xe] }
 0x174   : > { %7564 = vmatmul.mubr.bf16.gmra.mrb[8].mxu0 %v9467_v9  ;;  %v9708_v48 = vsel %vm8619_vm14, %v6664_v61, %v5522_v8  ;;  %v5524_v38 = vrot.slane %v5522_v8, 4  ;;  %v5017_v9 = vshll.u32 %v9645_v23, 16  ;;  %v8024_v10 = vld [vmem:[%s10085_s3 + $0x230] sm:$0xff]   ;;  %v3282_v59 = vshll.u32 %v3041_v12, 16  ;;  %v9736_v61 = vld [vmem:[#allocation2 + $0xbc] sm:$0x1] }
 0x175   : > { %7340 = vmatmul.mubr.bf16.gmra.mrb[24].mxu1 %v10149_v24  ;;  %v5518_v24 = vrot.slane %v9417_v36, 5  ;;  %7567 = vmatprep.mubr.bf16.mxu0 %v9599_v2  ;;  %v3279_v2 = vshrl.u32 %v3041_v12, 16  ;;  %v4988_v45 = vsel %vm8286_vm9, %v9690_v50, %v9634_v16  ;;  %v9728_v23 = vrot.slane %v4996_v6, 4  ;;  %v10151_v12 = vld [vmem:[#allocation4_spill] sm:$0xff] }
 0x176   : > { %7343 = vmatprep.mubr.bf16.mxu1 %v10150_v37  ;;  %7596 = vmatpush3.bf16.msra.mxu0 %v8018_v26  ;;  %v5023_v37 = vshll.u32 %v9693_v51, 16  ;;  %v5027_v26 = vshrl.u32 %v9693_v51, 16  ;;  %v3301_v16 = vsel %vm8286_vm9, %v9555_v53, %v10151_v12  ;;  %v6665_v50 = vrot.slane %v5415_v21, 9  ;;  %v4695_v52 = vld [vmem:[#allocation2 + $0xc0] sm:$0xf]  ;;  %v10154_v21 = vld [vmem:[#allocation10_spill] sm:$0xff] }
 0x177   : > { %v9699_v63 = vsel %vm8619_vm14, %v5517_v35, %v5518_v24  ;;  %7597 = vmatprep.subr.bf16.mxu0 %v8021_v43  ;;  %v9722_v35 = vsel %vm8619_vm14, %v5524_v38, %v5525_v46  ;;  %v5416_v24 = vld [vmem:[#allocation2 + $0x84] sm:$0xe]  ;;  %v3281_v8 = vrot.slane %v3279_v2, 4  ;;  %v3284_v46 = vrot.slane %v3282_v59, 5  ;;  %v8027_v2 = vld [vmem:[%s10085_s3 + $0x238] sm:$0xff]  }
 0x178   : > { %v5006_v6 = vor.u32 %v5005_v54, %v9702_v11  ;;  %v5019_v38 = vrot.slane %v5017_v9, 5  ;;  %v5529_v36 = vrot.slane %v10152_v42, 5  ;;  %v5532_v57 = vrot.slane %v10153_v28, 5  ;;  %v8017_v28 = vld [vmem:[#allocation2 + $0x18] sm:$0xff]  }
 0x179   : > { %v3285_v59 = vor.u32 %v3284_v46, %v3281_v8  ;;  %v6666_v53 = vrot.slane %v5416_v24, 9  ;;  %v9752_v54 = vrot.slane %v5023_v37, 5  ;;  %v9754_v9 = vrot.slane %v5027_v26, 4  ;;  %v8019_v37 = vld [vmem:[#allocation2 + $0x24] sm:$0xff]  }
 0x17a   : > { %7598 = vmatpush3.bf16.msra.mxu0 %v8021_v43  ;;  %v5539_v43 = vrot.slane %v9520_v30, 5  ;;  %v9758_v42 = vsel %vm8619_vm14, %v6665_v50, %v5529_v36  ;;  %v5531_v12 = vrot.slane %v5529_v36, 4  ;;  %v5033_v15 = vshll.u32 %v9736_v61, 16 }
 0x17b   : > { %7599 = vmatprep.subr.bf16.mxu0 %v8024_v10  ;;  %v3286_v8 = vrot.slane %v3285_v59, 4  ;;  %v5038_v26 = vshrl.u32 %v4695_v52, 16  ;;  %v5041_v46 = vshll.u32 %v4695_v52, 16  ;;  %v5007_v52 = vrot.slane %v5006_v6, 4  ;;  %v10155_v6 = vld [vmem:[#allocation13_spill] sm:$0xff] }
 0x17c   : > { %7568 = vmatmul.mubr.bf16.gmra.mrb[12].mxu0 %v9608_v4  ;;  %v9770_v4 = vsel %vm8619_vm14, %v5531_v12, %v5532_v57  ;;  %v10158_v29 = vsel %vm8286_vm9, %v9601_v5, %v9589_v22  ;;  %v5002_v19 = vsel %vm8286_vm9, %v9728_v23, %v9702_v11  ;;  %v9824_v5 = vld [vmem:[#allocation2 + $0xd0] sm:$0xf]  ;;  %v5030_v23 = vor.u32 %v9754_v9, %v9752_v54 }
 0x17d   : > { %7344 = vmatmul.mubr.bf16.gmra.mrb[28].mxu1 %v6432_v18  ;;  %v9745_v18 = vld [vmem:[#allocation2 + $0xc4] sm:$0xf]  ;;  %7571 = vmatprep.mubr.bf16.mxu0 %v9610_v3  ;;  %v3291_v59 = vsel %vm8286_vm9, %v3286_v8, %v10141_v31  ;;  %v6697_v3 = vcombine.low %v9758_v42, %v9770_v4  ;;  %v6642_v31 = vcombine.low %v4930_v20, %v4940_v7  ;;  %v9817_v20 = vld [vmem:[#allocation2 + $0xc8] sm:$0x1]  ;;  %v5043_v7 = vrot.slane %v5041_v46, 5  ;;  %v8020_v12 = vld [vmem:[#allocation2 + $0x30] sm:$0xff]  }
 0x17e   : > { %7363 = vmatprep.mubr.bf16.mxu1 %v8016_v17  ;;  %v5536_v17 = vrot.slane %v10154_v21, 5  ;;  %7600 = vmatpush3.bf16.msra.mxu0 %v8024_v10  ;;  %v5047_v50 = vshll.u32 %v9745_v18, 16  ;;  %v5051_v36 = vshrl.u32 %v9745_v18, 16  ;;  %v9783_v21 = vcombine.low %v3291_v59, %v3301_v16  ;;  %v8093_v9 = vld [vmem:[%s10085_s3 + $0x110] sm:$0xff]  }
 0x17f   : > { %7601 = vmatprep.subr.bf16.mxu0 %v8027_v2  ;;  %v10157_v16 = vsel %vm8286_vm9, %v9580_v39, %v9522_v62  ;;  %v6644_v58 = vcombine.low %v10158_v29, %v4988_v45  ;;  %v8092_v62 = vld [vmem:[%s10085_s3 + $0x108] sm:$0xff]   ;;  %v5040_v39 = vrot.slane %v5038_v26, 4  ;;  %v5012_v11 = vsel %vm8286_vm9, %v5007_v52, %v9711_v25 }
 0x180   : > { %v9764_v24 = vsel %vm8619_vm14, %v6666_v53, %v5536_v17  ;;  %v5538_v30 = vrot.slane %v5536_v17, 4  ;;  %v5020_v53 = vor.u32 %v5019_v38, %v9713_v56  ;;  %v10156_v56 = vsel %vm8286_vm9, %v9582_v32, %v9584_v49  ;;  %v4698_v32 = vld [vmem:[#allocation2 + $0xcc] sm:$0xf]  ;;  %v5417_v49 = vld [vmem:[#allocation2 + $0x90] sm:$0xe] }
 0x181   : > { %v6643_v55 = vcombine.low %v10157_v16, %v10156_v56  ;;  %v9822_v38 = vrot.slane %v5047_v50, 5  ;;  %v5053_v22 = vrot.slane %v5051_v36, 4  ;;  %v9833_v17 = vrot.slane %v5033_v15, 5 }
 0x182   : > { %v9780_v10 = vsel %vm8619_vm14, %v5538_v30, %v5539_v43  ;;  %7602 = vmatpush3.bf16.msra.mxu0 %v8027_v2  ;;  %v9829_v45 = vrot.slane %v5020_v53, 4  ;;  %v5418_v43 = vld [vmem:[#allocation2 + $0x9c] sm:$0xe]  ;;  %v5065_v8 = vshll.u32 %v4698_v32, 16  ;;  %v6667_v30 = vrot.slane %v5417_v49, 9 }
 0x183   : > { %v6698_v57 = vcombine.low %v9764_v24, %v9780_v10  ;;  %v8022_v2 = vld [vmem:[#allocation2 + $0x3c] sm:$0xff]   ;;  %v5057_v25 = vshll.u32 %v9817_v20, 16  ;;  %v5071_v46 = vshll.u32 %v9824_v5, 16  ;;  %v5075_v50 = vshrl.u32 %v9824_v5, 16 }
 0x184   : > { %7572 = vmatmul.mubr.bf16.gmra.mrb[16].mxu0 %v6642_v31  ;;  %v5546_v15 = vrot.slane %v9529_v14, 5  ;;  %v5044_v36 = vor.u32 %v5043_v7, %v5040_v39  ;;  %v5054_v59 = vor.u32 %v5053_v22, %v9822_v38  ;;  %v6668_v53 = vrot.slane %v5418_v43, 9  ;;  %v9859_v22 = vld [vmem:[#allocation2 + $0xd4] sm:$0x1] }
 0x185   : > { %7364 = vmatmul.mubr.bf16.vlgmr.msra.gmra.mrb[0].mxu1 %v8017_v28  ;;  %v5062_v28 = vshrl.u32 %v4698_v32, 16  ;;  %7575 = vmatprep.mubr.bf16.mxu0 %v6643_v55  ;;  %v6645_v31 = vcombine.low %v5002_v19, %v5012_v11  ;;  %v5550_v56 = vrot.slane %v9534_v60, 5  ;;  %v5553_v16 = vrot.slane %v9564_v27, 5  ;;  %v8094_v60 = vld [vmem:[%s10085_s3 + $0x118] sm:$0xff]  }
 0x186   : > { %7643 = vmatpush3.bf16.msra.mxu1 %v10155_v6  ;;  %7367 = vmatprep.mubr.bf16.mxu1 %v8019_v37  ;;  %v10159_v37 = vld [vmem:[#allocation11_spill] sm:$0xff]  ;;  %v5031_v14 = vrot.slane %v5030_v23, 4  ;;  %v5067_v29 = vrot.slane %v5065_v8, 5  ;;  %v5059_v49 = vrot.slane %v5057_v25, 5  ;;  %v9854_v19 = vrot.slane %v5071_v46, 5 }
 0x187   : > { %7636 = vmatprep.subr.bf16.mxu1 %v8092_v62  ;;  %v5543_v26 = vrot.slane %v10159_v37, 5  ;;  %v5064_v55 = vrot.slane %v5062_v28, 4  ;;  %v5552_v39 = vrot.slane %v5550_v56, 4  ;;  %v5045_v27 = vrot.slane %v5044_v36, 4  ;;  %v5407_v25 = vld [vmem:[#allocation2 + $0x18] sm:$0xe] }
 0x188   : > { %v5055_v7 = vrot.slane %v5054_v59, 4  ;;  %v9865_v23 = vsel %vm8619_vm14, %v6668_v53, %v5550_v56  ;;  %v5026_v28 = vsel %vm8286_vm9, %v9829_v45, %v9752_v54  ;;  %v5036_v8 = vsel %vm8286_vm9, %v5031_v14, %v9833_v17  ;;  %v5419_v46 = vld [vmem:[#allocation2 + $0xa8] sm:$0xe]  ;;  %v8095_v17 = vld [vmem:[%s10085_s3 + $0x120] sm:$0xff]  }
 0x189   : > { %v5545_v52 = vrot.slane %v5543_v26, 4  ;;  %v9846_v6 = vsel %vm8619_vm14, %v6667_v30, %v5543_v26  ;;  %v9869_v43 = vsel %vm8619_vm14, %v5552_v39, %v5553_v16  ;;  %v5068_v30 = vor.u32 %v5067_v29, %v5064_v55  ;;  %v8025_v26 = vld [vmem:[#allocation2 + $0x54] sm:$0xff]   ;;  %v8097_v29 = vld [vmem:[#allocation2 + $0x20] sm:$0x1] }
 0x18a   : > { %7644 = vmatpush3.bf16.msra.mxu1 %v8092_v62  ;;  %v5077_v62 = vrot.slane %v5075_v50, 4  ;;  %v6700_v37 = vcombine.low %v9865_v23, %v9869_v43  ;;  %v5050_v54 = vsel %vm8286_vm9, %v5045_v27, %v9822_v38  ;;  %v5060_v45 = vsel %vm8286_vm9, %v5055_v7, %v5059_v49  ;;  %v8096_v50 = vld [vmem:[#allocation2 + $0x1c] sm:$0xf] }
 0x18b   : > { %7637 = vmatprep.subr.bf16.mxu1 %v8093_v9  ;;  %v9852_v32 = vsel %vm8619_vm14, %v5545_v52, %v5546_v15  ;;  %v5473_v15 = vrot.slane %v8096_v50, 5  ;;  %v5069_v36 = vrot.slane %v5068_v30, 4  ;;  %v6657_v59 = vrot.slane %v5407_v25, 9  ;;  %v8101_v50 = vld [vmem:[%s10085_s3 + $0x130] sm:$0xff]  }
 0x18c   : > { %v6699_v11 = vcombine.low %v9846_v6, %v9852_v32  ;;  %7576 = vmatmul.mubr.bf16.gmra.mrb[20].mxu0 %v6644_v58  ;;  %v5081_v58 = vshll.u32 %v9859_v22, 16  ;;  %v6669_v52 = vrot.slane %v5419_v46, 9  ;;  %v5557_v53 = vrot.slane %v9603_v41, 5  ;;  %v8120_v32 = vld [vmem:[#allocation2 + $0xc8] sm:$0x1] }
 0x18d   : > { %7368 = vmatmul.mubr.bf16.gmra.mrb[4].mxu1 %v8020_v12  ;;  %v8023_v12 = vld [vmem:[#allocation2 + $0x48] sm:$0xff]   ;;  %7579 = vmatprep.mubr.bf16.mxu0 %v6645_v31  ;;  %v5420_v31 = vld [vmem:[#allocation2 + $0xb4] sm:$0xe]  ;;  %v6647_v38 = vcombine.low %v5050_v54, %v5060_v45  ;;  %v5560_v14 = vrot.slane %v9628_v33, 5  ;;  %v5475_v55 = vrot.slane %v5473_v15, 4  ;;  %v5476_v49 = vrot.slane %v8097_v29, 5 }
 0x18e   : > { %7371 = vmatprep.mubr.bf16.mxu1 %v8022_v2  ;;  %7645 = vmatpush3.bf16.msra.mxu1 %v8093_v9  ;;  %v5078_v2 = vor.u32 %v5077_v62, %v9854_v19  ;;  %v6646_v9 = vcombine.low %v5026_v28, %v5036_v8  ;;  %v5083_v16 = vrot.slane %v5081_v58, 5  ;;  %v8098_v62 = vld [vmem:[%s10085_s3 + $0x128] sm:$0xff]   ;;  %v9897_v39 = vsel %vm8619_vm14, %v6669_v52, %v5557_v53  ;;  %v8026_v33 = vld [vmem:[#allocation2 + $0x60] sm:$0xff]   ;;  %v5409_v54 = vld [vmem:[#allocation2 + $0x30] sm:$0xe] }
 0x18f   : > { %7638 = vmatprep.subr.bf16.mxu1 %v8094_v60  ;;  %v5559_v41 = vrot.slane %v5557_v53, 4  ;;  %v5564_v27 = vrot.slane %v9693_v51, 5  ;;  %v5567_v7 = vrot.slane %v9736_v61, 5  ;;  %v8099_v28 = vld [vmem:[#allocation2 + $0x28] sm:$0xf]  ;;  %v5474_v25 = vsel %vm8619_vm14, %v6657_v59, %v5473_v15  ;;  %v8104_v29 = vld [vmem:[%s10085_s3 + $0x138] sm:$0xff]  }
 0x190   : > { %v5079_v56 = vrot.slane %v5078_v2, 4  ;;  %v5480_v8 = vrot.slane %v8099_v28, 5  ;;  %v8028_v2 = vld [vmem:[#allocation2 + $0x6c] sm:$0xff]   ;;  %v5408_v51 = vld [vmem:[#allocation2 + $0x24] sm:$0xe]  ;;  %v5477_v46 = vsel %vm8619_vm14, %v5475_v55, %v5476_v49 }
 0x191   : > { %v9906_v30 = vsel %vm8619_vm14, %v5559_v41, %v5560_v14  ;;  %v8100_v45 = vld [vmem:[#allocation2 + $0x34] sm:$0xf]  ;;  %v6658_v52 = vrot.slane %v5408_v51, 9  ;;  %v6689_v59 = vcombine.low %v5474_v25, %v5477_v46  ;;  %v8103_v14 = vld [vmem:[#allocation2 + $0x38] sm:$0x1] }
 0x192   : > { %7646 = vmatpush3.bf16.msra.mxu1 %v8094_v60  ;;  %v6670_v60 = vrot.slane %v5420_v31, 9  ;;  %v6701_v61 = vcombine.low %v9897_v39, %v9906_v30  ;;  %v5482_v53 = vrot.slane %v5480_v8, 4  ;;  %v8102_v31 = vld [vmem:[#allocation2 + $0x2c] sm:$0x1]  ;;  %v5490_v55 = vrot.slane %v8103_v14, 5  ;;  %v8029_v41 = vld [vmem:[#allocation2 + $0x78] sm:$0xff]  }
 0x193   : > { %7639 = vmatprep.subr.bf16.mxu1 %v8095_v17  ;;  %v5422_v49 = vld [vmem:[#allocation2 + $0xcc] sm:$0xe]  ;;  %v5410_v51 = vld [vmem:[#allocation2 + $0x3c] sm:$0xe]  ;;  %v8106_v46 = vld [vmem:[#allocation2 + $0x70] sm:$0xf] }
 0x194   : > { %7580 = vmatmul.mubr.bf16.gmra.mrb[24].mxu0 %v6646_v9  ;;  %v9914_v58 = vsel %vm8619_vm14, %v6670_v60, %v5564_v27  ;;  %v5481_v60 = vsel %vm8619_vm14, %v6658_v52, %v5480_v8  ;;  %v5578_v8 = vrot.slane %v9824_v5, 5  ;;  %v5581_v52 = vrot.slane %v9859_v22, 5 }
 0x195   : > { %7372 = vmatmul.mubr.bf16.gmra.mrb[8].mxu1 %v8023_v12  ;;  %v5074_v12 = vsel %vm8286_vm9, %v5069_v36, %v9854_v19  ;;  %7583 = vmatprep.mubr.bf16.mxu0 %v6647_v38  ;;  %v5566_v19 = vrot.slane %v5564_v27, 4  ;;  %v5483_v38 = vrot.slane %v8102_v31, 5 }
 0x196   : > { %7375 = vmatprep.mubr.bf16.mxu1 %v8025_v26  ;;  %7647 = vmatpush3.bf16.msra.mxu1 %v8095_v17  ;;  %v5084_v26 = vsel %vm8286_vm9, %v5079_v56, %v5083_v16  ;;  %v5487_v17 = vrot.slane %v8100_v45, 5  ;;  %v6659_v56 = vrot.slane %v5409_v54, 9  ;;  %v3264_v54 = vshll.u32 %v8106_v46, 16 }
 0x197   : > { %7640 = vmatprep.subr.bf16.mxu1 %v8098_v62  ;;  %v9925_v9 = vsel %vm8619_vm14, %v5566_v19, %v5567_v7  ;;  %v6648_v36 = vcombine.low %v5074_v12, %v5084_v26  ;;  %v5484_v27 = vsel %vm8619_vm14, %v5482_v53, %v5483_v38  ;;  %v8030_v7 = vld [vmem:[#allocation2 + $0x84] sm:$0xff]   ;;  %v8105_v12 = vld [vmem:[#allocation2 + $0x40] sm:$0xf]  ;;  %v6672_v26 = vrot.slane %v5422_v49, 9 }
 0x198   : > { %v6702_v15 = vcombine.low %v9914_v58, %v9925_v9  ;;  %v5489_v16 = vrot.slane %v5487_v17, 4  ;;  %v5494_v28 = vrot.slane %v8105_v12, 5  ;;  %v3268_v45 = vshrl.u32 %v8106_v46, 16  ;;  %v8107_v38 = vld [vmem:[#allocation2 + $0x44] sm:$0x1] }
 0x199   : > { %v6660_v53 = vrot.slane %v5410_v51, 9  ;;  %v8108_v12 = vld [vmem:[#allocation2 + $0x74] sm:$0x1] }
 0x19a   : > { %7648 = vmatpush3.bf16.msra.mxu1 %v8098_v62  ;;  %v3038_v62 = vld [vmem:[#allocation2 + $0x6c] sm:$0xf]  ;;  %v5496_v31 = vrot.slane %v5494_v28, 4 }
 0x19b   : > { %7641 = vmatprep.subr.bf16.mxu1 %v8101_v50  ;;  %v3255_v19 = vshrl.u32 %v3038_v62, 16  ;;  %v3258_v25 = vshll.u32 %v3038_v62, 16  ;;  %v8031_v62 = vld [vmem:[#allocation2 + $0x90] sm:$0xff]   ;;  %v5495_v22 = vsel %vm8619_vm14, %v6660_v53, %v5494_v28 }
 0x19c   : > { %7584 = vmatmul.mubr.bf16.gmra.mrb[28].mxu0 %v6648_v36  ;;  %v5580_v36 = vrot.slane %v5578_v8, 4 }
 0x19d   : > { %7376 = vmatmul.mubr.bf16.gmra.mrb[12].mxu1 %v8026_v33  ;;  %7603 = vmatprep.mubr.bf16.mxu0 %v6689_v59  ;;  %v5488_v33 = vsel %vm8619_vm14, %v6659_v56, %v5487_v17  ;;  %v9943_v17 = vsel %vm8619_vm14, %v6672_v26, %v5578_v8  ;;  %v5497_v56 = vrot.slane %v8107_v38, 5  ;;  %v3260_v5 = vrot.slane %v3258_v25, 5  ;;  %v8109_v25 = vld [vmem:[#allocation2 + $0x88] sm:$0xf] }
 0x19e   : > { %7379 = vmatprep.mubr.bf16.mxu1 %v8028_v2  ;;  %7649 = vmatpush3.bf16.msra.mxu1 %v8101_v50  ;;  %v5491_v2 = vsel %vm8619_vm14, %v5489_v16, %v5490_v55  ;;  %v6690_v50 = vcombine.low %v5481_v60, %v5484_v27  ;;  %v3257_v16 = vrot.slane %v3255_v19, 4  ;;  %v9948_v14 = vsel %vm8619_vm14, %v5580_v36, %v5581_v52  ;;  %v8032_v60 = vld [vmem:[#allocation2 + $0x9c] sm:$0xff]   ;;  %v3044_v27 = vld [vmem:[#allocation2 + $0x84] sm:$0xf]  ;;  %v8033_v36 = vld [vmem:[#allocation2 + $0xa8] sm:$0xff]  }
 0x19f   : > { %7642 = vmatprep.subr.bf16.mxu1 %v8104_v29  ;;  %v6691_v59 = vcombine.low %v5488_v33, %v5491_v2  ;;  %v3266_v55 = vrot.slane %v3264_v54, 5  ;;  %v6704_v49 = vcombine.low %v9943_v17, %v9948_v14  ;;  %v3274_v26 = vshll.u32 %v8108_v12, 16  ;;  %v8034_v52 = vld [vmem:[#allocation2 + $0xb4] sm:$0xff]   ;;  %v8112_v12 = vld [vmem:[#allocation2 + $0xa0] sm:$0xf] }
 0x1a0   : > { %v3303_v51 = vshrl.u32 %v3044_v27, 16  ;;  %v3306_v19 = vshll.u32 %v3044_v27, 16  ;;  %v3312_v8 = vshll.u32 %v8109_v25, 16  ;;  %v3316_v46 = vshrl.u32 %v8109_v25, 16  ;;  %v8111_v27 = vld [vmem:[#allocation2 + $0x94] sm:$0xf] }
 0x1a2   : > { %7650 = vmatpush3.bf16.msra.mxu1 %v8104_v29  ;;  %v3270_v29 = vrot.slane %v3268_v45, 4  ;;  %v3047_v45 = vld [vmem:[#allocation2 + $0x90] sm:$0xf]  ;;  %v3308_v53 = vrot.slane %v3306_v19, 5  ;;  %v9959_v38 = vrot.slane %v3312_v8, 5  ;;  %v8035_v8 = vld [vmem:[#allocation2 + $0xc0] sm:$0xff]  }
 0x1a4   : > { %7604 = vmatmul.mubr.bf16.vlgmr.msra.gmra.mrb[0].mxu0 %v6690_v50  ;;  %v3271_v33 = vor.u32 %v3270_v29, %v3266_v55  ;;  %v3276_v50 = vrot.slane %v3274_v26, 5  ;;  %v3050_v29 = vld [vmem:[#allocation2 + $0x9c] sm:$0xf]  ;;  %v3360_v26 = vshll.u32 %v8112_v12, 16 }
 0x1a5   : > { %7380 = vmatmul.mubr.bf16.gmra.mrb[16].mxu1 %v8029_v41  ;;  %7607 = vmatprep.mubr.bf16.mxu0 %v6691_v59  ;;  %v5498_v41 = vsel %vm8619_vm14, %v5496_v31, %v5497_v56  ;;  %v3305_v59 = vrot.slane %v3303_v51, 4  ;;  %v10160_v31 = vcombine.low %v9649_v34, %v9665_v47  ;;  %v3318_v56 = vrot.slane %v3316_v46, 4 }
 0x1a6   : > { %7383 = vmatprep.mubr.bf16.mxu1 %v8030_v7  ;;  %v3261_v7 = vor.u32 %v3260_v5, %v3257_v16  ;;  %v6692_v2 = vcombine.low %v5495_v22, %v5498_v41  ;;  %v3272_v28 = vrot.slane %v3271_v33, 4  ;;  %v3327_v16 = vshrl.u32 %v3047_v45, 16  ;;  %v8110_v41 = vld [vmem:[#allocation2 + $0x8c] sm:$0x1] }
 0x1a7   : > { %v3330_v5 = vshll.u32 %v3047_v45, 16  ;;  %v3340_v33 = vshrl.u32 %v8111_v27, 16  ;;  %v3351_v34 = vshrl.u32 %v3050_v29, 16  ;;  %v3354_v47 = vshll.u32 %v3050_v29, 16 }
 0x1a8   : > { %v3262_v54 = vrot.slane %v3261_v7, 4  ;;  %v3277_v22 = vsel %vm8286_vm9, %v3272_v28, %v3276_v50  ;;  %v3336_v7 = vshll.u32 %v8111_v27, 16  ;;  %v3309_v51 = vor.u32 %v3308_v53, %v3305_v59  ;;  %v3053_v59 = vld [vmem:[#allocation2 + $0xa8] sm:$0xf] }
 0x1a9   : > { %v3319_v19 = vor.u32 %v3318_v56, %v9959_v38  ;;  %v3329_v25 = vrot.slane %v3327_v16, 4  ;;  %v3342_v28 = vrot.slane %v3340_v33, 4  ;;  %v10161_v50 = vcombine.low %v9669_v13, %v9686_v44 }
 0x1aa   : > { %v9966_v45 = vrot.slane %v3336_v7, 5  ;;  %v9971_v29 = vrot.slane %v3360_v26, 5  ;;  %v10162_v53 = vcombine.low %v9678_v40, %v9699_v63  ;;  %v3310_v56 = vrot.slane %v3309_v51, 4  ;;  %v3056_v7 = vld [vmem:[#allocation2 + $0xb4] sm:$0xf] }
 0x1ab   : > { %v3320_v16 = vrot.slane %v3319_v19, 4  ;;  %v3375_v44 = vshrl.u32 %v3053_v59, 16  ;;  %v3378_v27 = vshll.u32 %v3053_v59, 16  ;;  %v3399_v19 = vshrl.u32 %v3056_v7, 16 }
 0x1ac   : > { %7608 = vmatmul.mubr.bf16.gmra.mrb[4].mxu0 %v6692_v2  ;;  %v3364_v2 = vshrl.u32 %v8112_v12, 16  ;;  %v3315_v63 = vsel %vm8286_vm9, %v3310_v56, %v9959_v38 }
 0x1ad   : > { %7384 = vmatmul.mubr.bf16.gmra.mrb[20].mxu1 %v8031_v62  ;;  %7611 = vmatprep.mubr.bf16.mxu0 %v10160_v31  ;;  %v3267_v62 = vsel %vm8286_vm9, %v3262_v54, %v3266_v55  ;;  %v3332_v55 = vrot.slane %v3330_v5, 5  ;;  %v3356_v31 = vrot.slane %v3354_v47, 5  ;;  %v8115_v47 = vld [vmem:[#allocation2 + $0xac] sm:$0xf] }
 0x1ae   : > { %7387 = vmatprep.mubr.bf16.mxu1 %v8032_v60  ;;  %v3322_v60 = vshll.u32 %v8110_v41, 16  ;;  %v6505_v46 = vcombine.low %v3267_v62, %v3277_v22  ;;  %v8113_v62 = vld [vmem:[#allocation2 + $0x98] sm:$0x1]  ;;  %v3343_v41 = vor.u32 %v3342_v28, %v9966_v45  ;;  %v3384_v12 = vshll.u32 %v8115_v47, 16 }
 0x1af   : > { %v3333_v5 = vor.u32 %v3332_v55, %v3329_v25  ;;  %v3346_v22 = vshll.u32 %v8113_v62, 16  ;;  %v3388_v40 = vshrl.u32 %v8115_v47, 16  ;;  %v3402_v25 = vshll.u32 %v3056_v7, 16  ;;  %v8116_v55 = vld [vmem:[#allocation2 + $0xb8] sm:$0xf] }
 0x1b0   : > { %v3324_v54 = vrot.slane %v3322_v60, 5  ;;  %v8114_v60 = vld [vmem:[#allocation2 + $0xa4] sm:$0x1]  ;;  %v3412_v28 = vshrl.u32 %v8116_v55, 16 }
 0x1b1   : > { %v3370_v13 = vshll.u32 %v8114_v60, 16  ;;  %v3348_v51 = vrot.slane %v3346_v22, 5  ;;  %v3390_v56 = vrot.slane %v3388_v40, 4  ;;  %v8119_v40 = vld [vmem:[#allocation2 + $0xbc] sm:$0x1] }
 0x1b2   : > { %v3325_v26 = vsel %vm8286_vm9, %v3320_v16, %v3324_v54  ;;  %v3401_v16 = vrot.slane %v3399_v19, 4  ;;  %v3414_v22 = vrot.slane %v3412_v28, 4 }
 0x1b3   : > { %v6507_v54 = vcombine.low %v3315_v63, %v3325_v26  ;;  %v3418_v63 = vshll.u32 %v8119_v40, 16 }
 0x1b4   : > { %7612 = vmatmul.mubr.bf16.gmra.mrb[8].mxu0 %v10161_v50  ;;  %v3344_v50 = vrot.slane %v3343_v41, 4  ;;  %v3059_v41 = vld [vmem:[#allocation2 + $0xc0] sm:$0xf] }
 0x1b5   : > { %7388 = vmatmul.mubr.bf16.gmra.mrb[24].mxu1 %v8033_v36  ;;  %v3353_v36 = vrot.slane %v3351_v34, 4  ;;  %7615 = vmatprep.mubr.bf16.mxu0 %v10162_v53  ;;  %v3386_v53 = vrot.slane %v3384_v12, 5  ;;  %v3426_v7 = vshll.u32 %v3059_v41, 16 }
 0x1b6   : > { %7391 = vmatprep.mubr.bf16.mxu1 %v8034_v52  ;;  %v3366_v52 = vrot.slane %v3364_v2, 4  ;;  %v3334_v2 = vrot.slane %v3333_v5, 4  ;;  %v3404_v5 = vrot.slane %v3402_v25, 5 }
 0x1b7   : > { %v3357_v33 = vor.u32 %v3356_v31, %v3353_v36  ;;  %v3372_v36 = vrot.slane %v3370_v13, 5  ;;  %v3377_v31 = vrot.slane %v3375_v44, 4  ;;  %v3391_v44 = vor.u32 %v3390_v56, %v3386_v53 }
 0x1b8   : > { %v3367_v34 = vor.u32 %v3366_v52, %v9971_v29  ;;  %v3380_v52 = vrot.slane %v3378_v27, 5  ;;  %v3339_v60 = vsel %vm8286_vm9, %v3334_v2, %v9966_v45  ;;  %v3423_v27 = vshrl.u32 %v3059_v41, 16  ;;  %v8118_v45 = vld [vmem:[#allocation2 + $0xc4] sm:$0xf] }
 0x1b9   : > { %v3358_v59 = vrot.slane %v3357_v33, 4  ;;  %v3432_v33 = vshll.u32 %v8118_v45, 16  ;;  %v3405_v47 = vor.u32 %v3404_v5, %v3401_v16  ;;  %v3392_v2 = vrot.slane %v3391_v44, 4 }
 0x1ba   : > { %v3368_v38 = vrot.slane %v3367_v34, 4  ;;  %v3436_v34 = vshrl.u32 %v8118_v45, 16  ;;  %v3425_v19 = vrot.slane %v3423_v27, 4  ;;  %v3428_v25 = vrot.slane %v3426_v7, 5 }
 0x1bb   : > { %v3363_v42 = vsel %vm8286_vm9, %v3358_v59, %v9971_v29  ;;  %v3406_v28 = vrot.slane %v3405_v47, 4  ;;  %v5574_v56 = vrot.slane %v9817_v20, 5 }
 0x1bc   : > { %v3373_v4 = vsel %vm8286_vm9, %v3368_v38, %v3372_v36  ;;  %v3420_v36 = vrot.slane %v3418_v63, 5 }
 0x1bd   : > { %7392 = vmatmul.mubr.bf16.gmra.mrb[28].mxu1 %v8035_v8  ;;  %v3408_v8 = vshll.u32 %v8116_v55, 16  ;;  %v6509_v29 = vcombine.low %v3363_v42, %v3373_v4  ;;  %v3434_v55 = vrot.slane %v3432_v33, 5 }
 0x1be   : > { %7427 = vmatprep.mubr.bf16.mxu1 %v6505_v46  ;;  %v10163_v46 = vcombine.low %v9708_v48, %v9722_v35  ;;  %v3349_v48 = vsel %vm8286_vm9, %v3344_v50, %v3348_v51  ;;  %v8117_v35 = vld [vmem:[#allocation2 + $0xb0] sm:$0x1] }
 0x1bf   : > { %v3410_v62 = vrot.slane %v3408_v8, 5  ;;  %v3394_v13 = vshll.u32 %v8117_v35, 16  ;;  %v3438_v8 = vrot.slane %v3436_v34, 4 }
 0x1c0   : > { %7616 = vmatmul.mubr.bf16.gmra.mrb[12].mxu0 %v10163_v46 }
 0x1c1   : > { %7619 = vmatprep.mubr.bf16.mxu0 %v6697_v3  ;;  %v3381_v3 = vor.u32 %v3380_v52, %v3377_v31  ;;  %v3415_v12 = vor.u32 %v3414_v22, %v3410_v62  ;;  %v3396_v51 = vrot.slane %v3394_v13, 5  ;;  %v5421_v31 = vld [vmem:[#allocation2 + $0xc0] sm:$0xe]  ;;  %v5571_v52 = vrot.slane %v9745_v18, 5 }
 0x1c2   : > { %v3439_v6 = vor.u32 %v3438_v8, %v3434_v55  ;;  %v6671_v46 = vrot.slane %v5421_v31, 9  ;;  %v3411_v59 = vsel %vm8286_vm9, %v3406_v28, %v3410_v62 }
 0x1c3   : > { %v3382_v26 = vrot.slane %v3381_v3, 4  ;;  %v3416_v50 = vrot.slane %v3415_v12, 4  ;;  %v3397_v10 = vsel %vm8286_vm9, %v3392_v2, %v3396_v51  ;;  %v5573_v18 = vrot.slane %v5571_v52, 4 }
 0x1c4   : > { %v3440_v5 = vrot.slane %v3439_v6, 4  ;;  %v5572_v62 = vsel %vm8619_vm14, %v6671_v46, %v5571_v52 }
 0x1c5   : > { %7428 = vmatmul.mubr.bf16.vlgmr.msra.gmra.mrb[16].mxu1 %v9783_v21  ;;  %v6508_v21 = vcombine.low %v3339_v60, %v3349_v48  ;;  %v3387_v24 = vsel %vm8286_vm9, %v3382_v26, %v3386_v53  ;;  %v3421_v38 = vsel %vm8286_vm9, %v3416_v50, %v3420_v36  ;;  %v5575_v41 = vsel %vm8619_vm14, %v5573_v18, %v5574_v56 }
 0x1c6   : > { %7431 = vmatprep.mubr.bf16.mxu1 %v6507_v54  ;;  %v6510_v53 = vcombine.low %v3387_v24, %v3397_v10  ;;  %v6511_v54 = vcombine.low %v3411_v59, %v3421_v38  ;;  %v6703_v43 = vcombine.low %v5572_v62, %v5575_v41 }
 0x1c8   : > { %7620 = vmatmul.mubr.bf16.gmra.mrb[16].mxu0 %v6698_v57  ;;  %v3429_v57 = vor.u32 %v3428_v25, %v3425_v19 }
 0x1c9   : > { %7623 = vmatprep.mubr.bf16.mxu0 %v6699_v11  ;;  %v3442_v11 = vshll.u32 %v8120_v32, 16 }
 0x1ca   : > { %v3430_v16 = vrot.slane %v3429_v57, 4 }
 0x1cb   : > { %v3444_v22 = vrot.slane %v3442_v11, 5 }
 0x1cc   : > { %v3435_v20 = vsel %vm8286_vm9, %v3430_v16, %v3434_v55 }
 0x1cd   : > { %7432 = vmatmul.mubr.bf16.gmra.mrb[20].mxu1 %v6508_v21  ;;  %v3445_v23 = vsel %vm8286_vm9, %v3440_v5, %v3444_v22 }
 0x1ce   : > { %7435 = vmatprep.mubr.bf16.mxu1 %v6509_v29 }
 0x1d0   : > { %7624 = vmatmul.mubr.bf16.gmra.mrb[20].mxu0 %v6700_v37  ;;  %v6512_v37 = vcombine.low %v3435_v20, %v3445_v23 }
 0x1d1   : > { %7627 = vmatprep.mubr.bf16.mxu0 %v6701_v61 }
 0x1d5   : > { %7436 = vmatmul.mubr.bf16.gmra.mrb[24].mxu1 %v6510_v53 }
 0x1d6   : > { %7439 = vmatprep.mubr.bf16.mxu1 %v6511_v54 }
 0x1d8   : > { %7628 = vmatmul.mubr.bf16.gmra.mrb[24].mxu0 %v6702_v15 }
 0x1d9   : > { %7631 = vmatprep.mubr.bf16.mxu0 %v6703_v43 }
 0x1dd   : > { %7440 = vmatmul.mubr.bf16.gmra.mrb[28].mxu1 %v6512_v37 }
 0x1e0   : > { %7632 = vmatmul.mubr.bf16.gmra.mrb[28].mxu0 %v6704_v49 }
 0x258   : > { %v7365_v1 = vpop.f32.mrb[0].mxu1 }
 0x259   : > { %v2855_v39 = vpop.f32.mrb[1].mxu1 }
 0x25a   : > { %v7366_v30 = vpop.f32.mrb[2].mxu1 }
 0x25b   : > { %v2858_v61 = vpop.f32.mrb[3].mxu1 }
 0x260   : > { %v7369_v60 = vpop.f32.mrb[4].mxu1 }
 0x261   : > { %v2871_v48 = vpop.f32.mrb[5].mxu1 }
 0x262   : > { %v7370_v0 = vpop.f32.mrb[6].mxu1 }
 0x263   : > { %v2874_v35 = vpop.f32.mrb[7].mxu1 }
 0x268   : > { %v7373_v13 = vpop.f32.mrb[8].mxu1 }
 0x269   : > { %v2887_v42 = vpop.f32.mrb[9].mxu1 }
 0x26a   : > { %v7374_v58 = vpop.f32.mrb[10].mxu1 }
 0x26b   : > { %v2890_v9 = vpop.f32.mrb[11].mxu1 }
 0x270   : > { %v10036_v15 = vpop.f32.mrb[12].mxu1 }
 0x271   : > { %v10038_v4 = vpop.f32.mrb[13].mxu1 }
 0x272   : > { %v10040_v3 = vpop.f32.mrb[14].mxu1 }
 0x273   : > { %v10042_v17 = vpop.f32.mrb[15].mxu1 }
 0x277   : > { %v7605_v14 = vpop.f32.mrb[0].mxu0 }
 0x278   : > { %v7651_v49 = vadd.f32 %v7605_v14, %v7365_v1  ;;  %v5746_v44 = vpop.f32.mrb[1].mxu0 }
 0x279   : > { %v7652_v27 = vadd.f32 %v5746_v44, %v2855_v39  ;;  %v7606_v7 = vpop.f32.mrb[2].mxu0 }
 0x27a   : > { %v7653_v45 = vadd.f32 %v7606_v7, %v7366_v30  ;;  %v5749_v33 = vpop.f32.mrb[3].mxu0  ;;  %v6105_v29 = vmul.f32 %v7651_v49, %v7651_v49 }
 0x27b   : > { %v7654_v34 = vadd.f32 %v5749_v33, %v2858_v61  ;;  %v6103_v12 = vmul.f32 %v7652_v27, %v7652_v27 }
 0x27c   : > { %v6885_v47 = vpack.c.bf16 %v7653_v45, %v7651_v49  ;;  %v6106_v55 = vmul.f32 %v7653_v45, %v7653_v45 }
 0x27d   : > { %v6880_v40 = vpack.c.bf16 %v7654_v34, %v7652_v27  ;;  %v6065_v63 = vadd.f32 %v7654_v34, %v7652_v27  ;;  %v6104_v21 = vmul.f32 %v7654_v34, %v7654_v34 }
 0x27e   : > { %6972 = vst [vmem:[%s10049_s13 + $0x8] sm:$0xff] %v6885_v47  }
 0x27f   : > { %6881 = vst [vmem:[%s10049_s13] sm:$0xff] %v6880_v40   ;;  %v6066_v26 = vadd.f32 %v7651_v49, %v6065_v63  ;;  %v6135_v2 = vadd.f32 %v6104_v21, %v6103_v12  ;;  %v7609_v51 = vpop.f32.mrb[4].mxu0 }
 0x280   : > { %v7655_v19 = vadd.f32 %v7609_v51, %v7369_v60  ;;  %v5762_v25 = vpop.f32.mrb[5].mxu0 }
 0x281   : > { %v6136_v8 = vadd.f32 %v6135_v2, %v6105_v29  ;;  %v7656_v28 = vadd.f32 %v5762_v25, %v2871_v48  ;;  %v6067_v50 = vadd.f32 %v7653_v45, %v6066_v26  ;;  %v7610_v36 = vpop.f32.mrb[6].mxu0 }
 0x282   : > { %v7657_v31 = vadd.f32 %v7610_v36, %v7370_v0  ;;  %v5765_v52 = vpop.f32.mrb[7].mxu0  ;;  %v6109_v18 = vmul.f32 %v7655_v19, %v7655_v19 }
 0x283   : > { %v6068_v24 = vadd.f32 %v7656_v28, %v6067_v50  ;;  %v6107_v10 = vmul.f32 %v7656_v28, %v7656_v28  ;;  %v6137_v57 = vadd.f32 %v6136_v8, %v6106_v55  ;;  %v7658_v6 = vadd.f32 %v5765_v52, %v2874_v35 }
 0x284   : > { %v6895_v32 = vpack.c.bf16 %v7657_v31, %v7655_v19  ;;  %v6110_v22 = vmul.f32 %v7657_v31, %v7657_v31 }
 0x285   : > { %v6138_v11 = vadd.f32 %v6137_v57, %v6107_v10  ;;  %v6890_v46 = vpack.c.bf16 %v7658_v6, %v7656_v28  ;;  %v6069_v59 = vadd.f32 %v7658_v6, %v6068_v24  ;;  %v6108_v38 = vmul.f32 %v7658_v6, %v7658_v6 }
 0x286   : > { %6974 = vst [vmem:[%s10049_s13 + $0x18] sm:$0xff] %v6895_v32  }
 0x287   : > { %6973 = vst [vmem:[%s10049_s13 + $0x10] sm:$0xff] %v6890_v46   ;;  %v6070_v56 = vadd.f32 %v7655_v19, %v6069_v59  ;;  %v6139_v53 = vadd.f32 %v6138_v11, %v6108_v38  ;;  %v7613_v54 = vpop.f32.mrb[8].mxu0 }
 0x288   : > { %v7659_v16 = vadd.f32 %v7613_v54, %v7373_v13  ;;  %v5778_v5 = vpop.f32.mrb[9].mxu0 }
 0x289   : > { %v6140_v62 = vadd.f32 %v6139_v53, %v6109_v18  ;;  %v7660_v41 = vadd.f32 %v5778_v5, %v2887_v42  ;;  %v6071_v20 = vadd.f32 %v7657_v31, %v6070_v56  ;;  %v7614_v23 = vpop.f32.mrb[10].mxu0 }
 0x28a   : > { %v7661_v43 = vadd.f32 %v7614_v23, %v7374_v58  ;;  %v5781_v37 = vpop.f32.mrb[11].mxu0  ;;  %v6113_v13 = vmul.f32 %v7659_v16, %v7659_v16 }
 0x28b   : > { %v6072_v1 = vadd.f32 %v7660_v41, %v6071_v20  ;;  %v6111_v39 = vmul.f32 %v7660_v41, %v7660_v41  ;;  %v6141_v30 = vadd.f32 %v6140_v62, %v6110_v22  ;;  %v7662_v61 = vadd.f32 %v5781_v37, %v2890_v9 }
 0x28c   : > { %v6905_v60 = vpack.c.bf16 %v7661_v43, %v7659_v16  ;;  %v6114_v58 = vmul.f32 %v7661_v43, %v7661_v43 }
 0x28d   : > { %v6142_v48 = vadd.f32 %v6141_v30, %v6111_v39  ;;  %v6900_v0 = vpack.c.bf16 %v7662_v61, %v7660_v41  ;;  %v6073_v35 = vadd.f32 %v7662_v61, %v6072_v1  ;;  %v6112_v14 = vmul.f32 %v7662_v61, %v7662_v61 }
 0x28e   : > { %6976 = vst [vmem:[%s10049_s13 + $0x28] sm:$0xff] %v6905_v60  }
 0x28f   : > { %6975 = vst [vmem:[%s10049_s13 + $0x20] sm:$0xff] %v6900_v0   ;;  %v6074_v49 = vadd.f32 %v7659_v16, %v6073_v35  ;;  %v6143_v44 = vadd.f32 %v6142_v48, %v6112_v14 }
 0x291   : > { %v6144_v45 = vadd.f32 %v6143_v44, %v6113_v13  ;;  %v6075_v34 = vadd.f32 %v7661_v43, %v6074_v49 }
 0x293   : > { %v7617_v42 = vpop.f32.mrb[12].mxu0  ;;  %v6145_v21 = vadd.f32 %v6144_v45, %v6114_v58 }
 0x294   : > { %v7663_v27 = vadd.f32 %v7617_v42, %v10036_v15  ;;  %v5794_v7 = vpop.f32.mrb[13].mxu0 }
 0x295   : > { %v7664_v33 = vadd.f32 %v5794_v7, %v10038_v4  ;;  %v7618_v9 = vpop.f32.mrb[14].mxu0 }
 0x296   : > { %v7665_v47 = vadd.f32 %v7618_v9, %v10040_v3  ;;  %v5797_v12 = vpop.f32.mrb[15].mxu0  ;;  %v6117_v28 = vmul.f32 %v7663_v27, %v7663_v27 }
 0x297   : > { %v6076_v40 = vadd.f32 %v7664_v33, %v6075_v34  ;;  %v6115_v63 = vmul.f32 %v7664_v33, %v7664_v33  ;;  %v7666_v29 = vadd.f32 %v5797_v12, %v10042_v17 }
 0x298   : > { %v7429_v26 = vpop.f32.mrb[16].mxu1  ;;  %v6915_v2 = vpack.c.bf16 %v7665_v47, %v7663_v27  ;;  %v6118_v24 = vmul.f32 %v7665_v47, %v7665_v47 }
 0x299   : > { %v3673_v15 = vpop.f32.mrb[17].mxu1  ;;  %v6146_v51 = vadd.f32 %v6145_v21, %v6115_v63  ;;  %v6910_v19 = vpack.c.bf16 %v7666_v29, %v7664_v33  ;;  %v6077_v25 = vadd.f32 %v7666_v29, %v6076_v40  ;;  %v6116_v55 = vmul.f32 %v7666_v29, %v7666_v29 }
 0x29a   : > { %v7430_v4 = vpop.f32.mrb[18].mxu1  ;;  %6978 = vst [vmem:[%s10049_s13 + $0x38] sm:$0xff] %v6915_v2  }
 0x29b   : > { %v3676_v8 = vpop.f32.mrb[19].mxu1  ;;  %6977 = vst [vmem:[%s10049_s13 + $0x30] sm:$0xff] %v6910_v19   ;;  %v6078_v3 = vadd.f32 %v7663_v27, %v6077_v25  ;;  %v6147_v50 = vadd.f32 %v6146_v51, %v6116_v55  ;;  %v7621_v36 = vpop.f32.mrb[16].mxu0 }
 0x29c   : > { %v7667_v31 = vadd.f32 %v7621_v36, %v7429_v26  ;;  %v5810_v52 = vpop.f32.mrb[17].mxu0 }
 0x29d   : > { %v6148_v10 = vadd.f32 %v6147_v50, %v6117_v28  ;;  %v7668_v17 = vadd.f32 %v5810_v52, %v3673_v15  ;;  %v6079_v57 = vadd.f32 %v7665_v47, %v6078_v3  ;;  %v7622_v6 = vpop.f32.mrb[18].mxu0 }
 0x29e   : > { %v7669_v32 = vadd.f32 %v7622_v6, %v7430_v4  ;;  %v5813_v11 = vpop.f32.mrb[19].mxu0  ;;  %v6121_v23 = vmul.f32 %v7667_v31, %v7667_v31 }
 0x29f   : > { %v6080_v46 = vadd.f32 %v7668_v17, %v6079_v57  ;;  %v6119_v59 = vmul.f32 %v7668_v17, %v7668_v17  ;;  %v6149_v38 = vadd.f32 %v6148_v10, %v6118_v24  ;;  %v7670_v18 = vadd.f32 %v5813_v11, %v3676_v8 }
 0x2a0   : > { %v7433_v56 = vpop.f32.mrb[20].mxu1  ;;  %v6925_v53 = vpack.c.bf16 %v7669_v32, %v7667_v31  ;;  %v6122_v61 = vmul.f32 %v7669_v32, %v7669_v32 }
 0x2a1   : > { %v3689_v54 = vpop.f32.mrb[21].mxu1  ;;  %v6150_v16 = vadd.f32 %v6149_v38, %v6119_v59  ;;  %v6920_v5 = vpack.c.bf16 %v7670_v18, %v7668_v17  ;;  %v6081_v22 = vadd.f32 %v7670_v18, %v6080_v46  ;;  %v6120_v62 = vmul.f32 %v7670_v18, %v7670_v18 }
 0x2a2   : > { %v7434_v41 = vpop.f32.mrb[22].mxu1  ;;  %6980 = vst [vmem:[%s10049_s13 + $0x48] sm:$0xff] %v6925_v53  }
 0x2a3   : > { %v3692_v20 = vpop.f32.mrb[23].mxu1  ;;  %6979 = vst [vmem:[%s10049_s13 + $0x40] sm:$0xff] %v6920_v5   ;;  %v6082_v43 = vadd.f32 %v7667_v31, %v6081_v22  ;;  %v6151_v37 = vadd.f32 %v6150_v16, %v6120_v62  ;;  %v7625_v1 = vpop.f32.mrb[20].mxu0 }
 0x2a4   : > { %v7671_v39 = vadd.f32 %v7625_v1, %v7433_v56  ;;  %v5826_v30 = vpop.f32.mrb[21].mxu0 }
 0x2a5   : > { %v6152_v60 = vadd.f32 %v6151_v37, %v6121_v23  ;;  %v7672_v48 = vadd.f32 %v5826_v30, %v3689_v54  ;;  %v6083_v0 = vadd.f32 %v7669_v32, %v6082_v43  ;;  %v7626_v35 = vpop.f32.mrb[22].mxu0 }
 0x2a6   : > { %v7673_v14 = vadd.f32 %v7626_v35, %v7434_v41  ;;  %v5829_v13 = vpop.f32.mrb[23].mxu0  ;;  %v6125_v63 = vmul.f32 %v7671_v39, %v7671_v39 }
 0x2a7   : > { %v6084_v49 = vadd.f32 %v7672_v48, %v6083_v0  ;;  %v6123_v44 = vmul.f32 %v7672_v48, %v7672_v48  ;;  %v6153_v42 = vadd.f32 %v6152_v60, %v6122_v61  ;;  %v7674_v27 = vadd.f32 %v5829_v13, %v3692_v20 }
 0x2a8   : > { %v7437_v7 = vpop.f32.mrb[24].mxu1  ;;  %v6935_v58 = vpack.c.bf16 %v7673_v14, %v7671_v39  ;;  %v6126_v51 = vmul.f32 %v7673_v14, %v7673_v14 }
 0x2a9   : > { %v3705_v45 = vpop.f32.mrb[25].mxu1  ;;  %v6154_v33 = vadd.f32 %v6153_v42, %v6123_v44  ;;  %v6930_v34 = vpack.c.bf16 %v7674_v27, %v7672_v48  ;;  %v6085_v9 = vadd.f32 %v7674_v27, %v6084_v49  ;;  %v6124_v47 = vmul.f32 %v7674_v27, %v7674_v27 }
 0x2aa   : > { %v7438_v12 = vpop.f32.mrb[26].mxu1  ;;  %6982 = vst [vmem:[%s10049_s13 + $0x58] sm:$0xff] %v6935_v58  }
 0x2ab   : > { %v3708_v40 = vpop.f32.mrb[27].mxu1  ;;  %6981 = vst [vmem:[%s10049_s13 + $0x50] sm:$0xff] %v6930_v34   ;;  %v6086_v21 = vadd.f32 %v7671_v39, %v6085_v9  ;;  %v6155_v29 = vadd.f32 %v6154_v33, %v6124_v47  ;;  %v7629_v26 = vpop.f32.mrb[24].mxu0 }
 0x2ac   : > { %v7675_v2 = vadd.f32 %v7629_v26, %v7437_v7  ;;  %v5842_v15 = vpop.f32.mrb[25].mxu0 }
 0x2ad   : > { %v6156_v19 = vadd.f32 %v6155_v29, %v6125_v63  ;;  %v7676_v25 = vadd.f32 %v5842_v15, %v3705_v45  ;;  %v6087_v55 = vadd.f32 %v7673_v14, %v6086_v21  ;;  %v7630_v4 = vpop.f32.mrb[26].mxu0 }
 0x2ae   : > { %v7677_v8 = vadd.f32 %v7630_v4, %v7438_v12  ;;  %v5845_v28 = vpop.f32.mrb[27].mxu0  ;;  %v6129_v59 = vmul.f32 %v7675_v2, %v7675_v2 }
 0x2af   : > { %v6088_v3 = vadd.f32 %v7676_v25, %v6087_v55  ;;  %v6127_v50 = vmul.f32 %v7676_v25, %v7676_v25  ;;  %v6157_v36 = vadd.f32 %v6156_v19, %v6126_v51  ;;  %v7678_v31 = vadd.f32 %v5845_v28, %v3708_v40 }
 0x2b0   : > { %v7441_v52 = vpop.f32.mrb[28].mxu1  ;;  %v6945_v24 = vpack.c.bf16 %v7677_v8, %v7675_v2  ;;  %v6130_v16 = vmul.f32 %v7677_v8, %v7677_v8 }
 0x2b1   : > { %v3721_v10 = vpop.f32.mrb[29].mxu1  ;;  %v6158_v17 = vadd.f32 %v6157_v36, %v6127_v50  ;;  %v6940_v57 = vpack.c.bf16 %v7678_v31, %v7676_v25  ;;  %v6089_v6 = vadd.f32 %v7678_v31, %v6088_v3  ;;  %v6128_v32 = vmul.f32 %v7678_v31, %v7678_v31 }
 0x2b2   : > { %v7442_v11 = vpop.f32.mrb[30].mxu1  ;;  %6984 = vst [vmem:[%s10049_s13 + $0x68] sm:$0xff] %v6945_v24  }
 0x2b3   : > { %v3724_v46 = vpop.f32.mrb[31].mxu1  ;;  %6983 = vst [vmem:[%s10049_s13 + $0x60] sm:$0xff] %v6940_v57   ;;  %v6090_v38 = vadd.f32 %v7675_v2, %v6089_v6  ;;  %v6159_v18 = vadd.f32 %v6158_v17, %v6128_v32  ;;  %v7633_v56 = vpop.f32.mrb[28].mxu0 }
 0x2b4   : > { %v7679_v53 = vadd.f32 %v7633_v56, %v7441_v52  ;;  %v5858_v54 = vpop.f32.mrb[29].mxu0 }
 0x2b5   : > { %v6160_v5 = vadd.f32 %v6159_v18, %v6129_v59  ;;  %v7680_v22 = vadd.f32 %v5858_v54, %v3721_v10  ;;  %v6091_v62 = vadd.f32 %v7677_v8, %v6090_v38  ;;  %v7634_v41 = vpop.f32.mrb[30].mxu0 }
 0x2b6   : > { %v7681_v20 = vadd.f32 %v7634_v41, %v7442_v11  ;;  %v5861_v23 = vpop.f32.mrb[31].mxu0  ;;  %v6133_v35 = vmul.f32 %v7679_v53, %v7679_v53 }
 0x2b7   : > { %v6092_v43 = vadd.f32 %v7680_v22, %v6091_v62  ;;  %v6131_v37 = vmul.f32 %v7680_v22, %v7680_v22  ;;  %v6161_v1 = vadd.f32 %v6160_v5, %v6130_v16  ;;  %v7682_v39 = vadd.f32 %v5861_v23, %v3724_v46 }
 0x2b8   : > { %v6955_v30 = vpack.c.bf16 %v7681_v20, %v7679_v53  ;;  %v6134_v49 = vmul.f32 %v7681_v20, %v7681_v20 }
 0x2b9   : > { %v6162_v61 = vadd.f32 %v6161_v1, %v6131_v37  ;;  %v6950_v60 = vpack.c.bf16 %v7682_v39, %v7680_v22  ;;  %v6093_v48 = vadd.f32 %v7682_v39, %v6092_v43  ;;  %v6132_v0 = vmul.f32 %v7682_v39, %v7682_v39 }
 0x2ba   : > { %6986 = vst [vmem:[%s10049_s13 + $0x78] sm:$0xff] %v6955_v30  }
 0x2bb   : > { %6985 = vst [vmem:[%s10049_s13 + $0x70] sm:$0xff] %v6950_v60   ;;  %v6094_v14 = vadd.f32 %v7679_v53, %v6093_v48  ;;  %v6163_v13 = vadd.f32 %v6162_v61, %v6132_v0 }
 0x2bd   : > { %v6095_v44 = vadd.f32 %v7681_v20, %v6094_v14  ;;  %v6164_v42 = vadd.f32 %v6163_v13, %v6133_v35 }
 0x2bf   : > { %v6096_v27 = vrot.slane %v6095_v44, 4  ;;  %v6165_v7 = vadd.f32 %v6164_v42, %v6134_v49 }
 0x2c1   : > { %v6097_v58 = vadd.f32 %v6096_v27, %v6095_v44  ;;  %v6166_v45 = vrot.slane %v6165_v7, 4 }
 0x2c3   : > { %v6098_v33 = vrot.slane %v6097_v58, 2  ;;  %v6167_v34 = vadd.f32 %v6166_v45, %v6165_v7 }
 0x2c5   : > { %v6099_v9 = vadd.f32 %v6098_v33, %v6097_v58  ;;  %v6168_v47 = vrot.slane %v6167_v34, 2 }
 0x2c7   : > { %v6100_v12 = vrot.slane %v6099_v9, 1  ;;  %v6169_v40 = vadd.f32 %v6168_v47, %v6167_v34 }
 0x2c9   : > { %v6101_v63 = vadd.f32 %v6100_v12, %v6099_v9  ;;  %v6170_v21 = vrot.slane %v6169_v40, 1 }
 0x2cb   : > { %6102 = vst [vmem:[%s265_s15] sm:$0x1] %v6101_v63  ;;  %v6171_v29 = vadd.f32 %v6170_v21, %v6169_v40 }
 0x2cd   : > { %6172 = vst [vmem:[%s268_s18] sm:$0x1] %v6171_v29 }
 0x2ce PF: > { %s17_s21 = sadd.s32 1, %s8127_s21  }
 0x2cf   : > { %p14_p4 = scmp.ge.s32.totalorder %s17_s21, 4  }
 0x2d1   :  { %16 = sbr.rel (!%p14_p4) target bundleno = 1 (0x1), region = 101 }

</bundles_post_ra>
